<compile_context>
chip_gen: v6e
topology: v6e:2x2x1
jax: 0.10.0
libtpu: 0.0.40
codegen_flags: <defaults>
</compile_context>

<pallas_src>
import functools

import jax
import jax.numpy as jnp
from jax import lax
from jax.experimental import pallas as pl
from jax.experimental.pallas import tpu as pltpu

_LANES = 128


def _round_up(x, m):
    return ((x + m - 1) // m) * m


def _focal_loss_kernel(preds_ref, labels_ref, out_ref, *, alpha, gamma,
                       n_valid, num_classes, approx_reciprocal):
    c_cls = num_classes
    tile_rows, lanes = labels_ref.shape          # (tile_rows, 128)

    blk = pl.program_id(0)

    x = preds_ref[...].astype(jnp.float32)       # (tile_rows, C*128), class-interleaved
    labels = labels_ref[...].astype(jnp.int32)   # (tile_rows, 128)

    # Validity mask from the true sample count: covers both the pad-to-1024 tail
    # and a ragged last grid block.  Built before any exp/log.
    row = lax.broadcasted_iota(jnp.int32, (tile_rows, lanes), 0)
    lane = lax.broadcasted_iota(jnp.int32, (tile_rows, lanes), 1)
    global_idx = (blk * tile_rows + row) * lanes + lane
    valid = global_idx < n_valid

    # De-interleave classes: plane_c[r, k] = x[r, C*k + c]  (= logit of sample
    # 128*r + k for class c).  Constant 0/1 selection matmuls on the idle MXU;
    # HIGHEST precision keeps f32 inputs exact.
    sel_row = lax.broadcasted_iota(jnp.int32, (c_cls * lanes, lanes), 0)
    sel_col = lax.broadcasted_iota(jnp.int32, (c_cls * lanes, lanes), 1)
    planes = []
    for c in range(c_cls):
        sel_c = (sel_row == c_cls * sel_col + c).astype(jnp.float32)
        p_c = jnp.dot(x, sel_c, preferred_element_type=jnp.float32,
                      precision=jax.lax.Precision.HIGHEST)
        # Mask garbage BEFORE the exp/log path so it cannot make inf/NaN.
        planes.append(jnp.where(valid, p_c, 0.0))

    # Numerically stable log-softmax pieces; class dim (C=3, static) unrolled.
    m = planes[0]
    for c in range(1, c_cls):
        m = jnp.maximum(m, planes[c])
    exps = [jnp.exp(p - m) for p in planes]       # C exps / sample (EUP)
    denom = exps[0]
    for c in range(1, c_cls):
        denom = denom + exps[c]

    # Gather-at-label with per-class masks (no (C, N) onehot temporaries).
    zeros = jnp.zeros((tile_rows, lanes), jnp.float32)
    logit_t = zeros
    exp_t = zeros
    alpha_t = zeros
    for c in range(c_cls):
        mask_c = labels == c
        logit_t = jnp.where(mask_c, planes[c], logit_t)
        exp_t = jnp.where(mask_c, exps[c], exp_t)
        alpha_t = jnp.where(mask_c, jnp.float32(alpha[c]), alpha_t)

    # p_t reuses exp(shifted): softmax-at-label without a second exp.
    inv_denom = pl.reciprocal(denom, approx=approx_reciprocal)
    p_t = exp_t * inv_denom
    logp_t = (logit_t - m) - jnp.log(denom)       # log-softmax at the label

    one_minus = jnp.maximum(1.0 - p_t, 0.0)       # clamp: p_t may round above 1
    if float(gamma) == int(gamma):
        focal = lax.integer_pow(one_minus, int(gamma))   # VPU muls, no EUP
    else:
        focal = jnp.power(one_minus, float(gamma))

    loss = -alpha_t * focal * logp_t
    loss = jnp.where(valid, loss, 0.0)            # padded / ragged samples -> 0

    out_ref[...] = jnp.sum(loss).reshape(1, 1, 1)


def focal_loss(preds, labels, *, alpha=0.25, gamma=2, num_classes=3,
               size_average=True, max_tile_rows=1024, approx_reciprocal=True):
    """JAX/Pallas equivalent of the PyTorch focal_loss.forward.

    preds:  float array (..., num_classes)
    labels: int array (...) with values in [0, num_classes)
    """
    c = preds.shape[-1]
    assert c == num_classes

    if isinstance(alpha, (list, tuple)):
        assert len(alpha) == num_classes
        alpha_vals = tuple(float(a) for a in alpha)
    else:
        assert alpha < 1
        alpha_vals = (float(alpha),) + (float(1.0 - alpha),) * (num_classes - 1)

    preds_flat = preds.reshape(-1, c)
    n = preds_flat.shape[0]

    # int8 labels: 1 byte/sample of DMA instead of 4 (sentinel never needed —
    # the in-kernel validity mask covers padded / ragged positions).
    lbl_dtype = jnp.int8 if num_classes <= 127 else jnp.int32
    labels_flat = labels.reshape(-1).astype(lbl_dtype)

    # Pad the sample axis only up to a multiple of 8*128 (keeps every block's
    # sublane dim (8,128)/(32,128)-aligned); everything past the true n is
    # handled by the in-kernel mask, so we never pad to a tile multiple.
    n_pad = _round_up(n, 8 * _LANES)
    if n_pad != n:
        preds_flat = jnp.pad(preds_flat, ((0, n_pad - n), (0, 0)))
        labels_flat = jnp.pad(labels_flat, (0, n_pad - n))

    rows = n_pad // _LANES
    # Free, contiguous reshapes: no transpose, classes stay interleaved in HBM.
    preds_rows = preds_flat.reshape(rows, c * _LANES)
    labels_rows = labels_flat.reshape(rows, _LANES)

    # Tile the row axis.  Small problems: one full-extent block.  Large
    # problems: cap at ~half the rows (rounded to 32 for the int8 tile) so the
    # "parallel" grid axis gives v7x's two TensorCores at least a block each,
    # up to max_tile_rows (=128K samples, a few MiB of VMEM) to amortize
    # per-grid-step overhead on v5e/v6e.
    if rows < 64:
        tile_rows = rows
    else:
        tile_rows = min(max_tile_rows, _round_up((rows + 1) // 2, 32))
    num_blocks = pl.cdiv(rows, tile_rows)

    kernel = functools.partial(
        _focal_loss_kernel, alpha=alpha_vals, gamma=gamma, n_valid=n,
        num_classes=num_classes, approx_reciprocal=approx_reciprocal)

    bytes_in = (preds_rows.size * preds_rows.dtype.itemsize
                + labels_rows.size * labels_rows.dtype.itemsize)

    partials = pl.pallas_call(
        kernel,
        out_shape=jax.ShapeDtypeStruct((num_blocks, 1, 1), jnp.float32),
        grid=(num_blocks,),
        in_specs=[
            pl.BlockSpec((tile_rows, c * _LANES), lambda i: (i, 0)),
            pl.BlockSpec((tile_rows, _LANES), lambda i: (i, 0)),
        ],
        out_specs=pl.BlockSpec((1, 1, 1), lambda i: (i, 0, 0)),
        compiler_params=pltpu.CompilerParams(
            dimension_semantics=("parallel",),       # shards blocks across TCs (v7x)
            vmem_limit_bytes=32 * 1024 * 1024,       # plenty; safe on v5e/v6e/v7x
        ),
        cost_estimate=pl.CostEstimate(
            flops=2 * n_pad * (c * _LANES) * c + 40 * n_pad,   # MXU de-interleave + VPU
            transcendentals=n_pad * (c + 2),                   # C exps + log + recip
            bytes_accessed=bytes_in + num_blocks * 4,
        ),
    )(preds_rows, labels_rows)

    total = jnp.sum(partials)
    if size_average:
        return total / jnp.float32(n)
    return total


def _reference_focal_loss(preds, labels, *, alpha=0.25, gamma=2,
                          num_classes=3, size_average=True):
    """Pure-JAX reference mirroring the PyTorch code."""
    if isinstance(alpha, (list, tuple)):
        alpha_vec = jnp.asarray(alpha, dtype=jnp.float32)
    else:
        alpha_vec = jnp.concatenate([
            jnp.full((1,), alpha, dtype=jnp.float32),
            jnp.full((num_classes - 1,), 1.0 - alpha, dtype=jnp.float32),
        ])
    c = preds.shape[-1]
    p = preds.reshape(-1, c).astype(jnp.float32)
    l = labels.reshape(-1)
    sm = jax.nn.softmax(p, axis=1)
    logsm = jnp.log(sm)
    p_t = jnp.take_along_axis(sm, l[:, None], axis=1)[:, 0]
    logp_t = jnp.take_along_axis(logsm, l[:, None], axis=1)[:, 0]
    a_t = alpha_vec[l]
    loss = -a_t * jnp.power(1.0 - p_t, gamma) * logp_t
    return jnp.mean(loss) if size_average else jnp.sum(loss)


if __name__ == "__main__":
    key = jax.random.PRNGKey(0)
    k1, k2, k3, k4 = jax.random.split(key, 4)

    # Small shapes implied by the module: (batch, seq, num_classes) logits.
    batch, seq, num_classes = 2, 8, 3
    preds = jax.random.normal(k1, (batch, seq, num_classes), dtype=jnp.float32)
    labels = jax.random.randint(k2, (batch, seq), 0, num_classes, dtype=jnp.int32)

    ref = _reference_focal_loss(preds, labels, alpha=0.25, gamma=2,
                                num_classes=num_classes, size_average=True)

    # 1) mean reduction, approx EUP reciprocal (default; accuracy bounded by
    #    the hardware reciprocal approximation -> loose tolerance).
    out = focal_loss(preds, labels, alpha=0.25, gamma=2,
                     num_classes=num_classes, size_average=True)
    out = jax.block_until_ready(out)
    assert jnp.allclose(out, ref, atol=5e-3, rtol=1e-3), (out, ref)

    # 2) same inputs with an exact reciprocal -> tight tolerance.
    out_exact = focal_loss(preds, labels, alpha=0.25, gamma=2,
                           num_classes=num_classes, size_average=True,
                           approx_reciprocal=False)
    out_exact = jax.block_until_ready(out_exact)
    assert jnp.allclose(out_exact, ref, atol=1e-5, rtol=1e-5), (out_exact, ref)

    # 3) sum reduction, list alpha, ragged N (not a multiple of 1024) that
    #    exercises the multi-block grid + in-kernel tail masking.
    n_big = 9000
    preds_b = jax.random.normal(k3, (n_big, num_classes), dtype=jnp.float32)
    labels_b = jax.random.randint(k4, (n_big,), 0, num_classes, dtype=jnp.int32)
    out_s = focal_loss(preds_b, labels_b, alpha=[0.1, 0.3, 0.6], gamma=2,
                       num_classes=num_classes, size_average=False,
                       approx_reciprocal=False)
    out_s = jax.block_until_ready(out_s)
    ref_s = _reference_focal_loss(preds_b, labels_b, alpha=[0.1, 0.3, 0.6],
                                  gamma=2, num_classes=num_classes,
                                  size_average=False)
    assert jnp.allclose(out_s, ref_s, atol=1e-2, rtol=1e-4), (out_s, ref_s)

    print("KERNEL_OK")
</pallas_src>

<mosaic_0001>
module attributes {stable_mosaic.version = 11 : i64} {
  func.func @_focal_loss_kernel(%arg0: i32, %arg1: memref<8x384xf32, #tpu.memory_space<vmem>>, %arg2: memref<8x128xi8, #tpu.memory_space<vmem>>, %arg3: memref<1x1x1xf32, #tpu.memory_space<vmem>>) attributes {dimension_semantics = [#tpu.dimension_semantics<parallel>], iteration_bounds = array<i64: 1>, scalar_prefetch = 0 : i64, scratch_operands = 0 : i64, tpu.core_type = #tpu.core_type<tc>, window_params = [{transform_indices = @transform_0, window_bounds = array<i64: 8, 384>}, {transform_indices = @transform_1, window_bounds = array<i64: 8, 128>}, {transform_indices = @transform_2, window_bounds = array<i64: 1, 1, 1>}]} {
    %c0 = arith.constant 0 : index
    %c0_0 = arith.constant 0 : index
    %0 = vector.load %arg1[%c0, %c0_0] : memref<8x384xf32, #tpu.memory_space<vmem>>, vector<8x384xf32>
    %c0_1 = arith.constant 0 : index
    %c0_2 = arith.constant 0 : index
    %1 = vector.load %arg2[%c0_1, %c0_2] : memref<8x128xi8, #tpu.memory_space<vmem>>, vector<8x128xi8>
    %2 = arith.extsi %1 : vector<8x128xi8> to vector<8x128xi32>
    %3 = tpu.iota {dimensions = array<i32: 0>} : vector<8x128xi32>
    %4 = tpu.iota {dimensions = array<i32: 1>} : vector<8x128xi32>
    %c8_i32 = arith.constant 8 : i32
    %5 = arith.muli %arg0, %c8_i32 : i32
    %6 = vector.broadcast %5 : i32 to vector<8x128xi32>
    %7 = arith.addi %6, %3 : vector<8x128xi32>
    %c128_i32 = arith.constant 128 : i32
    %8 = vector.broadcast %c128_i32 : i32 to vector<8x128xi32>
    %9 = arith.muli %7, %8 : vector<8x128xi32>
    %10 = arith.addi %9, %4 : vector<8x128xi32>
    %c16_i32 = arith.constant 16 : i32
    %11 = vector.broadcast %c16_i32 : i32 to vector<8x128xi32>
    %12 = arith.cmpi slt, %10, %11 : vector<8x128xi32>
    %13 = tpu.iota {dimensions = array<i32: 0>} : vector<384x128xi32>
    %14 = tpu.iota {dimensions = array<i32: 1>} : vector<384x128xi32>
    %c3_i32 = arith.constant 3 : i32
    %15 = vector.broadcast %c3_i32 : i32 to vector<384x128xi32>
    %16 = arith.muli %15, %14 : vector<384x128xi32>
    %c0_i32 = arith.constant 0 : i32
    %17 = vector.broadcast %c0_i32 : i32 to vector<384x128xi32>
    %18 = arith.addi %16, %17 : vector<384x128xi32>
    %19 = arith.cmpi eq, %13, %18 : vector<384x128xi32>
    %20 = arith.extui %19 : vector<384x128xi1> to vector<384x128xi32>
    %21 = arith.sitofp %20 : vector<384x128xi32> to vector<384x128xf32>
    %cst = arith.constant dense<0.000000e+00> : vector<8x128xf32>
    %22 = tpu.matmul %0, %21, %cst {dimension_numbers = #tpu.dot_dimension_numbers<[1], [0], [0], [1], [0, 0, 1, 1], [], []>, precision = #tpu.contract_precision<fp32>} : vector<8x384xf32>, vector<384x128xf32>, vector<8x128xf32> -> vector<8x128xf32>
    %cst_3 = arith.constant 0.000000e+00 : f32
    %23 = vector.broadcast %cst_3 : f32 to vector<8x128xf32>
    %24 = arith.select %12, %22, %23 : vector<8x128xi1>, vector<8x128xf32>
    %c3_i32_4 = arith.constant 3 : i32
    %25 = vector.broadcast %c3_i32_4 : i32 to vector<384x128xi32>
    %26 = arith.muli %25, %14 : vector<384x128xi32>
    %c1_i32 = arith.constant 1 : i32
    %27 = vector.broadcast %c1_i32 : i32 to vector<384x128xi32>
    %28 = arith.addi %26, %27 : vector<384x128xi32>
    %29 = arith.cmpi eq, %13, %28 : vector<384x128xi32>
    %30 = arith.extui %29 : vector<384x128xi1> to vector<384x128xi32>
    %31 = arith.sitofp %30 : vector<384x128xi32> to vector<384x128xf32>
    %cst_5 = arith.constant dense<0.000000e+00> : vector<8x128xf32>
    %32 = tpu.matmul %0, %31, %cst_5 {dimension_numbers = #tpu.dot_dimension_numbers<[1], [0], [0], [1], [0, 0, 1, 1], [], []>, precision = #tpu.contract_precision<fp32>} : vector<8x384xf32>, vector<384x128xf32>, vector<8x128xf32> -> vector<8x128xf32>
    %cst_6 = arith.constant 0.000000e+00 : f32
    %33 = vector.broadcast %cst_6 : f32 to vector<8x128xf32>
    %34 = arith.select %12, %32, %33 : vector<8x128xi1>, vector<8x128xf32>
    %c3_i32_7 = arith.constant 3 : i32
    %35 = vector.broadcast %c3_i32_7 : i32 to vector<384x128xi32>
    %36 = arith.muli %35, %14 : vector<384x128xi32>
    %c2_i32 = arith.constant 2 : i32
    %37 = vector.broadcast %c2_i32 : i32 to vector<384x128xi32>
    %38 = arith.addi %36, %37 : vector<384x128xi32>
    %39 = arith.cmpi eq, %13, %38 : vector<384x128xi32>
    %40 = arith.extui %39 : vector<384x128xi1> to vector<384x128xi32>
    %41 = arith.sitofp %40 : vector<384x128xi32> to vector<384x128xf32>
    %cst_8 = arith.constant dense<0.000000e+00> : vector<8x128xf32>
    %42 = tpu.matmul %0, %41, %cst_8 {dimension_numbers = #tpu.dot_dimension_numbers<[1], [0], [0], [1], [0, 0, 1, 1], [], []>, precision = #tpu.contract_precision<fp32>} : vector<8x384xf32>, vector<384x128xf32>, vector<8x128xf32> -> vector<8x128xf32>
    %cst_9 = arith.constant 0.000000e+00 : f32
    %43 = vector.broadcast %cst_9 : f32 to vector<8x128xf32>
    %44 = arith.select %12, %42, %43 : vector<8x128xi1>, vector<8x128xf32>
    %45 = arith.maximumf %24, %34 : vector<8x128xf32>
    %46 = arith.maximumf %45, %44 : vector<8x128xf32>
    %47 = arith.subf %24, %46 : vector<8x128xf32>
    %48 = math.exp %47 : vector<8x128xf32>
    %49 = arith.subf %34, %46 : vector<8x128xf32>
    %50 = math.exp %49 : vector<8x128xf32>
    %51 = arith.subf %44, %46 : vector<8x128xf32>
    %52 = math.exp %51 : vector<8x128xf32>
    %53 = arith.addf %48, %50 : vector<8x128xf32>
    %54 = arith.addf %53, %52 : vector<8x128xf32>
    %cst_10 = arith.constant 0.000000e+00 : f32
    %55 = vector.broadcast %cst_10 : f32 to vector<8x128xf32>
    %c0_i32_11 = arith.constant 0 : i32
    %56 = vector.broadcast %c0_i32_11 : i32 to vector<8x128xi32>
    %57 = arith.cmpi eq, %2, %56 : vector<8x128xi32>
    %58 = arith.select %57, %24, %55 : vector<8x128xi1>, vector<8x128xf32>
    %59 = arith.select %57, %48, %55 : vector<8x128xi1>, vector<8x128xf32>
    %cst_12 = arith.constant 2.500000e-01 : f32
    %60 = vector.broadcast %cst_12 : f32 to vector<8x128xf32>
    %61 = arith.select %57, %60, %55 : vector<8x128xi1>, vector<8x128xf32>
    %c1_i32_13 = arith.constant 1 : i32
    %62 = vector.broadcast %c1_i32_13 : i32 to vector<8x128xi32>
    %63 = arith.cmpi eq, %2, %62 : vector<8x128xi32>
    %64 = arith.select %63, %34, %58 : vector<8x128xi1>, vector<8x128xf32>
    %65 = arith.select %63, %50, %59 : vector<8x128xi1>, vector<8x128xf32>
    %cst_14 = arith.constant 7.500000e-01 : f32
    %66 = vector.broadcast %cst_14 : f32 to vector<8x128xf32>
    %67 = arith.select %63, %66, %61 : vector<8x128xi1>, vector<8x128xf32>
    %c2_i32_15 = arith.constant 2 : i32
    %68 = vector.broadcast %c2_i32_15 : i32 to vector<8x128xi32>
    %69 = arith.cmpi eq, %2, %68 : vector<8x128xi32>
    %70 = arith.select %69, %44, %64 : vector<8x128xi1>, vector<8x128xf32>
    %71 = arith.select %69, %52, %65 : vector<8x128xi1>, vector<8x128xf32>
    %cst_16 = arith.constant 7.500000e-01 : f32
    %72 = vector.broadcast %cst_16 : f32 to vector<8x128xf32>
    %73 = arith.select %69, %72, %67 : vector<8x128xi1>, vector<8x128xf32>
    %74 = tpu.reciprocal %54 {approx = true} : vector<8x128xf32> -> vector<8x128xf32>
    %75 = arith.mulf %71, %74 : vector<8x128xf32>
    %76 = arith.subf %70, %46 : vector<8x128xf32>
    %77 = math.log %54 : vector<8x128xf32>
    %78 = arith.subf %76, %77 : vector<8x128xf32>
    %cst_17 = arith.constant 1.000000e+00 : f32
    %79 = vector.broadcast %cst_17 : f32 to vector<8x128xf32>
    %80 = arith.subf %79, %75 : vector<8x128xf32>
    %cst_18 = arith.constant 0.000000e+00 : f32
    %81 = vector.broadcast %cst_18 : f32 to vector<8x128xf32>
    %82 = arith.maximumf %80, %81 : vector<8x128xf32>
    %83 = arith.mulf %82, %82 : vector<8x128xf32>
    %cst_19 = arith.constant 0.000000e+00 : f32
    %84 = vector.broadcast %cst_19 : f32 to vector<8x128xf32>
    %85 = arith.subf %84, %73 : vector<8x128xf32>
    %86 = arith.mulf %85, %83 : vector<8x128xf32>
    %87 = arith.mulf %86, %78 : vector<8x128xf32>
    %cst_20 = arith.constant 0.000000e+00 : f32
    %88 = vector.broadcast %cst_20 : f32 to vector<8x128xf32>
    %89 = arith.select %12, %87, %88 : vector<8x128xi1>, vector<8x128xf32>
    %90 = vector.shape_cast %89 : vector<8x128xf32> to vector<1x8x128xf32>
    %cst_21 = arith.constant dense<0.000000e+00> : vector<1xf32>
    %91 = vector.multi_reduction <add>, %90, %cst_21 [1, 2] : vector<1x8x128xf32> to vector<1xf32>
    %92 = vector.shape_cast %91 : vector<1xf32> to vector<1x1x1xf32>
    %93 = vector.extract %92[0, 0, 0] : f32 from vector<1x1x1xf32>
    %94 = vector.broadcast %93 : f32 to vector<1x1x1xf32>
    %c0_22 = arith.constant 0 : index
    %c0_23 = arith.constant 0 : index
    %c0_24 = arith.constant 0 : index
    %95 = vector.load %arg3[%c0_22, %c0_23, %c0_24] : memref<1x1x1xf32, #tpu.memory_space<vmem>>, vector<1x1x1xf32>
    tpu.vector_store %arg3[%c0_22, %c0_23, %c0_24], %94 {strides = array<i32>} : memref<1x1x1xf32, #tpu.memory_space<vmem>>, vector<1x1x1xf32>,
    return
  }
  func.func @transform_0(%arg0: i32) -> (i32, i32) {
    %c0_i32 = arith.constant 0 : i32
    %c0_i32_0 = arith.constant 0 : i32
    return %arg0, %c0_i32 : i32, i32
  }
  func.func @transform_1(%arg0: i32) -> (i32, i32) {
    %c0_i32 = arith.constant 0 : i32
    %c0_i32_0 = arith.constant 0 : i32
    return %arg0, %c0_i32 : i32, i32
  }
  func.func @transform_2(%arg0: i32) -> (i32, i32, i32) {
    %c0_i32 = arith.constant 0 : i32
    %c0_i32_0 = arith.constant 0 : i32
    %c0_i32_1 = arith.constant 0 : i32
    return %arg0, %c0_i32, %c0_i32_0 : i32, i32, i32
  }
}

</mosaic_0001>

<bundles_post_ra>
// kernel: tpu_custom_call.1
= control target key start
LH: loop header
LB: loop body
LE: loop exit
PB: predicated region body
PF: predicated region fallthrough
CT: control target
= control target key end

     0   :  { %7 = vsyncpa [#allocation3], 0  ;;  %s12013_s0 = inlined_call_operand.hbm [shape: f32[8,384], index: 0, kind: input, shape index: {}]   ;;  %s12014_s1 = inlined_call_operand.hbm [shape: s8[8,128], index: 1, kind: input, shape index: {}]   ;;  %s12015_s2 = inlined_call_operand.hbm [shape: f32[1,1,1], index: 2, kind: output, shape index: {}]  }
   0x1   :  { %8 = vsyncpa [#allocation6], 0 }
   0x2   :  { %9 = vsyncpa [#allocation4], 0  ;;  %s7337_s9 = smov [#allocation2]   ;;  %s7338_s11 = smov [#allocation5]  }
   0x3   :  { %s16_s10 = sshll.u32 %s7337_s9, 4  ;;  %s26_s12 = sshll.u32 %s7338_s11, 4  ;;  %s17_s10 = int_to_ptr.vmem [resolvable:$true] %s16_s10  ;;  %s27_s12 = int_to_ptr.vmem [resolvable:$true] %s26_s12 }
   0x4   :  { %s7279_s13 = scalar_lea.vmem %s17_s10, 384  ;;  %p7284_p1 = scmp.lt.s32.totalorder %s17_s10, %s17_s10 }
   0x5   :  { %p7280_p0 = scmp.ne.s32.totalorder %s17_s10, %s7279_s13  ;;  %p7285_p2 = scmp.lt.s32.totalorder %s7279_s13, %s7279_s13 }
   0x7   :  { %p7286_p3 = por %p7285_p2, %p7284_p1 }
   0x9   :  { %p7287_p4 = pnand %p7286_p3, %p7280_p0 }
   0xb   :  { %7290 = shalt.err (!%p7287_p4)
}
   0xc   :  { %19 = dma.hbm_to_vmem [thread:$0]  %s12013_s0, 384, %s17_s10, [#allocation3]  }
   0xd   :  { %s7299_s16 = scalar_lea.vmem %s27_s12, 32  ;;  %p7304_p6 = scmp.lt.s32.totalorder %s27_s12, %s27_s12 }
   0xe   :  { %p7300_p5 = scmp.ne.s32.totalorder %s27_s12, %s7299_s16  ;;  %p7305_p7 = scmp.lt.s32.totalorder %s7299_s16, %s7299_s16 }
  0x10   :  { %p7306_p8 = por %p7305_p7, %p7304_p6 }
  0x12   :  { %p7307_p9 = pnand %p7306_p8, %p7300_p5 }
  0x14   :  { %7310 = shalt.err (!%p7307_p9)
}
  0x15   :  { %29 = dma.hbm_to_vmem [thread:$0]  %s12014_s1, 32, %s27_s12, [#allocation6]  }
  0x16   :  { %7331 = dma.done.wait [#allocation3], 384  }
  0x17   :  { %7332 = vsyncadd [#allocation3], 4294966912  ;;  %v41_v0 = vlaneseq }
  0x18   :  { %7333 = dma.done.wait [#allocation6], 32  }
  0x19   :  { %7334 = vsyncadd [#allocation6], 4294967264  ;;  %v7364_v1 = vshrl.u32 %v41_v0, 7  ;;  %v7366_v2 = vand.u32 127, %v41_v0  ;;  %v12056_v12 = vmov 1.0   ;;  %v12054_v13 = vmov 0.0  }
  0x1a   :  { %s7342_s0 = smov [#allocation7]  }
  0x1b   :  { %12355 = vst [vmem:[#allocation11_spill] sm:$0xff] %v7364_v1  ;;  %12356 = vst [vmem:[#allocation12_spill] sm:$0xff] %v7366_v2  ;;  %v7369_v3 = vadd.s32 248, %v7364_v1  ;;  %v7372_v4 = vmul.u32 3, %v7366_v2  ;;  %v7375_v5 = vadd.s32 120, %v7364_v1  ;;  %v7378_v6 = vadd.s32 240, %v7364_v1 }
  0x1c   :  { %v7381_v7 = vadd.s32 112, %v7364_v1  ;;  %v7384_v8 = vadd.s32 232, %v7364_v1  ;;  %v7387_v9 = vadd.s32 104, %v7364_v1  ;;  %v7390_v10 = vadd.s32 224, %v7364_v1  ;;  %s5101_s1 = sshll.u32 %s7342_s0, 4  ;;  %s5102_s1 = int_to_ptr.vmem [resolvable:$true] %s5101_s1 }
  0x1d   :  { %12357 = vst [vmem:[#allocation13_spill] sm:$0xff] %v7372_v4  ;;  %vm130_vm0 = vcmp.eq.s32.totalorder %v7369_v3, %v7372_v4  ;;  %vm114_vm1 = vcmp.eq.s32.totalorder %v7375_v5, %v7372_v4  ;;  %vm129_vm2 = vcmp.eq.s32.totalorder %v7378_v6, %v7372_v4  ;;  %v7399_v11 = vadd.s32 96, %v7364_v1  ;;  %s7311_s20 = scalar_lea.vmem %s5102_s1, 16  ;;  %s7315_s21 = scalar_lea.vmem %s5102_s1, 32 }
  0x1e   :  { %12358 = vst [vmem:[#allocation14_spill] sm:$0xff] %v7384_v8  ;;  %12359 = vst [vmem:[#allocation15_spill] sm:$0xff] %v7387_v9  ;;  %5687 = vmatprep.subr.msk.mxu0 %vm130_vm0, %v12056_v12  ;;  %v5141_v14 = vsel %vm129_vm2, 1.0, %v12054_v13  ;;  %vm113_vm3 = vcmp.eq.s32.totalorder %v7381_v7, %v7372_v4  ;;  %vm128_vm4 = vcmp.eq.s32.totalorder %v7384_v8, %v7372_v4  ;;  %v7456_v23 = vadd.s32 216, %v7364_v1  ;;  %p7312_p10 = scmp.ne.s32.totalorder %s5102_s1, %s7311_s20  ;;  %p7316_p11 = scmp.lt.s32.totalorder %s5102_s1, %s5102_s1 }
  0x1f   :  { %12360 = vst [vmem:[#allocation16_spill] sm:$0xff] %v7390_v10  ;;  %12361 = vst [vmem:[#allocation17_spill] sm:$0xff] %v7399_v11  ;;  %vm112_vm5 = vcmp.eq.s32.totalorder %v7387_v9, %v7372_v4  ;;  %5688 = vmatpush3.msk.msra.mxu0 %vm114_vm1, %v12056_v12  ;;  %v7419_v15 = vsub.f32 %v5141_v14, %v5141_v14  ;;  %v5125_v16 = vsel %vm113_vm3, 1.0, %v12054_v13  ;;  %v5140_v17 = vsel %vm128_vm4, 1.0, %v12054_v13  ;;  %p7317_p12 = scmp.lt.s32.totalorder %s7315_s21, %s7311_s20 }
  0x20   :  { %v5124_v18 = vsel %vm112_vm5, 1.0, %v12054_v13  ;;  %5689 = vmatprep.subr.msk.mxu0 %vm129_vm2, %v12056_v12  ;;  %v7437_v19 = vsub.f32 %v5125_v16, %v5125_v16  ;;  %v7439_v20 = vsub.f32 %v5140_v17, %v5140_v17  ;;  %vm127_vm6 = vcmp.eq.s32.totalorder %v7390_v10, %v7372_v4  ;;  %12362 = vst [vmem:[#allocation18_spill] sm:$0xff] %v7456_v23 }
  0x21   :  { %v7441_v21 = vsub.f32 %v5124_v18, %v5124_v18  ;;  %5690 = vmatpush3.msk.msra.mxu0 %vm113_vm3, %v12056_v12  ;;  %v5139_v22 = vsel %vm127_vm6, 1.0, %v12054_v13  ;;  %vm111_vm7 = vcmp.eq.s32.totalorder %v7399_v11, %v7372_v4  ;;  %v7459_v24 = vadd.s32 88, %v7364_v1  ;;  %p7318_p13 = por %p7317_p12, %p7316_p11 }
  0x22   :  { %5691 = vmatprep.subr.msk.mxu0 %vm128_vm4, %v12056_v12  ;;  %v7465_v25 = vsub.f32 %v5139_v22, %v5139_v22  ;;  %v5123_v26 = vsel %vm111_vm7, 1.0, %v12054_v13  ;;  %v5142_v27 = vsel %vm130_vm0, 1.0, %v12054_v13  ;;  %v7476_v28 = vadd.s32 208, %v7364_v1 }
  0x23   :  { %12363 = vst [vmem:[#allocation19_spill] sm:$0xff] %v7459_v24  ;;  %5692 = vmatpush3.msk.msra.mxu0 %vm112_vm5, %v12056_v12  ;;  %v7482_v29 = vsub.f32 %v5123_v26, %v5123_v26  ;;  %vm126_vm8 = vcmp.eq.s32.totalorder %v7456_v23, %v7372_v4  ;;  %vm110_vm9 = vcmp.eq.s32.totalorder %v7459_v24, %v7372_v4  ;;  %v5126_v33 = vsel %vm114_vm1, 1.0, %v12054_v13  ;;  %p7319_p0 = pnand %p7318_p13, %p7312_p10 }
  0x24   :  { %12364 = vst [vmem:[#allocation20_spill] sm:$0xff] %v7476_v28  ;;  %v7488_v30 = vsub.f32 %v5142_v27, %v5142_v27  ;;  %5693 = vmatprep.subr.msk.mxu0 %vm127_vm6, %v12056_v12  ;;  %v5138_v31 = vsel %vm126_vm8, 1.0, %v12054_v13  ;;  %v5122_v32 = vsel %vm110_vm9, 1.0, %v12054_v13  ;;  %vm12110_vm10 = vcmp.eq.s32.totalorder %v7476_v28, %v7372_v4 }
  0x25   :  { %5694 = vmatpush3.msk.msra.mxu0 %vm111_vm7, %v12056_v12  ;;  %v7512_v34 = vsub.f32 %v5138_v31, %v5138_v31  ;;  %v7514_v35 = vsub.f32 %v5122_v32, %v5122_v32  ;;  %v5137_v37 = vsel %vm12110_vm10, 1.0, %v12054_v13  ;;  %v7527_v39 = vsub.f32 %v5126_v33, %v5126_v33 }
  0x26   :  { %12365 = vst [vmem:[#allocation21_spill] sm:$0xff] %v7488_v30  ;;  %v12037_v36 = vand.u32 4294901760, %v7488_v30  ;;  %5695 = vmatprep.subr.msk.mxu0 %vm126_vm8, %v12056_v12  ;;  %v7525_v38 = vsub.f32 %v5137_v37, %v5137_v37  ;;  %v7530_v40 = vadd.s32 80, %v7364_v1  ;;  %v12035_v41 = vand.u32 4294901760, %v7419_v15 }
  0x27   :  { %5696 = vmatpush3.msk.msra.mxu0 %vm110_vm9, %v12056_v12  ;;  %v7541_v43 = vadd.s32 200, %v7364_v1  ;;  %v12034_v44 = vand.u32 4294901760, %v7437_v19  ;;  %v7545_v45 = vadd.s32 72, %v7364_v1  ;;  %v12036_v46 = vand.u32 4294901760, %v7527_v39 }
  0x28   :  { %12366 = vst [vmem:[#allocation22_spill] sm:$0xff] %v7530_v40  ;;  %v471_v42 = vsub.f32 %v7488_v30, %v12037_v36  ;;  %5697 = vmatprep.subr.msk.mxu0 %vm12110_vm10, %v12056_v12  ;;  %vm12111_vm11 = vcmp.eq.s32.totalorder %v7530_v40, %v7372_v4  ;;  %v478_v47 = vsub.f32 %v7419_v15, %v12035_v41  ;;  %v12032_v48 = vand.u32 4294901760, %v7439_v20 }
  0x29   :  { %12367 = vst [vmem:[#allocation23_spill] sm:$0xff] %v7541_v43  ;;  %12368 = vst [vmem:[#allocation24_spill] sm:$0xff] %v7545_v45  ;;  %v5121_v50 = vsel %vm12111_vm11, 1.0, %v12054_v13  ;;  %5698 = vmatpush3.msk.msra.mxu0 %vm12111_vm11, %v12056_v12  ;;  %vm12112_vm12 = vcmp.eq.s32.totalorder %v7541_v43, %v7372_v4  ;;  %v366_v51 = vsub.f32 %v7437_v19, %v12034_v44  ;;  %v7600_v61 = vadd.s32 192, %v7364_v1 }
  0x2a   :  { %v472_v49 = vand.u32 4294901760, %v471_v42  ;;  %v359_v52 = vsub.f32 %v7527_v39, %v12036_v46  ;;  %v7574_v53 = vsub.f32 %v5121_v50, %v5121_v50  ;;  %v479_v54 = vand.u32 4294901760, %v478_v47  ;;  %5699 = vmatprep.subr.msk.mxu0 %vm12112_vm12, %v12056_v12 }
  0x2b   :  { %v5136_v55 = vsel %vm12112_vm12, 1.0, %v12054_v13  ;;  %v367_v57 = vand.u32 4294901760, %v366_v51  ;;  %vm12042_vm13 = vcmp.eq.s32.totalorder %v7545_v45, %v7372_v4  ;;  %v485_v58 = vsub.f32 %v7439_v20, %v12032_v48  ;;  %12369 = vst [vmem:[#allocation25_spill] sm:$0xff] %v7600_v61 }
  0x2c   :  { %5722 = vmatprep.subr.mxu1 %v472_v49  ;;  %v7584_v56 = vsub.f32 %v5136_v55, %v5136_v55  ;;  %v360_v59 = vand.u32 4294901760, %v359_v52  ;;  %v5120_v60 = vsel %vm12042_vm13, 1.0, %v12054_v13  ;;  %5700 = vmatpush3.msk.msra.mxu0 %vm12042_vm13, %v12056_v12  ;;  %v12030_v62 = vand.u32 4294901760, %v7441_v21 }
  0x2d   :  { %v7603_v63 = vsub.f32 %v5120_v60, %v5120_v60  ;;  %v486_v0 = vand.u32 4294901760, %v485_v58  ;;  %v7606_v14 = vadd.s32 64, %v7364_v1  ;;  %v12026_v16 = vand.u32 4294901760, %v7465_v25 }
  0x2e   :  { %5723 = vmatpush3.msra.mxu1 %v360_v59  ;;  %vm12016_vm14 = vcmp.eq.s32.totalorder %v7600_v61, %v7372_v4  ;;  %v373_v17 = vsub.f32 %v7441_v21, %v12030_v62  ;;  %v7615_v18 = vadd.s32 184, %v7364_v1  ;;  %v12025_v22 = vand.u32 4294901760, %v7482_v29 }
  0x2f   :  { %12370 = vst [vmem:[#allocation26_spill] sm:$0xff] %v7606_v14  ;;  %5724 = vmatprep.subr.mxu1 %v479_v54  ;;  %v5135_v26 = vsel %vm12016_vm14, 1.0, %v12054_v13  ;;  %5701 = vmatprep.subr.msk.mxu0 %vm12016_vm14, %v12056_v12  ;;  %vm12017_vm15 = vcmp.eq.s32.totalorder %v7606_v14, %v7372_v4  ;;  %v492_v27 = vsub.f32 %v7465_v25, %v12026_v16  ;;  %v7632_v31 = vadd.s32 56, %v7364_v1 }
  0x30   :  { %12371 = vst [vmem:[#allocation27_spill] sm:$0xff] %v7615_v18  ;;  %5725 = vmatpush3.msra.mxu1 %v367_v57  ;;  %v7634_v32 = vsub.f32 %v5135_v26, %v5135_v26  ;;  %v374_v33 = vand.u32 4294901760, %v373_v17  ;;  %v5119_v37 = vsel %vm12017_vm15, 1.0, %v12054_v13  ;;  %5702 = vmatpush3.msk.msra.mxu0 %vm12017_vm15, %v12056_v12  ;;  %vm12018_vm14 = vcmp.eq.s32.totalorder %v7615_v18, %v7372_v4 }
  0x31   :  { %12372 = vst [vmem:[#allocation28_spill] sm:$0xff] %v7632_v31  ;;  %5726 = vmatprep.subr.mxu1 %v486_v0  ;;  %v7646_v42 = vsub.f32 %v5119_v37, %v5119_v37  ;;  %v493_v47 = vand.u32 4294901760, %v492_v27  ;;  %v5134_v49 = vsel %vm12018_vm14, 1.0, %v12054_v13  ;;  %5703 = vmatprep.subr.msk.mxu0 %vm12018_vm14, %v12056_v12  ;;  %v380_v50 = vsub.f32 %v7482_v29, %v12025_v22 }
  0x32   :  { %5727 = vmatpush3.msra.mxu1 %v374_v33  ;;  %v7659_v51 = vsub.f32 %v5134_v49, %v5134_v49  ;;  %vm12019_vm15 = vcmp.eq.s32.totalorder %v7632_v31, %v7372_v4  ;;  %v12023_v52 = vand.u32 4294901760, %v7512_v34  ;;  %v7665_v54 = vadd.s32 176, %v7364_v1 }
  0x33   :  { %5728 = vmatprep.subr.mxu1 %v493_v47  ;;  %v381_v55 = vand.u32 4294901760, %v380_v50  ;;  %v5118_v57 = vsel %vm12019_vm15, 1.0, %v12054_v13  ;;  %5704 = vmatpush3.msk.msra.mxu0 %vm12019_vm15, %v12056_v12  ;;  %v12021_v58 = vand.u32 4294901760, %v7514_v35  ;;  %v7677_v59 = vadd.s32 48, %v7364_v1 }
  0x34   :  { %12373 = vst [vmem:[#allocation29_spill] sm:$0xff] %v7665_v54  ;;  %v7679_v60 = vsub.f32 %v5118_v57, %v5118_v57  ;;  %v499_v0 = vsub.f32 %v7512_v34, %v12023_v52  ;;  %vm12020_vm14 = vcmp.eq.s32.totalorder %v7665_v54, %v7372_v4  ;;  %v12022_v17 = vand.u32 4294901760, %v7525_v38 }
  0x35   :  { %12374 = vst [vmem:[#allocation30_spill] sm:$0xff] %v7677_v59  ;;  %5729 = vmatpush3.msra.mxu1 %v381_v55  ;;  %v5133_v26 = vsel %vm12020_vm14, 1.0, %v12054_v13  ;;  %5705 = vmatprep.subr.msk.mxu0 %vm12020_vm14, %v12056_v12  ;;  %v387_v27 = vsub.f32 %v7514_v35, %v12021_v58  ;;  %vm12028_vm15 = vcmp.eq.s32.totalorder %v7677_v59, %v7372_v4  ;;  %v7701_v33 = vadd.s32 168, %v7364_v1 }
  0x36   :  { %v500_v37 = vand.u32 4294901760, %v499_v0  ;;  %v7703_v47 = vsub.f32 %v5133_v26, %v5133_v26  ;;  %v5117_v49 = vsel %vm12028_vm15, 1.0, %v12054_v13  ;;  %5706 = vmatpush3.msk.msra.mxu0 %vm12028_vm15, %v12056_v12  ;;  %v506_v50 = vsub.f32 %v7525_v38, %v12022_v17 }
  0x37   :  { %12375 = vst [vmem:[#allocation31_spill] sm:$0xff] %v7701_v33  ;;  %v388_v55 = vand.u32 4294901760, %v387_v27  ;;  %v7716_v57 = vsub.f32 %v5117_v49, %v5117_v49  ;;  %vm12024_vm14 = vcmp.eq.s32.totalorder %v7701_v33, %v7372_v4  ;;  %v12027_v0 = vand.u32 4294901760, %v7574_v53 }
  0x38   :  { %5730 = vmatprep.subr.mxu1 %v500_v37  ;;  %v507_v26 = vand.u32 4294901760, %v506_v50  ;;  %v5132_v58 = vsel %vm12024_vm14, 1.0, %v12054_v13  ;;  %5707 = vmatprep.subr.msk.mxu0 %vm12024_vm14, %v12056_v12  ;;  %v7730_v27 = vadd.s32 40, %v7364_v1  ;;  %v12029_v49 = vand.u32 4294901760, %v7584_v56 }
  0x39   :  { %5731 = vmatpush3.msra.mxu1 %v388_v55  ;;  %v7733_v17 = vsub.f32 %v5132_v58, %v5132_v58  ;;  %v394_v37 = vsub.f32 %v7574_v53, %v12027_v0  ;;  %v7739_v50 = vadd.s32 160, %v7364_v1  ;;  %v12033_v52 = vand.u32 4294901760, %v7603_v63 }
  0x3a   :  { %12376 = vst [vmem:[#allocation32_spill] sm:$0xff] %v7730_v27  ;;  %5732 = vmatprep.subr.mxu1 %v507_v26  ;;  %vm12031_vm14 = vcmp.eq.s32.totalorder %v7730_v27, %v7372_v4  ;;  %v513_v22 = vsub.f32 %v7584_v56, %v12029_v49  ;;  %v7748_v58 = vadd.s32 32, %v7364_v1  ;;  %v12038_v55 = vand.u32 4294901760, %v7634_v32 }
  0x3b   :  { %12377 = vst [vmem:[#allocation33_spill] sm:$0xff] %v7739_v50  ;;  %v395_v16 = vand.u32 4294901760, %v394_v37  ;;  %v5116_v0 = vsel %vm12031_vm14, 1.0, %v12054_v13  ;;  %5708 = vmatpush3.msk.msra.mxu0 %vm12031_vm14, %v12056_v12  ;;  %vm12040_vm15 = vcmp.eq.s32.totalorder %v7739_v50, %v7372_v4  ;;  %v401_v26 = vsub.f32 %v7603_v63, %v12033_v52 }
  0x3c   :  { %12378 = vst [vmem:[#allocation34_spill] sm:$0xff] %v7748_v58  ;;  %v7764_v49 = vsub.f32 %v5116_v0, %v5116_v0  ;;  %v514_v37 = vand.u32 4294901760, %v513_v22  ;;  %v5131_v62 = vsel %vm12040_vm15, 1.0, %v12054_v13  ;;  %5709 = vmatprep.subr.msk.mxu0 %vm12040_vm15, %v12056_v12  ;;  %vm12039_vm14 = vcmp.eq.s32.totalorder %v7748_v58, %v7372_v4 }
  0x3d   :  { %5733 = vmatpush3.msra.mxu1 %v395_v16  ;;  %v7776_v48 = vsub.f32 %v5131_v62, %v5131_v62  ;;  %v402_v52 = vand.u32 4294901760, %v401_v26  ;;  %v5115_v22 = vsel %vm12039_vm14, 1.0, %v12054_v13  ;;  %5710 = vmatpush3.msk.msra.mxu0 %vm12039_vm14, %v12056_v12  ;;  %v520_v0 = vsub.f32 %v7634_v32, %v12038_v55 }
  0x3e   :  { %5734 = vmatprep.subr.mxu1 %v514_v37  ;;  %v7789_v44 = vsub.f32 %v5115_v22, %v5115_v22  ;;  %v7792_v62 = vadd.s32 152, %v7364_v1  ;;  %v12041_v16 = vand.u32 4294901760, %v7646_v42  ;;  %v7796_v26 = vadd.s32 24, %v7364_v1 }
  0x3f   :  { %12379 = vst [vmem:[#allocation35_spill] sm:$0xff] %v7776_v48  ;;  %5735 = vmatpush3.msra.mxu1 %v402_v52  ;;  %v521_v41 = vand.u32 4294901760, %v520_v0  ;;  %v12048_v46 = vand.u32 4294901760, %v7659_v51  ;;  %v7800_v36 = vadd.s32 144, %v7364_v1  ;;  %v7811_v52 = vadd.s32 16, %v7364_v1 }
  0x40   :  { %12380 = vst [vmem:[#allocation36_spill] sm:$0xff] %v7789_v44  ;;  %12381 = vst [vmem:[#allocation37_spill] sm:$0xff] %v7792_v62  ;;  %vm118_vm14 = vcmp.eq.s32.totalorder %v7792_v62, %v7372_v4  ;;  %v408_v37 = vsub.f32 %v7646_v42, %v12041_v16  ;;  %vm12049_vm15 = vcmp.eq.s32.totalorder %v7796_v26, %v7372_v4  ;;  %v12078_v50 = vand.u32 4294901760, %v7764_v49 }
  0x41   :  { %12382 = vst [vmem:[#allocation38_spill] sm:$0xff] %v7796_v26  ;;  %12383 = vst [vmem:[#allocation39_spill] sm:$0xff] %v7800_v36  ;;  %5736 = vmatprep.subr.mxu1 %v521_v41  ;;  %v5130_v22 = vsel %vm118_vm14, 1.0, %v12054_v13  ;;  %5711 = vmatprep.subr.msk.mxu0 %vm118_vm14, %v12056_v12  ;;  %v5114_v0 = vsel %vm12049_vm15, 1.0, %v12054_v13  ;;  %v527_v16 = vsub.f32 %v7659_v51, %v12048_v46  ;;  %v7869_v26 = vadd.s32 8, %v7364_v1 }
  0x42   :  { %12384 = vst [vmem:[#allocation40_spill] sm:$0xff] %v7811_v52  ;;  %vm12061_vm13 = vcmp.eq.s32.totalorder %v7800_v36, %v7372_v4  ;;  %v7830_v41 = vsub.f32 %v5130_v22, %v5130_v22  ;;  %v409_v55 = vand.u32 4294901760, %v408_v37  ;;  %5712 = vmatpush3.msk.msra.mxu0 %vm12049_vm15, %v12056_v12  ;;  %v7836_v2 = vsub.f32 %v5114_v0, %v5114_v0 }
  0x43   :  { %v5129_v62 = vsel %vm12061_vm13, 1.0, %v12054_v13  ;;  %v528_v58 = vand.u32 4294901760, %v527_v16  ;;  %5713 = vmatprep.subr.msk.mxu0 %vm12061_vm13, %v12056_v12  ;;  %v12387_v37 = vand.u32 4294901760, %v7679_v60  ;;  %vm12058_vm15 = vcmp.eq.s32.totalorder %v7811_v52, %v7372_v4  ;;  %12389 = vst [vmem:[#allocation44_spill] sm:$0xff] %v7869_v26 }
  0x44   :  { %12385 = vst [vmem:[#allocation41_spill] sm:$0xff] %v7830_v41  ;;  %12386 = vst [vmem:[#allocation42_spill] sm:$0xff] %v7836_v2  ;;  %v7846_v22 = vsub.f32 %v5129_v62, %v5129_v62  ;;  %5737 = vmatpush3.msra.mxu1 %v409_v55  ;;  %v5113_v16 = vsel %vm12058_vm15, 1.0, %v12054_v13  ;;  %5714 = vmatpush3.msk.msra.mxu0 %vm12058_vm15, %v12056_v12  ;;  %v12062_v62 = vand.u32 4294901760, %v7703_v47  ;;  %v7863_v0 = vadd.s32 136, %v7364_v1 }
  0x45   :  { %v415_v46 = vsub.f32 %v7679_v60, %v12387_v37  ;;  %v12063_v37 = vand.u32 4294901760, %v7716_v57  ;;  %5738 = vmatprep.subr.mxu1 %v528_v58  ;;  %v7866_v55 = vsub.f32 %v5113_v16, %v5113_v16  ;;  %v12391_v58 = vmov 0.0  }
  0x46   :  { %12388 = vst [vmem:[#allocation43_spill] sm:$0xff] %v7863_v0  ;;  %v534_v12 = vsub.f32 %v7703_v47, %v12062_v62  ;;  %vm12076_vm15 = vcmp.eq.s32.totalorder %v7863_v0, %v7372_v4  ;;  %v12392_v13 = vmov 1.0   ;;  %vm12077_vm13 = vcmp.eq.s32.totalorder %v7869_v26, %v7372_v4 }
  0x47   :  { %v416_v36 = vand.u32 4294901760, %v415_v46  ;;  %v422_v52 = vsub.f32 %v7716_v57, %v12063_v37  ;;  %v7881_v46 = vadd.s32 128, %v7364_v1  ;;  %v5128_v16 = vsel %vm12076_vm15, 1.0, %v12391_v58  ;;  %5715 = vmatprep.subr.msk.mxu0 %vm12076_vm15, %v12392_v13 }
  0x48   :  { %v12393_v62 = vand.u32 4294901760, %v7733_v17  ;;  %v535_v27 = vand.u32 4294901760, %v534_v12  ;;  %v7897_v33 = vsub.f32 %v5128_v16, %v5128_v16  ;;  %v5112_v0 = vsel %vm12077_vm13, 1.0, %v12391_v58  ;;  %5716 = vmatpush3.msk.msra.mxu0 %vm12077_vm13, %v12392_v13 }
  0x49   :  { %12390 = vst [vmem:[#allocation45_spill] sm:$0xff] %v7881_v46  ;;  %5739 = vmatpush3.msra.mxu1 %v416_v36  ;;  %v37_v36 = vld [vmem:[#allocation2 + $0x8] sm:$0xff]  ;;  %v423_v59 = vand.u32 4294901760, %v422_v52  ;;  %v7907_v54 = vsub.f32 %v5112_v0, %v5112_v0  ;;  %vm115_vm15 = vcmp.eq.s32.totalorder %v7881_v46, %v7372_v4  ;;  %v429_v12 = vsub.f32 %v7764_v49, %v12078_v50  ;;  %v36_v52 = vld [vmem:[#allocation2] sm:$0xff] }
  0x4a   :  { %v541_v37 = vsub.f32 %v7733_v17, %v12393_v62  ;;  %5740 = vmatprep.subr.mxu1 %v535_v27  ;;  %v5127_v16 = vsel %vm115_vm15, 1.0, %v12391_v58  ;;  %5717 = vmatprep.subr.msk.mxu0 %vm115_vm15, %v12392_v13  ;;  %vm99_vm13 = vcmp.eq.s32.totalorder %v7364_v1, %v7372_v4  ;;  %v12091_v46 = vand.u32 4294901760, %v7789_v44 }
  0x4b   :  { %5741 = vmatpush3.msra.mxu1 %v423_v59  ;;  %v7927_v50 = vsub.f32 %v5127_v16, %v5127_v16  ;;  %v430_v27 = vand.u32 4294901760, %v429_v12  ;;  %v5111_v26 = vsel %vm99_vm13, 1.0, %v12391_v58  ;;  %5718 = vmatpush3.msk.msra.mxu0 %vm99_vm13, %v12392_v13  ;;  %v12395_v59 = vand.u32 4294901760, %v7776_v48 }
  0x4c   :  { %v542_v62 = vand.u32 4294901760, %v541_v37  ;;  %v7925_v37 = vand.u32 4294901760, %v37_v36  ;;  %v7938_v0 = vsub.f32 %v5111_v26, %v5111_v26  ;;  %5757 = vmatprep.subr.mxu0 %v7488_v30  ;;  %v7947_v58 = vand.u32 4294901760, %v36_v52 }
  0x4d   :  { %v548_v16 = vsub.f32 %v7776_v48, %v12395_v59  ;;  %v436_v1 = vsub.f32 %v7789_v44, %v12091_v46  ;;  %v12099_v26 = vand.u32 4294901760, %v7836_v2  ;;  %v12108_v48 = vand.u32 4294901760, %v7907_v54 }
  0x4e   :  { %12394 = vst [vmem:[#allocation46_spill] sm:$0xff] %v7925_v37  ;;  %5742 = vmatprep.subr.mxu1 %v542_v62  ;;  %v7944_v12 = vsub.f32 %v37_v36, %v7925_v37  ;;  %12397 = vst [vmem:[#allocation48_spill] sm:$0xff] %v7947_v58  ;;  %v12096_v62 = vand.u32 4294901760, %v7830_v41  ;;  %580 = vmatprep.mubr.f32.mxu1 %v7925_v37  ;;  %v7960_v30 = vsub.f32 %v36_v52, %v7947_v58 }
  0x4f   :  { %5743 = vmatpush3.msra.mxu1 %v430_v27  ;;  %v549_v59 = vand.u32 4294901760, %v548_v16  ;;  %v12115_v27 = vand.u32 4294901760, %v7866_v55  ;;  %v437_v18 = vand.u32 4294901760, %v436_v1  ;;  %v443_v31 = vsub.f32 %v7836_v2, %v12099_v26 }
  0x50   :  { %12396 = vst [vmem:[#allocation47_spill] sm:$0xff] %v7944_v12  ;;  %v7957_v36 = vand.u32 4294901760, %v7944_v12  ;;  %12399 = vst [vmem:[#allocation50_spill] sm:$0xff] %v7960_v30  ;;  %v555_v46 = vsub.f32 %v7830_v41, %v12096_v62  ;;  %v12400_v37 = vand.u32 4294901760, %v7846_v22  ;;  %v7975_v44 = vand.u32 4294901760, %v7960_v30 }
  0x51   :  { %5744 = vmatprep.subr.mxu1 %v549_v59  ;;  %v450_v1 = vsub.f32 %v7866_v55, %v12115_v27  ;;  %v12109_v62 = vand.u32 4294901760, %v7897_v33  ;;  %v444_v26 = vand.u32 4294901760, %v443_v31  ;;  %v12114_v31 = vand.u32 4294901760, %v7927_v50 }
  0x52   :  { %12398 = vst [vmem:[#allocation49_spill] sm:$0xff] %v7957_v36  ;;  %v562_v16 = vsub.f32 %v7846_v22, %v12400_v37  ;;  %v342_v52 = vsub.f32 %v7944_v12, %v7957_v36  ;;  %12401 = vst [vmem:[#allocation51_spill] sm:$0xff] %v7975_v44  ;;  %5745 = vmatpush3.msra.mxu1 %v437_v18  ;;  %v556_v41 = vand.u32 4294901760, %v555_v46  ;;  %v12113_v46 = vand.u32 4294901760, %v7938_v0 }
  0x53   :  { %v348_v59 = vsub.f32 %v7960_v30, %v7975_v44  ;;  %v451_v36 = vand.u32 4294901760, %v450_v1  ;;  %v569_v12 = vsub.f32 %v7897_v33, %v12109_v62  ;;  %v457_v18 = vsub.f32 %v7907_v54, %v12108_v48 }
  0x54   :  { %v563_v2 = vand.u32 4294901760, %v562_v16  ;;  %v7982_v37 = vand.u32 4294901760, %v342_v52  ;;  %5746 = vmatprep.subr.mxu1 %v556_v41  ;;  %v576_v41 = vsub.f32 %v7927_v50, %v12114_v31  ;;  %v464_v48 = vsub.f32 %v7938_v0, %v12113_v46  ;;  %v12424_v46 = vld [vmem:[#allocation33_spill] sm:$0xff]  ;;  %v12426_v31 = vld [vmem:[#allocation34_spill] sm:$0xff] }
  0x55   :  { %v7995_v16 = vand.u32 4294901760, %v348_v59  ;;  %5747 = vmatpush3.msra.mxu1 %v444_v26  ;;  %v570_v52 = vand.u32 4294901760, %v569_v12  ;;  %v458_v1 = vand.u32 4294901760, %v457_v18  ;;  %v12410_v12 = vld [vmem:[#allocation36_spill] sm:$0xff]  ;;  %v12413_v26 = vld [vmem:[#allocation41_spill] sm:$0xff]  ;;  %v12416_v18 = vld [vmem:[#allocation42_spill] sm:$0xff] }
  0x56   :  { %12402 = vst [vmem:[#allocation52_spill] sm:$0xff] %v7982_v37  ;;  %344 = vmatprep.mubr.f32.mxu0 %v7982_v37  ;;  %5748 = vmatprep.subr.mxu1 %v563_v2  ;;  %v577_v59 = vand.u32 4294901760, %v576_v41  ;;  %v465_v62 = vand.u32 4294901760, %v464_v48  ;;  %v12407_v2 = vld [vmem:[#allocation35_spill] sm:$0xff]  ;;  %v12421_v41 = vld [vmem:[#allocation32_spill] sm:$0xff]  ;;  %v12431_v37 = vand.u32 4294901760, %v7527_v39 }
  0x57   :  { %12403 = vst [vmem:[#allocation53_spill] sm:$0xff] %v7995_v16  ;;  %350 = vmatmul.mubr.f32.vlgmr.msra.gmra.mxu0 %v7995_v16  ;;  %5749 = vmatpush3.msra.mxu1 %v451_v36  ;;  %v12408_v48 = vld [vmem:[#allocation27_spill] sm:$0xff]  ;;  %v12414_v36 = vld [vmem:[#allocation29_spill] sm:$0xff] }
  0x58   :  { %5758 = vmatpush3.msra.mxu0 %v7527_v39  ;;  %5750 = vmatprep.subr.mxu1 %v570_v52  ;;  %v12417_v52 = vld [vmem:[#allocation30_spill] sm:$0xff]  ;;  %v12440_v39 = vand.u32 4294901760, %v7439_v20 }
  0x59   :  { %5759 = vmatprep.subr.mxu0 %v7419_v15  ;;  %5751 = vmatpush3.msra.mxu1 %v458_v1  ;;  %v12419_v1 = vld [vmem:[#allocation31_spill] sm:$0xff] }
  0x5a   :  { %5760 = vmatpush3.msra.mxu0 %v7437_v19  ;;  %5752 = vmatprep.subr.mxu1 %v577_v59  ;;  %v12423_v59 = vld [vmem:[#allocation47_spill] sm:$0xff] }
  0x5b   :  { %5761 = vmatprep.subr.mxu0 %v7439_v20  ;;  %5753 = vmatpush3.msra.mxu1 %v465_v62  ;;  %v12411_v62 = vld [vmem:[#allocation28_spill] sm:$0xff]  ;;  %v12448_v20 = vand.u32 4294901760, %v7482_v29 }
  0x5c   :  { %5762 = vmatpush3.msra.mxu0 %v7441_v21  ;;  %582 = vmatmul.mubr.f32.vlgmr.msra.gmra.mxu1 %v7947_v58  ;;  %v12432_v58 = vld [vmem:[#allocation38_spill] sm:$0xff] }
  0x5d   :  { %5763 = vmatprep.subr.mxu0 %v7465_v25  ;;  %5792 = vmatprep.subr.msk.mxu1 %vm130_vm0, %v12392_v13 }
  0x5e   :  { %5764 = vmatpush3.msra.mxu0 %v7482_v29  ;;  %5793 = vmatpush3.msk.msra.mxu1 %vm114_vm1, %v12392_v13  ;;  %v12453_v29 = vand.u32 4294901760, %v7525_v38 }
  0x5f   :  { %5765 = vmatprep.subr.mxu0 %v7512_v34  ;;  %5794 = vmatprep.subr.msk.mxu1 %vm129_vm2, %v12392_v13 }
  0x60   :  { %5766 = vmatpush3.msra.mxu0 %v7514_v35  ;;  %5795 = vmatpush3.msk.msra.mxu1 %vm113_vm3, %v12392_v13 }
  0x61   :  { %5767 = vmatprep.subr.mxu0 %v7525_v38  ;;  %5796 = vmatprep.subr.msk.mxu1 %vm128_vm4, %v12392_v13  ;;  %v12456_v38 = vand.u32 4294901760, %v7603_v63 }
  0x62   :  { %5768 = vmatpush3.msra.mxu0 %v7574_v53  ;;  %5797 = vmatpush3.msk.msra.mxu1 %vm112_vm5, %v12392_v13 }
  0x63   :  { %5769 = vmatprep.subr.mxu0 %v7584_v56  ;;  %5798 = vmatprep.subr.msk.mxu1 %vm127_vm6, %v12392_v13 }
  0x64   :  { %5770 = vmatpush3.msra.mxu0 %v7603_v63  ;;  %5799 = vmatpush3.msk.msra.mxu1 %vm111_vm7, %v12392_v13  ;;  %v12459_v63 = vand.u32 4294901760, %v7659_v51 }
  0x65   :  { %5771 = vmatprep.subr.mxu0 %v7634_v32  ;;  %5800 = vmatprep.subr.msk.mxu1 %vm126_vm8, %v12392_v13 }
  0x66   :  { %5772 = vmatpush3.msra.mxu0 %v7646_v42  ;;  %5801 = vmatpush3.msk.msra.mxu1 %vm110_vm9, %v12392_v13 }
  0x67   :  { %5773 = vmatprep.subr.mxu0 %v7659_v51  ;;  %5802 = vmatprep.subr.msk.mxu1 %vm12110_vm10, %v12392_v13  ;;  %vm12404_vm10 = vcmp.eq.s32.totalorder %v7545_v45, %v7372_v4  ;;  %v12463_v51 = vand.u32 4294901760, %v7716_v57 }
  0x68   :  { %5774 = vmatpush3.msra.mxu0 %v7679_v60  ;;  %5803 = vmatpush3.msk.msra.mxu1 %vm12111_vm11, %v12392_v13  ;;  %vm12405_vm11 = vcmp.eq.s32.totalorder %v7600_v61, %v7372_v4 }
  0x69   :  { %5775 = vmatprep.subr.mxu0 %v7703_v47  ;;  %5804 = vmatprep.subr.msk.mxu1 %vm12112_vm12, %v12392_v13  ;;  %vm12406_vm12 = vcmp.eq.s32.totalorder %v7606_v14, %v7372_v4 }
  0x6a   :  { %5776 = vmatpush3.msra.mxu0 %v7716_v57  ;;  %5805 = vmatpush3.msk.msra.mxu1 %vm12404_vm10, %v12392_v13  ;;  %vm12409_vm10 = vcmp.eq.s32.totalorder %v12408_v48, %v7372_v4  ;;  %v12470_v57 = vand.u32 4294901760, %v12407_v2 }
  0x6b   :  { %5777 = vmatprep.subr.mxu0 %v7733_v17  ;;  %5806 = vmatprep.subr.msk.mxu1 %vm12405_vm11, %v12392_v13  ;;  %vm12412_vm11 = vcmp.eq.s32.totalorder %v12411_v62, %v7372_v4 }
  0x6c   :  { %5778 = vmatpush3.msra.mxu0 %v7764_v49  ;;  %5807 = vmatpush3.msk.msra.mxu1 %vm12406_vm12, %v12392_v13  ;;  %vm12415_vm12 = vcmp.eq.s32.totalorder %v12414_v36, %v7372_v4 }
  0x6d   :  { %5779 = vmatprep.subr.mxu0 %v12407_v2  ;;  %5808 = vmatprep.subr.msk.mxu1 %vm12409_vm10, %v12392_v13  ;;  %vm12418_vm10 = vcmp.eq.s32.totalorder %v12417_v52, %v7372_v4  ;;  %v12476_v2 = vand.u32 4294901760, %v12413_v26 }
  0x6e   :  { %5780 = vmatpush3.msra.mxu0 %v12410_v12  ;;  %5809 = vmatpush3.msk.msra.mxu1 %vm12412_vm11, %v12392_v13  ;;  %vm12420_vm11 = vcmp.eq.s32.totalorder %v12419_v1, %v7372_v4 }
  0x6f   :  { %5781 = vmatprep.subr.mxu0 %v12413_v26  ;;  %5810 = vmatprep.subr.msk.mxu1 %vm12415_vm12, %v12392_v13  ;;  %vm12422_vm12 = vcmp.eq.s32.totalorder %v12421_v41, %v7372_v4  ;;  %v12481_v26 = vand.u32 4294901760, %v7846_v22 }
  0x70   :  { %5782 = vmatpush3.msra.mxu0 %v12416_v18  ;;  %5811 = vmatpush3.msk.msra.mxu1 %vm12418_vm10, %v12392_v13  ;;  %vm12425_vm10 = vcmp.eq.s32.totalorder %v12424_v46, %v7372_v4  ;;  %v12435_v46 = vld [vmem:[#allocation39_spill] sm:$0xff] }
  0x71   :  { %5783 = vmatprep.subr.mxu0 %v7846_v22  ;;  %5812 = vmatprep.subr.msk.mxu1 %vm12420_vm11, %v12392_v13  ;;  %vm12427_vm11 = vcmp.eq.s32.totalorder %v12426_v31, %v7372_v4  ;;  %v12434_v31 = vand.u32 4294901760, %v7419_v15  ;;  %v12443_v15 = vand.u32 4294901760, %v7441_v21  ;;  %v12450_v21 = vld [vmem:[#allocation49_spill] sm:$0xff]  ;;  %v12486_v22 = vand.u32 4294901760, %v7897_v33 }
  0x72   :  { %5784 = vmatpush3.msra.mxu0 %v7866_v55  ;;  %5813 = vmatpush3.msk.msra.mxu1 %vm12422_vm12, %v12392_v13  ;;  %vm12433_vm12 = vcmp.eq.s32.totalorder %v12432_v58, %v7372_v4 }
  0x73   :  { %5785 = vmatprep.subr.mxu0 %v7897_v33  ;;  %717 = vmatprep.mubr.f32.mxu0 %v12423_v59  ;;  %v12429_v59 = vld [vmem:[#allocation21_spill] sm:$0xff]  ;;  %v12491_v33 = vand.u32 4294901760, %v7927_v50 }
  0x74   :  { %5786 = vmatpush3.msra.mxu0 %v7907_v54  ;;  %5814 = vmatprep.subr.msk.mxu1 %vm12425_vm10, %v12392_v13  ;;  %v12430_v16 = vand.u32 4294901760, %v12429_v59  ;;  %vm12436_vm10 = vcmp.eq.s32.totalorder %v12435_v46, %v7372_v4  ;;  %v12449_v59 = vld [vmem:[#allocation11_spill] sm:$0xff] }
  0x75   :  { %5787 = vmatprep.subr.mxu0 %v7927_v50  ;;  %5815 = vmatpush3.msk.msra.mxu1 %vm12427_vm11, %v12392_v13 }
  0x76   :  { %5788 = vmatpush3.msra.mxu0 %v7938_v0  ;;  %5816 = vmatprep.subr.msk.mxu1 %vm118_vm14, %v12392_v13 }
  0x77   :  { %720 = vmatmul.mubr.f32.vlgmr.msra.gmra.mxu0 %v7960_v30  ;;  %5827 = vmatprep.subr.mxu0 %v12430_v16  ;;  %v12437_v30 = vand.u32 4294901760, %v7437_v19  ;;  %v12438_v16 = vld [vmem:[#allocation40_spill] sm:$0xff]  ;;  %v12446_v19 = vand.u32 4294901760, %v7465_v25  ;;  %v12452_v25 = vand.u32 4294901760, %v7514_v35  ;;  %v12455_v35 = vand.u32 4294901760, %v7584_v56 }
  0x78   :  { %5828 = vmatpush3.msra.mxu0 %v12431_v37  ;;  %5817 = vmatpush3.msk.msra.mxu1 %vm12433_vm12, %v12392_v13  ;;  %vm12439_vm11 = vcmp.eq.s32.totalorder %v12438_v16, %v7372_v4  ;;  %v12441_v37 = vld [vmem:[#allocation43_spill] sm:$0xff]  ;;  %v12458_v56 = vand.u32 4294901760, %v7646_v42  ;;  %v12461_v42 = vand.u32 4294901760, %v7703_v47  ;;  %v12467_v47 = vand.u32 4294901760, %v7764_v49 }
  0x79   :  { %5829 = vmatprep.subr.mxu0 %v12434_v31  ;;  %5818 = vmatprep.subr.msk.mxu1 %vm12436_vm10, %v12392_v13  ;;  %vm12442_vm12 = vcmp.eq.s32.totalorder %v12441_v37, %v7372_v4  ;;  %v12444_v31 = vld [vmem:[#allocation44_spill] sm:$0xff]  ;;  %v8281_v49 = vadd.s32 360, %v12449_v59 }
  0x7a   :  { %5830 = vmatpush3.msra.mxu0 %v12437_v30  ;;  %5819 = vmatpush3.msk.msra.mxu1 %vm12439_vm11, %v12392_v13  ;;  %vm12445_vm10 = vcmp.eq.s32.totalorder %v12444_v31, %v7372_v4 }
  0x7b   :  { %5831 = vmatprep.subr.mxu0 %v12440_v39  ;;  %5820 = vmatprep.subr.msk.mxu1 %vm12442_vm12, %v12392_v13  ;;  %v12451_v39 = vand.u32 4294901760, %v7512_v34  ;;  %v12454_v34 = vand.u32 4294901760, %v7574_v53  ;;  %v12457_v53 = vand.u32 4294901760, %v7634_v32  ;;  %v12460_v32 = vand.u32 4294901760, %v7679_v60  ;;  %12473 = vst [vmem:[#allocation41_spill] sm:$0xff] %v8281_v49 }
  0x7c   :  { %5832 = vmatpush3.msra.mxu0 %v12443_v15  ;;  %5821 = vmatpush3.msk.msra.mxu1 %vm12445_vm10, %v12392_v13  ;;  %v8243_v15 = vadd.s32 376, %v12449_v59  ;;  %v12465_v60 = vand.u32 4294901760, %v7733_v17  ;;  %v12472_v17 = vand.u32 4294901760, %v12410_v12  ;;  %v12478_v12 = vand.u32 4294901760, %v12416_v18 }
  0x7d   :  { %5833 = vmatprep.subr.mxu0 %v12446_v19  ;;  %5822 = vmatprep.subr.msk.mxu1 %vm115_vm15, %v12392_v13  ;;  %v8264_v19 = vadd.s32 368, %v12449_v59  ;;  %v12484_v18 = vand.u32 4294901760, %v7866_v55  ;;  %vm144_vm11 = vcmp.eq.s32.totalorder %v8281_v49, %v7372_v4  ;;  %vm12485_vm10 = vcmp.eq.s32.totalorder %v12414_v36, %v7372_v4  ;;  %v12564_v49 = vld [vmem:[#allocation33_spill] sm:$0xff] }
  0x7e   :  { %5834 = vmatpush3.msra.mxu0 %v12448_v20  ;;  %5823 = vmatpush3.msk.msra.mxu1 %vm99_vm13, %v12392_v13  ;;  %12462 = vst [vmem:[#allocation35_spill] sm:$0xff] %v8243_v15  ;;  %v8284_v20 = vadd.s32 352, %v12449_v59 }
  0x7f   :  { %824 = vmatprep.mubr.f32.mxu1 %v12450_v21  ;;  %5835 = vmatprep.subr.mxu0 %v12451_v39  ;;  %12468 = vst [vmem:[#allocation36_spill] sm:$0xff] %v8264_v19  ;;  %v12479_v39 = vmov 0.0  }
  0x80   :  { %828 = vmatmul.mubr.f32.vlgmr.msra.gmra.mxu1 %v7975_v44  ;;  %5836 = vmatpush3.msra.mxu0 %v12452_v25  ;;  %12474 = vst [vmem:[#allocation42_spill] sm:$0xff] %v8284_v20  ;;  %vm143_vm12 = vcmp.eq.s32.totalorder %v8284_v20, %v7372_v4 }
  0x81   :  { %5862 = vmatprep.subr.msk.mxu1 %vm130_vm0, %v12392_v13  ;;  %5837 = vmatprep.subr.mxu0 %v12453_v29  ;;  %vm12464_vm0 = vcmp.eq.s32.totalorder %v7476_v28, %v7372_v4  ;;  %v8311_v29 = vadd.s32 344, %v12449_v59 }
  0x82   :  { %5863 = vmatpush3.msk.msra.mxu1 %vm114_vm1, %v12392_v13  ;;  %5838 = vmatpush3.msra.mxu0 %v12454_v34  ;;  %vm12466_vm1 = vcmp.eq.s32.totalorder %v7530_v40, %v7372_v4 }
  0x83   :  { %5864 = vmatprep.subr.msk.mxu1 %vm129_vm2, %v12392_v13  ;;  %5839 = vmatprep.subr.mxu0 %v12455_v35  ;;  %vm12469_vm2 = vcmp.eq.s32.totalorder %v7541_v43, %v7372_v4  ;;  %12482 = vst [vmem:[#allocation21_spill] sm:$0xff] %v8311_v29  ;;  %v8336_v35 = vadd.s32 336, %v12449_v59 }
  0x84   :  { %5865 = vmatpush3.msk.msra.mxu1 %vm113_vm3, %v12392_v13  ;;  %5840 = vmatpush3.msra.mxu0 %v12456_v38  ;;  %vm146_vm3 = vcmp.eq.s32.totalorder %v8243_v15, %v7372_v4  ;;  %v12489_v38 = vand.u32 4294901760, %v7907_v54  ;;  %v12493_v54 = vand.u32 4294901760, %v7938_v0  ;;  %v8380_v0 = vadd.s32 320, %v12449_v59 }
  0x85   :  { %5866 = vmatprep.subr.msk.mxu1 %vm128_vm4, %v12392_v13  ;;  %5841 = vmatprep.subr.mxu0 %v12457_v53  ;;  %vm12471_vm4 = vcmp.eq.s32.totalorder %v7545_v45, %v7372_v4  ;;  %v5158_v25 = vsel %vm146_vm3, 1.0, %v12479_v39  ;;  %12487 = vst [vmem:[#allocation54_spill] sm:$0xff] %v8336_v35  ;;  %v5156_v53 = vsel %vm144_vm11, 1.0, %v12479_v39 }
  0x86   :  { %5867 = vmatpush3.msk.msra.mxu1 %vm112_vm5, %v12392_v13  ;;  %5842 = vmatpush3.msra.mxu0 %v12458_v56  ;;  %vm12475_vm5 = vcmp.eq.s32.totalorder %v7600_v61, %v7372_v4  ;;  %v8329_v34 = vsub.f32 %v5158_v25, %v5158_v25  ;;  %v5155_v56 = vsel %vm143_vm12, 1.0, %v12479_v39  ;;  %12498 = vst [vmem:[#allocation56_spill] sm:$0xff] %v8380_v0 }
  0x87   :  { %5868 = vmatprep.subr.msk.mxu1 %vm127_vm6, %v12392_v13  ;;  %5843 = vmatprep.subr.mxu0 %v12459_v63  ;;  %vm12477_vm6 = vcmp.eq.s32.totalorder %v7606_v14, %v7372_v4  ;;  %v8369_v63 = vadd.s32 328, %v12449_v59 }
  0x88   :  { %5869 = vmatpush3.msk.msra.mxu1 %vm111_vm7, %v12392_v13  ;;  %5844 = vmatpush3.msra.mxu0 %v12460_v32  ;;  %vm145_vm7 = vcmp.eq.s32.totalorder %v8264_v19, %v7372_v4  ;;  %v12495_v32 = vld [vmem:[#allocation46_spill] sm:$0xff] }
  0x89   :  { %5870 = vmatprep.subr.msk.mxu1 %vm126_vm8, %v12392_v13  ;;  %5845 = vmatprep.subr.mxu0 %v12461_v42  ;;  %vm12480_vm8 = vcmp.eq.s32.totalorder %v12408_v48, %v7372_v4  ;;  %v5157_v55 = vsel %vm145_vm7, 1.0, %v12479_v39  ;;  %12494 = vst [vmem:[#allocation55_spill] sm:$0xff] %v8369_v63  ;;  %v12496_v42 = vld [vmem:[#allocation33_spill] sm:$0xff] }
  0x8a   :  { %5871 = vmatpush3.msk.msra.mxu1 %vm110_vm9, %v12392_v13  ;;  %5846 = vmatpush3.msra.mxu0 %v12463_v51  ;;  %vm12483_vm9 = vcmp.eq.s32.totalorder %v12411_v62, %v7372_v4  ;;  %v8366_v50 = vsub.f32 %v5157_v55, %v5157_v55  ;;  %v12124_v51 = vand.u32 4294901760, %v8329_v34  ;;  %v8431_v55 = vadd.s32 304, %v12449_v59 }
  0x8b   :  { %5872 = vmatprep.subr.msk.mxu1 %vm12464_vm0, %v12392_v13  ;;  %5847 = vmatprep.subr.mxu0 %v12465_v60  ;;  %vm12488_vm0 = vcmp.eq.s32.totalorder %v12417_v52, %v7372_v4  ;;  %v12499_v60 = vld [vmem:[#allocation48_spill] sm:$0xff] }
  0x8c   :  { %5873 = vmatpush3.msk.msra.mxu1 %vm12466_vm1, %v12392_v13  ;;  %5848 = vmatpush3.msra.mxu0 %v12467_v47  ;;  %vm12490_vm1 = vcmp.eq.s32.totalorder %v12419_v1, %v7372_v4  ;;  %v12500_v47 = vld [vmem:[#allocation34_spill] sm:$0xff]  ;;  %12505 = vst [vmem:[#allocation58_spill] sm:$0xff] %v8431_v55 }
  0x8d   :  { %5874 = vmatprep.subr.msk.mxu1 %vm12469_vm2, %v12392_v13  ;;  %5849 = vmatprep.subr.mxu0 %v12470_v57  ;;  %vm142_vm2 = vcmp.eq.s32.totalorder %v8311_v29, %v7372_v4  ;;  %v8387_v57 = vsub.f32 %v5156_v53, %v5156_v53 }
  0x8e   :  { %5875 = vmatpush3.msk.msra.mxu1 %vm12471_vm4, %v12392_v13  ;;  %5850 = vmatpush3.msra.mxu0 %v12472_v17  ;;  %vm12492_vm4 = vcmp.eq.s32.totalorder %v12421_v41, %v7372_v4  ;;  %v8389_v17 = vsub.f32 %v5155_v56, %v5155_v56  ;;  %v8583_v41 = vadd.s32 256, %v12449_v59 }
  0x8f   :  { %5876 = vmatprep.subr.msk.mxu1 %vm12475_vm5, %v12392_v13  ;;  %5851 = vmatprep.subr.mxu0 %v12476_v2  ;;  %vm12497_vm5 = vcmp.eq.s32.totalorder %v12496_v42, %v7372_v4  ;;  %v5154_v2 = vsel %vm142_vm2, 1.0, %v12479_v39 }
  0x90   :  { %5877 = vmatpush3.msk.msra.mxu1 %vm12477_vm6, %v12392_v13  ;;  %5852 = vmatpush3.msra.mxu0 %v12478_v12  ;;  %vm141_vm6 = vcmp.eq.s32.totalorder %v8336_v35, %v7372_v4  ;;  %v8401_v12 = vadd.s32 312, %v12449_v59  ;;  %v12512_v44 = vand.u32 4294901760, %v8389_v17  ;;  %12520 = vst [vmem:[#allocation65_spill] sm:$0xff] %v8583_v41  ;;  %v12560_v35 = vld [vmem:[#allocation31_spill] sm:$0xff] }
  0x91   :  { %5878 = vmatprep.subr.msk.mxu1 %vm12480_vm8, %v12392_v13  ;;  %5853 = vmatprep.subr.mxu0 %v12481_v26  ;;  %vm12501_vm8 = vcmp.eq.s32.totalorder %v12500_v47, %v7372_v4  ;;  %v5153_v25 = vsel %vm141_vm6, 1.0, %v12479_v39  ;;  %v12125_v26 = vand.u32 4294901760, %v8366_v50 }
  0x92   :  { %5879 = vmatpush3.msk.msra.mxu1 %vm12483_vm9, %v12392_v13  ;;  %5854 = vmatpush3.msra.mxu0 %v12484_v18  ;;  %12502 = vst [vmem:[#allocation57_spill] sm:$0xff] %v8401_v12  ;;  %vm12503_vm9 = vcmp.eq.s32.totalorder %v12432_v58, %v7372_v4  ;;  %v8423_v18 = vsub.f32 %v5154_v2, %v5154_v2 }
  0x93   :  { %5880 = vmatprep.subr.msk.mxu1 %vm12485_vm10, %v12392_v13  ;;  %5855 = vmatprep.subr.mxu0 %v12486_v22  ;;  %vm12504_vm10 = vcmp.eq.s32.totalorder %v12435_v46, %v7372_v4  ;;  %v1200_v22 = vsub.f32 %v8329_v34, %v12124_v51  ;;  %v8448_v53 = vsub.f32 %v5153_v25, %v5153_v25  ;;  %v8472_v25 = vadd.s32 296, %v12449_v59 }
  0x94   :  { %5881 = vmatpush3.msk.msra.mxu1 %vm12488_vm0, %v12392_v13  ;;  %5856 = vmatpush3.msra.mxu0 %v12489_v38  ;;  %vm139_vm0 = vcmp.eq.s32.totalorder %v8380_v0, %v7372_v4  ;;  %v1221_v21 = vsub.f32 %v8389_v17, %v12512_v44 }
  0x95   :  { %5882 = vmatprep.subr.msk.mxu1 %vm12490_vm1, %v12392_v13  ;;  %5857 = vmatprep.subr.mxu0 %v12491_v33  ;;  %vm12506_vm1 = vcmp.eq.s32.totalorder %v12438_v16, %v7372_v4  ;;  %v5151_v2 = vsel %vm139_vm0, 1.0, %v12479_v39  ;;  %12509 = vst [vmem:[#allocation59_spill] sm:$0xff] %v8472_v25  ;;  %v1201_v51 = vand.u32 4294901760, %v1200_v22  ;;  %v12511_v22 = vand.u32 4294901760, %v8387_v57 }
  0x96   :  { %5883 = vmatpush3.msk.msra.mxu1 %vm12492_vm4, %v12392_v13  ;;  %5858 = vmatpush3.msra.mxu0 %v12493_v54  ;;  %vm12507_vm4 = vcmp.eq.s32.totalorder %v12441_v37, %v7372_v4  ;;  %v1207_v54 = vsub.f32 %v8366_v50, %v12125_v26  ;;  %v8483_v26 = vadd.s32 288, %v12449_v59  ;;  %v1222_v16 = vand.u32 4294901760, %v1221_v21 }
  0x97   :  { %994 = vmatprep.mubr.f32.mxu0 %v12495_v32  ;;  %5884 = vmatprep.subr.msk.mxu1 %vm12497_vm5, %v12392_v13  ;;  %vm138_vm5 = vcmp.eq.s32.totalorder %v8401_v12, %v7372_v4  ;;  %v1214_v33 = vsub.f32 %v8387_v57, %v12511_v22  ;;  %v12554_v12 = vld [vmem:[#allocation30_spill] sm:$0xff] }
  0x98   :  { %996 = vmatmul.mubr.f32.vlgmr.msra.gmra.mxu0 %v12499_v60  ;;  %5885 = vmatpush3.msk.msra.mxu1 %vm12501_vm8, %v12392_v13  ;;  %vm12508_vm8 = vcmp.eq.s32.totalorder %v12444_v31, %v7372_v4  ;;  %12510 = vst [vmem:[#allocation60_spill] sm:$0xff] %v8483_v26  ;;  %v5150_v30 = vsel %vm138_vm5, 1.0, %v12479_v39  ;;  %v8507_v31 = vsub.f32 %v5151_v2, %v5151_v2  ;;  %v1208_v44 = vand.u32 4294901760, %v1207_v54 }
  0x99   :  { %6623 = vmatprep.subr.mxu0 %v12479_v39  ;;  %5886 = vmatprep.subr.msk.mxu1 %vm118_vm14, %v12392_v13  ;;  %vm140_vm14 = vcmp.eq.s32.totalorder %v8369_v63, %v7372_v4  ;;  %v8522_v2 = vadd.s32 280, %v12449_v59  ;;  %v1215_v37 = vand.u32 4294901760, %v1214_v33 }
  0x9a   :  { %6624 = vmatpush3.msk.msra.mxu0 %vm146_vm3, %v12392_v13  ;;  %5887 = vmatpush3.msk.msra.mxu1 %vm12503_vm9, %v12392_v13  ;;  %v5152_v56 = vsel %vm140_vm14, 1.0, %v12479_v39  ;;  %vm137_vm9 = vcmp.eq.s32.totalorder %v8431_v55, %v7372_v4 }
  0x9b   :  { %6625 = vmatprep.subr.mxu0 %v12479_v39  ;;  %5888 = vmatprep.subr.msk.mxu1 %vm12504_vm10, %v12392_v13  ;;  %v8493_v38 = vsub.f32 %v5152_v56, %v5152_v56  ;;  %v5149_v22 = vsel %vm137_vm9, 1.0, %v12479_v39  ;;  %12513 = vst [vmem:[#allocation61_spill] sm:$0xff] %v8522_v2  ;;  %v8526_v56 = vsub.f32 %v5150_v30, %v5150_v30  ;;  %v8539_v30 = vadd.s32 272, %v12449_v59 }
  0x9c   :  { %6626 = vmatpush3.msk.msra.mxu0 %vm145_vm7, %v12392_v13  ;;  %5889 = vmatpush3.msk.msra.mxu1 %vm12506_vm1, %v12392_v13  ;;  %vm12147_vm10 = vcmp.eq.s32.totalorder %v8522_v2, %v7372_v4 }
  0x9d   :  { %6627 = vmatprep.subr.mxu0 %v12479_v39  ;;  %5890 = vmatprep.subr.msk.mxu1 %vm12507_vm4, %v12392_v13  ;;  %12515 = vst [vmem:[#allocation62_spill] sm:$0xff] %v8539_v30  ;;  %v12519_v47 = vand.u32 4294901760, %v8493_v38  ;;  %vm12149_vm1 = vcmp.eq.s32.totalorder %v8539_v30, %v7372_v4 }
  0x9e   :  { %6628 = vmatpush3.msk.msra.mxu0 %vm144_vm11, %v12392_v13  ;;  %5891 = vmatpush3.msk.msra.mxu1 %vm12508_vm8, %v12392_v13  ;;  %vm12148_vm8 = vcmp.eq.s32.totalorder %v8583_v41, %v7372_v4 }
  0x9f   :  { %6629 = vmatprep.subr.mxu0 %v12479_v39  ;;  %5892 = vmatprep.subr.msk.mxu1 %vm115_vm15, %v12392_v13  ;;  %vm135_vm15 = vcmp.eq.s32.totalorder %v8483_v26, %v7372_v4  ;;  %v1242_v42 = vsub.f32 %v8493_v38, %v12519_v47  ;;  %v12521_v47 = vand.u32 4294901760, %v8507_v31  ;;  %v12551_v26 = vld [vmem:[#allocation29_spill] sm:$0xff] }
  0xa0   :  { %6630 = vmatpush3.msk.msra.mxu0 %vm143_vm12, %v12392_v13  ;;  %5893 = vmatpush3.msk.msra.mxu1 %vm99_vm13, %v12392_v13  ;;  %vm136_vm13 = vcmp.eq.s32.totalorder %v8472_v25, %v7372_v4 }
  0xa1   :  { %1098 = vmatprep.mubr.f32.mxu1 %v12495_v32  ;;  %6631 = vmatprep.subr.mxu0 %v12479_v39  ;;  %v38_v32 = vld [vmem:[#allocation2 + $0x10] sm:$0xff]  ;;  %v5148_v21 = vsel %vm136_vm13, 1.0, %v12479_v39  ;;  %v1249_v33 = vsub.f32 %v8507_v31, %v12521_v47  ;;  %v5145_v47 = vsel %vm12149_vm1, 1.0, %v12479_v39 }
  0xa2   :  { %1100 = vmatmul.mubr.f32.vlgmr.msra.gmra.mxu1 %v12499_v60  ;;  %6632 = vmatpush3.msk.msra.mxu0 %vm142_vm2, %v12392_v13  ;;  %v12514_v60 = vand.u32 4294901760, %v8423_v18  ;;  %v8566_v46 = vand.u32 4294901760, %v38_v32  ;;  %v8575_v27 = vsub.f32 %v5148_v21, %v5148_v21  ;;  %v5146_v21 = vsel %vm12147_vm10, 1.0, %v12479_v39 }
  0xa3   :  { %6658 = vmatprep.subr.mxu1 %v12479_v39  ;;  %6633 = vmatprep.subr.mxu0 %v12479_v39 }
  0xa4   :  { %v1228_v54 = vsub.f32 %v8423_v18, %v12514_v60  ;;  %6659 = vmatpush3.msra.mxu1 %v1201_v51  ;;  %6634 = vmatpush3.msk.msra.mxu0 %vm141_vm6, %v12392_v13  ;;  %v8543_v60 = vsub.f32 %v5149_v22, %v5149_v22  ;;  %v12516_v51 = vand.u32 4294901760, %v8448_v53  ;;  %v5147_v22 = vsel %vm135_vm15, 1.0, %v12479_v39  ;;  %12518 = vst [vmem:[#allocation64_spill] sm:$0xff] %v8566_v46 }
  0xa5   :  { %6660 = vmatprep.subr.mxu1 %v12479_v39  ;;  %6635 = vmatprep.subr.mxu0 %v12479_v39 }
  0xa6   :  { %v1235_v58 = vsub.f32 %v8448_v53, %v12516_v51  ;;  %6661 = vmatpush3.msra.mxu1 %v1208_v44  ;;  %6636 = vmatpush3.msk.msra.mxu0 %vm140_vm14, %v12392_v13  ;;  %v8564_v51 = vadd.s32 264, %v12449_v59  ;;  %v1229_v44 = vand.u32 4294901760, %v1228_v54  ;;  %v8587_v54 = vsub.f32 %v5147_v22, %v5147_v22 }
  0xa7   :  { %6662 = vmatprep.subr.mxu1 %v12479_v39  ;;  %6637 = vmatprep.subr.mxu0 %v12479_v39  ;;  %v8619_v59 = vsub.f32 %v5146_v21, %v5146_v21  ;;  %v8635_v21 = vsub.f32 %v5145_v47, %v5145_v47  ;;  %v12524_v1 = vand.u32 4294901760, %v8543_v60  ;;  %v12526_v47 = vand.u32 4294901760, %v8575_v27 }
  0xa8   :  { %12517 = vst [vmem:[#allocation63_spill] sm:$0xff] %v8564_v51  ;;  %6663 = vmatpush3.msra.mxu1 %v1215_v37  ;;  %6638 = vmatpush3.msk.msra.mxu0 %vm139_vm0, %v12392_v13  ;;  %v1236_v37 = vand.u32 4294901760, %v1235_v58  ;;  %vm12146_vm4 = vcmp.eq.s32.totalorder %v8564_v51, %v7372_v4  ;;  %v8604_v58 = vsub.f32 %v38_v32, %v8566_v46  ;;  %v1243_v32 = vand.u32 4294901760, %v1242_v42 }
  0xa9   :  { %6664 = vmatprep.subr.mxu1 %v12479_v39  ;;  %6639 = vmatprep.subr.mxu0 %v12479_v39  ;;  %v1250_v42 = vand.u32 4294901760, %v1249_v33  ;;  %v1263_v52 = vsub.f32 %v8543_v60, %v12524_v1 }
  0xaa   :  { %6665 = vmatpush3.msra.mxu1 %v1222_v16  ;;  %6640 = vmatpush3.msk.msra.mxu0 %vm138_vm5, %v12392_v13  ;;  %12522 = vst [vmem:[#allocation66_spill] sm:$0xff] %v8604_v58  ;;  %v12523_v16 = vand.u32 4294901760, %v8526_v56  ;;  %v8641_v36 = vand.u32 4294901760, %v8604_v58 }
  0xab   :  { %6666 = vmatprep.subr.mxu1 %v12479_v39  ;;  %6641 = vmatprep.subr.mxu0 %v12479_v39 }
  0xac   :  { %v1256_v22 = vsub.f32 %v8526_v56, %v12523_v16  ;;  %6667 = vmatpush3.msra.mxu1 %v1229_v44  ;;  %6642 = vmatpush3.msk.msra.mxu0 %vm137_vm9, %v12392_v13  ;;  %v5144_v44 = vsel %vm12146_vm4, 1.0, %v12479_v39  ;;  %12525 = vst [vmem:[#allocation67_spill] sm:$0xff] %v8641_v36  ;;  %v1270_v16 = vsub.f32 %v8575_v27, %v12526_v47 }
  0xad   :  { %6668 = vmatprep.subr.mxu1 %v12479_v39  ;;  %6643 = vmatprep.subr.mxu0 %v12479_v39  ;;  %v8653_v1 = vsub.f32 %v5144_v44, %v5144_v44  ;;  %v1189_v47 = vsub.f32 %v8604_v58, %v8641_v36 }
  0xae   :  { %6669 = vmatpush3.msra.mxu1 %v1236_v37  ;;  %6644 = vmatpush3.msk.msra.mxu0 %vm136_vm13, %v12392_v13  ;;  %v5143_v37 = vsel %vm12148_vm8, 1.0, %v12479_v39  ;;  %v1257_v33 = vand.u32 4294901760, %v1256_v22  ;;  %v1264_v22 = vand.u32 4294901760, %v1263_v52  ;;  %v12528_v52 = vand.u32 4294901760, %v8619_v59 }
  0xaf   :  { %6670 = vmatprep.subr.mxu1 %v12479_v39  ;;  %6645 = vmatprep.subr.mxu0 %v12479_v39  ;;  %v8668_v44 = vsub.f32 %v5143_v37, %v5143_v37 }
  0xb0   :  { %6671 = vmatpush3.msra.mxu1 %v1243_v32  ;;  %6646 = vmatpush3.msk.msra.mxu0 %vm135_vm15, %v12392_v13  ;;  %v12527_v32 = vand.u32 4294901760, %v8587_v54  ;;  %v1284_v37 = vsub.f32 %v8619_v59, %v12528_v52 }
  0xb1   :  { %6672 = vmatprep.subr.mxu1 %v12479_v39  ;;  %6647 = vmatprep.subr.mxu0 %v12479_v39  ;;  %v12154_v52 = vand.u32 4294901760, %v8668_v44 }
  0xb2   :  { %v1277_v48 = vsub.f32 %v8587_v54, %v12527_v32  ;;  %6673 = vmatpush3.msra.mxu1 %v1250_v42  ;;  %6648 = vmatpush3.msk.msra.mxu0 %vm12147_vm10, %v12392_v13  ;;  %v1271_v42 = vand.u32 4294901760, %v1270_v16  ;;  %v1297_v32 = vand.u32 4294901760, %v8653_v1  ;;  %v12530_v16 = vand.u32 4294901760, %v8635_v21 }
  0xb3   :  { %6674 = vmatprep.subr.mxu1 %v12479_v39  ;;  %6649 = vmatprep.subr.mxu0 %v12479_v39 }
  0xb4   :  { %6675 = vmatpush3.msra.mxu1 %v1257_v33  ;;  %6650 = vmatpush3.msk.msra.mxu0 %vm12149_vm1, %v12392_v13  ;;  %v8689_v33 = vand.u32 4294901760, %v1189_v47  ;;  %v1278_v62 = vand.u32 4294901760, %v1277_v48  ;;  %v1291_v14 = vsub.f32 %v8635_v21, %v12530_v16  ;;  %v1298_v48 = vsub.f32 %v8653_v1, %v1297_v32 }
  0xb5   :  { %6676 = vmatprep.subr.mxu1 %v12479_v39  ;;  %6651 = vmatprep.subr.mxu0 %v12479_v39  ;;  %v12532_v16 = vand.u32 4294901760, %v8366_v50 }
  0xb6   :  { %6677 = vmatpush3.msra.mxu1 %v1264_v22  ;;  %6652 = vmatpush3.msk.msra.mxu0 %vm12146_vm4, %v12392_v13  ;;  %12529 = vst [vmem:[#allocation68_spill] sm:$0xff] %v8689_v33  ;;  %v1285_v22 = vand.u32 4294901760, %v1284_v37  ;;  %vm12207_vm4 = vmmov 0   ;;  %v1292_v47 = vand.u32 4294901760, %v1291_v14  ;;  %v1299_v37 = vand.u32 4294901760, %v1298_v48 }
  0xb7   :  { %6678 = vmatprep.subr.mxu1 %v12479_v39  ;;  %6653 = vmatprep.subr.mxu0 %v12479_v39 }
  0xb8   :  { %6679 = vmatpush3.msra.mxu1 %v1271_v42  ;;  %6654 = vmatpush3.msk.msra.mxu0 %vm12148_vm8, %v12392_v13  ;;  %v1305_v42 = vsub.f32 %v8668_v44, %v12154_v52 }
  0xb9   :  { %6655 = vmatprep.mubr.msk.f32.mxu0 %vm12207_vm4, %v12479_v39  ;;  %6680 = vmatprep.subr.mxu1 %v12479_v39 }
  0xba   :  { %6656 = vmatmul.mubr.f32.vlgmr.msra.gmra.mxu0 %v8689_v33  ;;  %6681 = vmatpush3.msra.mxu1 %v1278_v62  ;;  %v1306_v14 = vand.u32 4294901760, %v1305_v42  ;;  %v12531_v62 = vand.u32 4294901760, %v8329_v34  ;;  %v12540_v42 = vand.u32 4294901760, %v8526_v56 }
  0xbb   :  { %6693 = vmatprep.subr.mxu0 %v12479_v39  ;;  %6682 = vmatprep.subr.mxu1 %v12479_v39 }
  0xbc   :  { %6694 = vmatpush3.msra.mxu0 %v8329_v34  ;;  %6683 = vmatpush3.msra.mxu1 %v1285_v22  ;;  %v12533_v34 = vand.u32 4294901760, %v8387_v57  ;;  %v12535_v22 = vand.u32 4294901760, %v8389_v17 }
  0xbd   :  { %6695 = vmatprep.subr.mxu0 %v12479_v39  ;;  %6684 = vmatprep.subr.mxu1 %v12479_v39 }
  0xbe   :  { %6696 = vmatpush3.msra.mxu0 %v8366_v50  ;;  %6685 = vmatpush3.msra.mxu1 %v1292_v47  ;;  %v8838_v50 = vadd.s32 1, %v7372_v4 }
  0xbf   :  { %6697 = vmatprep.subr.mxu0 %v12479_v39  ;;  %6686 = vmatprep.subr.mxu1 %v12479_v39 }
  0xc0   :  { %6698 = vmatpush3.msra.mxu0 %v8387_v57  ;;  %6687 = vmatpush3.msra.mxu1 %v1299_v37  ;;  %v12536_v57 = vand.u32 4294901760, %v8423_v18 }
  0xc1   :  { %6699 = vmatprep.subr.mxu0 %v12479_v39  ;;  %6688 = vmatprep.subr.mxu1 %v12479_v39 }
  0xc2   :  { %6700 = vmatpush3.msra.mxu0 %v8389_v17  ;;  %6689 = vmatpush3.msra.mxu1 %v1306_v14  ;;  %v12537_v17 = vand.u32 4294901760, %v8448_v53 }
  0xc3   :  { %6690 = vmatprep.mubr.msk.f32.mxu1 %vm12207_vm4, %v12479_v39  ;;  %6701 = vmatprep.subr.mxu0 %v12479_v39 }
  0xc4   :  { %6691 = vmatmul.mubr.f32.vlgmr.msra.gmra.mxu1 %v8566_v46  ;;  %6702 = vmatpush3.msra.mxu0 %v8423_v18 }
  0xc5   :  { %6728 = vmatprep.subr.mxu1 %v12479_v39  ;;  %6703 = vmatprep.subr.mxu0 %v12479_v39 }
  0xc6   :  { %6729 = vmatpush3.msk.msra.mxu1 %vm146_vm3, %v12392_v13  ;;  %6704 = vmatpush3.msra.mxu0 %v8448_v53  ;;  %v12538_v53 = vand.u32 4294901760, %v8493_v38 }
  0xc7   :  { %6730 = vmatprep.subr.mxu1 %v12479_v39  ;;  %6705 = vmatprep.subr.mxu0 %v12479_v39 }
  0xc8   :  { %6731 = vmatpush3.msk.msra.mxu1 %vm145_vm7, %v12392_v13  ;;  %6706 = vmatpush3.msra.mxu0 %v8493_v38  ;;  %v12539_v38 = vand.u32 4294901760, %v8507_v31 }
  0xc9   :  { %6732 = vmatprep.subr.mxu1 %v12479_v39  ;;  %6707 = vmatprep.subr.mxu0 %v12479_v39 }
  0xca   :  { %6733 = vmatpush3.msk.msra.mxu1 %vm144_vm11, %v12392_v13  ;;  %6708 = vmatpush3.msra.mxu0 %v8507_v31 }
  0xcb   :  { %6734 = vmatprep.subr.mxu1 %v12479_v39  ;;  %6709 = vmatprep.subr.mxu0 %v12479_v39 }
  0xcc   :  { %6735 = vmatpush3.msk.msra.mxu1 %vm143_vm12, %v12392_v13  ;;  %6710 = vmatpush3.msra.mxu0 %v8526_v56  ;;  %v12541_v56 = vand.u32 4294901760, %v8543_v60 }
  0xcd   :  { %6736 = vmatprep.subr.mxu1 %v12479_v39  ;;  %6711 = vmatprep.subr.mxu0 %v12479_v39 }
  0xce   :  { %6737 = vmatpush3.msk.msra.mxu1 %vm142_vm2, %v12392_v13  ;;  %6712 = vmatpush3.msra.mxu0 %v8543_v60  ;;  %v12542_v60 = vand.u32 4294901760, %v8575_v27 }
  0xcf   :  { %6738 = vmatprep.subr.mxu1 %v12479_v39  ;;  %6713 = vmatprep.subr.mxu0 %v12479_v39 }
  0xd0   :  { %6739 = vmatpush3.msk.msra.mxu1 %vm141_vm6, %v12392_v13  ;;  %6714 = vmatpush3.msra.mxu0 %v8575_v27 }
  0xd1   :  { %6740 = vmatprep.subr.mxu1 %v12479_v39  ;;  %6715 = vmatprep.subr.mxu0 %v12479_v39 }
  0xd2   :  { %6741 = vmatpush3.msk.msra.mxu1 %vm140_vm14, %v12392_v13  ;;  %6716 = vmatpush3.msra.mxu0 %v8587_v54 }
  0xd3   :  { %6742 = vmatprep.subr.mxu1 %v12479_v39  ;;  %6717 = vmatprep.subr.mxu0 %v12479_v39 }
  0xd4   :  { %6743 = vmatpush3.msk.msra.mxu1 %vm139_vm0, %v12392_v13  ;;  %6718 = vmatpush3.msra.mxu0 %v8619_v59 }
  0xd5   :  { %6744 = vmatprep.subr.mxu1 %v12479_v39  ;;  %6719 = vmatprep.subr.mxu0 %v12479_v39 }
  0xd6   :  { %6745 = vmatpush3.msk.msra.mxu1 %vm138_vm5, %v12392_v13  ;;  %6720 = vmatpush3.msra.mxu0 %v8635_v21 }
  0xd7   :  { %6746 = vmatprep.subr.mxu1 %v12479_v39  ;;  %6721 = vmatprep.subr.mxu0 %v12479_v39 }
  0xd8   :  { %6747 = vmatpush3.msk.msra.mxu1 %vm137_vm9, %v12392_v13  ;;  %6722 = vmatpush3.msra.mxu0 %v8653_v1 }
  0xd9   :  { %6748 = vmatprep.subr.mxu1 %v12479_v39  ;;  %6723 = vmatprep.subr.mxu0 %v12479_v39 }
  0xda   :  { %6749 = vmatpush3.msk.msra.mxu1 %vm136_vm13, %v12392_v13  ;;  %6724 = vmatpush3.msra.mxu0 %v8668_v44 }
  0xdb   :  { %6725 = vmatprep.mubr.msk.f32.mxu0 %vm12207_vm4, %v12479_v39  ;;  %6750 = vmatprep.subr.mxu1 %v12479_v39 }
  0xdc   :  { %6726 = vmatmul.mubr.f32.vlgmr.msra.gmra.mxu0 %v8604_v58  ;;  %6751 = vmatpush3.msk.msra.mxu1 %vm135_vm15, %v12392_v13 }
  0xdd   :  { %6763 = vmatprep.subr.mxu0 %v12479_v39  ;;  %6752 = vmatprep.subr.mxu1 %v12479_v39 }
  0xde   :  { %6764 = vmatpush3.msra.mxu0 %v12531_v62  ;;  %6753 = vmatpush3.msk.msra.mxu1 %vm12147_vm10, %v12392_v13  ;;  %vm12534_vm10 = vcmp.eq.s32.totalorder %v8564_v51, %v7372_v4 }
  0xdf   :  { %6765 = vmatprep.subr.mxu0 %v12479_v39  ;;  %6754 = vmatprep.subr.mxu1 %v12479_v39 }
  0xe0   :  { %6766 = vmatpush3.msra.mxu0 %v12532_v16  ;;  %6755 = vmatpush3.msk.msra.mxu1 %vm12149_vm1, %v12392_v13  ;;  %vm12185_vm1 = vcmp.eq.s32.totalorder %v7381_v7, %v8838_v50 }
  0xe1   :  { %6767 = vmatprep.subr.mxu0 %v12479_v39  ;;  %6756 = vmatprep.subr.mxu1 %v12479_v39  ;;  %v5317_v14 = vsel %vm12185_vm1, 1.0, %v12479_v39 }
  0xe2   :  { %6768 = vmatpush3.msra.mxu0 %v12533_v34  ;;  %6757 = vmatpush3.msk.msra.mxu1 %vm12534_vm10, %v12392_v13  ;;  %vm12169_vm10 = vcmp.eq.s32.totalorder %v7369_v3, %v8838_v50 }
  0xe3   :  { %6769 = vmatprep.subr.mxu0 %v12479_v39  ;;  %6758 = vmatprep.subr.mxu1 %v12479_v39  ;;  %v5334_v18 = vsel %vm12169_vm10, 1.0, %v12479_v39 }
  0xe4   :  { %6770 = vmatpush3.msra.mxu0 %v12535_v22  ;;  %6759 = vmatpush3.msk.msra.mxu1 %vm12148_vm8, %v12392_v13  ;;  %vm12176_vm8 = vcmp.eq.s32.totalorder %v7375_v5, %v8838_v50  ;;  %v8894_v47 = vsub.f32 %v5334_v18, %v5334_v18  ;;  %v8935_v22 = vsub.f32 %v5317_v14, %v5317_v14  ;;  %v12543_v18 = vand.u32 4294901760, %v8587_v54 }
  0xe5   :  { %6760 = vmatprep.mubr.msk.f32.mxu1 %vm12207_vm4, %v12479_v39  ;;  %6771 = vmatprep.subr.mxu0 %v12479_v39  ;;  %v5318_v48 = vsel %vm12176_vm8, 1.0, %v12479_v39  ;;  %v12544_v14 = vand.u32 4294901760, %v8619_v59 }
  0xe6   :  { %6761 = vmatmul.mubr.f32.vlgmr.msra.gmra.mxu1 %v8641_v36  ;;  %6772 = vmatpush3.msra.mxu0 %v12536_v57  ;;  %v8906_v37 = vsub.f32 %v5318_v48, %v5318_v48  ;;  %v12153_v16 = vand.u32 4294901760, %v8894_v47 }
  0xe7   :  { %6798 = vmatprep.subr.mxu1 %v12479_v39  ;;  %6773 = vmatprep.subr.mxu0 %v12479_v39 }
  0xe8   :  { %6799 = vmatpush3.msk.msra.mxu1 %vm146_vm3, %v12392_v13  ;;  %6774 = vmatpush3.msra.mxu0 %v12537_v17  ;;  %vm12190_vm3 = vcmp.eq.s32.totalorder %v7378_v6, %v8838_v50  ;;  %v12152_v57 = vand.u32 4294901760, %v8906_v37  ;;  %v8973_v48 = vsub.f32 %v8894_v47, %v12153_v16 }
  0xe9   :  { %6800 = vmatprep.subr.mxu1 %v12479_v39  ;;  %6775 = vmatprep.subr.mxu0 %v12479_v39  ;;  %v5333_v31 = vsel %vm12190_vm3, 1.0, %v12479_v39 }
  0xea   :  { %6801 = vmatpush3.msk.msra.mxu1 %vm145_vm7, %v12392_v13  ;;  %6776 = vmatpush3.msra.mxu0 %v12538_v53  ;;  %vm12150_vm7 = vcmp.eq.s32.totalorder %v7384_v8, %v8838_v50  ;;  %v8933_v34 = vsub.f32 %v5333_v31, %v5333_v31  ;;  %v12157_v31 = vand.u32 4294901760, %v8935_v22 }
  0xeb   :  { %6802 = vmatprep.subr.mxu1 %v12479_v39  ;;  %6777 = vmatprep.subr.mxu0 %v12479_v39  ;;  %v5332_v62 = vsel %vm12150_vm7, 1.0, %v12479_v39  ;;  %vm1775_vm7 = vcmp.eq.s32.totalorder %v7456_v23, %v8838_v50  ;;  %v12568_v23 = vld [vmem:[#allocation37_spill] sm:$0xff] }
  0xec   :  { %6803 = vmatpush3.msk.msra.mxu1 %vm144_vm11, %v12392_v13  ;;  %6778 = vmatpush3.msra.mxu0 %v12539_v38  ;;  %vm12151_vm11 = vcmp.eq.s32.totalorder %v7387_v9, %v8838_v50  ;;  %v8952_v17 = vsub.f32 %v5332_v62, %v5332_v62  ;;  %v5330_v38 = vsel %vm1775_vm7, 1.0, %v12479_v39  ;;  %v9000_v62 = vsub.f32 %v8906_v37, %v12152_v57 }
  0xed   :  { %6804 = vmatprep.subr.mxu1 %v12479_v39  ;;  %6779 = vmatprep.subr.mxu0 %v12479_v39  ;;  %v5316_v27 = vsel %vm12151_vm11, 1.0, %v12479_v39  ;;  %vm12216_vm11 = vcmp.eq.s32.totalorder %v7476_v28, %v8838_v50  ;;  %v9025_v57 = vsub.f32 %v5330_v38, %v5330_v38 }
  0xee   :  { %6805 = vmatpush3.msk.msra.mxu1 %vm143_vm12, %v12392_v13  ;;  %6780 = vmatpush3.msra.mxu0 %v12540_v42  ;;  %vm12197_vm12 = vcmp.eq.s32.totalorder %v7390_v10, %v8838_v50  ;;  %v12155_v42 = vand.u32 4294901760, %v8933_v34 }
  0xef   :  { %6806 = vmatprep.subr.mxu1 %v12479_v39  ;;  %6781 = vmatprep.subr.mxu0 %v12479_v39  ;;  %v5331_v53 = vsel %vm12197_vm12, 1.0, %v12479_v39  ;;  %v12555_v0 = vand.u32 4294901760, %v9025_v57 }
  0xf0   :  { %6807 = vmatpush3.msk.msra.mxu1 %vm142_vm2, %v12392_v13  ;;  %6782 = vmatpush3.msra.mxu0 %v12541_v56  ;;  %vm1760_vm2 = vcmp.eq.s32.totalorder %v7399_v11, %v8838_v50  ;;  %v8995_v56 = vsub.f32 %v5316_v27, %v5316_v27  ;;  %v5329_v27 = vsel %vm12216_vm11, 1.0, %v12479_v39 }
  0xf1   :  { %6808 = vmatprep.subr.mxu1 %v12479_v39  ;;  %6783 = vmatprep.subr.mxu0 %v12479_v39  ;;  %v5315_v54 = vsel %vm1760_vm2, 1.0, %v12479_v39  ;;  %v9167_v63 = vsub.f32 %v9025_v57, %v12555_v0 }
  0xf2   :  { %6809 = vmatpush3.msk.msra.mxu1 %vm141_vm6, %v12392_v13  ;;  %6784 = vmatpush3.msra.mxu0 %v12542_v60  ;;  %vm12215_vm6 = vcmp.eq.s32.totalorder %v7459_v24, %v8838_v50  ;;  %v9006_v60 = vsub.f32 %v5331_v53, %v5331_v53  ;;  %v12545_v53 = vand.u32 4294901760, %v8635_v21  ;;  %v9037_v21 = vsub.f32 %v8933_v34, %v12155_v42 }
  0xf3   :  { %6810 = vmatprep.subr.mxu1 %v12479_v39  ;;  %6785 = vmatprep.subr.mxu0 %v12479_v39  ;;  %v5314_v59 = vsel %vm12215_vm6, 1.0, %v12479_v39  ;;  %v12164_v16 = vand.u32 4294901760, %v8995_v56 }
  0xf4   :  { %6811 = vmatpush3.msk.msra.mxu1 %vm140_vm14, %v12392_v13  ;;  %6786 = vmatpush3.msra.mxu0 %v12543_v18  ;;  %vm12158_vm14 = vcmp.eq.s32.totalorder %v7530_v40, %v8838_v50  ;;  %v12156_v18 = vand.u32 4294901760, %v8952_v17  ;;  %v9052_v38 = vsub.f32 %v5314_v59, %v5314_v59  ;;  %v12546_v59 = vand.u32 4294901760, %v8668_v44 }
  0xf5   :  { %6812 = vmatprep.subr.mxu1 %v12479_v39  ;;  %6787 = vmatprep.subr.mxu0 %v12479_v39  ;;  %v5313_v52 = vsel %vm12158_vm14, 1.0, %v12479_v39  ;;  %v9109_v44 = vsub.f32 %v8995_v56, %v12164_v16  ;;  %v12550_v16 = vand.u32 4294901760, %v9006_v60 }
  0xf6   :  { %6813 = vmatpush3.msk.msra.mxu1 %vm139_vm0, %v12392_v13  ;;  %6788 = vmatpush3.msra.mxu0 %v12544_v14  ;;  %v9023_v14 = vsub.f32 %v5315_v54, %v5315_v54  ;;  %vm12159_vm0 = vcmp.eq.s32.totalorder %v7541_v43, %v8838_v50  ;;  %v9044_v54 = vsub.f32 %v8935_v22, %v12157_v31  ;;  %v12547_v31 = vld [vmem:[#allocation26_spill] sm:$0xff]  ;;  %v12563_v20 = vand.u32 4294901760, %v9052_v38 }
  0xf7   :  { %6814 = vmatprep.subr.mxu1 %v12479_v39  ;;  %6789 = vmatprep.subr.mxu0 %v12479_v39  ;;  %v9065_v1 = vsub.f32 %v8952_v17, %v12156_v18  ;;  %v5328_v18 = vsel %vm12159_vm0, 1.0, %v12479_v39  ;;  %vm12232_vm14 = vcmp.eq.s32.totalorder %v12547_v31, %v8838_v50  ;;  %v9127_v33 = vsub.f32 %v9006_v60, %v12550_v16 }
  0xf8   :  { %6815 = vmatpush3.msk.msra.mxu1 %vm138_vm5, %v12392_v13  ;;  %6790 = vmatpush3.msra.mxu0 %v12545_v53  ;;  %v9054_v53 = vsub.f32 %v5329_v27, %v5329_v27  ;;  %vm1757_vm5 = vcmp.eq.s32.totalorder %v7545_v45, %v8838_v50  ;;  %v9076_v27 = vsub.f32 %v5313_v52, %v5313_v52  ;;  %v5311_v58 = vsel %vm12232_vm14, 1.0, %v12479_v39 }
  0xf9   :  { %6816 = vmatprep.subr.mxu1 %v12479_v39  ;;  %6791 = vmatprep.subr.mxu0 %v12479_v39  ;;  %v5312_v42 = vsel %vm1757_vm5, 1.0, %v12479_v39  ;;  %v9118_v36 = vsub.f32 %v5328_v18, %v5328_v18  ;;  %v12553_v25 = vand.u32 4294901760, %v9023_v14 }
  0xfa   :  { %6817 = vmatpush3.msk.msra.mxu1 %vm137_vm9, %v12392_v13  ;;  %6792 = vmatpush3.msra.mxu0 %v1297_v32  ;;  %vm12229_vm9 = vcmp.eq.s32.totalorder %v7600_v61, %v8838_v50  ;;  %v12549_v32 = vld [vmem:[#allocation28_spill] sm:$0xff]  ;;  %v9156_v18 = vsub.f32 %v5312_v42, %v5312_v42  ;;  %v12585_v61 = vand.u32 4294901760, %v9127_v33 }
  0xfb   :  { %6818 = vmatprep.subr.mxu1 %v12479_v39  ;;  %6793 = vmatprep.subr.mxu0 %v12479_v39  ;;  %v5327_v52 = vsel %vm12229_vm9, 1.0, %v12479_v39  ;;  %vm12234_vm0 = vcmp.eq.s32.totalorder %v12549_v32, %v8838_v50  ;;  %v9147_v55 = vsub.f32 %v9023_v14, %v12553_v25 }
  0xfc   :  { %6819 = vmatpush3.msk.msra.mxu1 %vm136_vm13, %v12392_v13  ;;  %6794 = vmatpush3.msra.mxu0 %v12546_v59  ;;  %v12548_v59 = vld [vmem:[#allocation27_spill] sm:$0xff]  ;;  %v5310_v25 = vsel %vm12234_vm0, 1.0, %v12479_v39  ;;  %v12574_v10 = vand.u32 4294901760, %v9156_v18 }
  0xfd   :  { %6795 = vmatprep.mubr.msk.f32.mxu0 %vm12207_vm4, %v12479_v39  ;;  %6820 = vmatprep.subr.mxu1 %v12479_v39  ;;  %vm12233_vm13 = vcmp.eq.s32.totalorder %v12548_v59, %v8838_v50 }
  0xfe   :  { %6796 = vmatmul.mubr.f32.vlgmr.msra.gmra.mxu0 %v8566_v46  ;;  %6821 = vmatpush3.msk.msra.mxu1 %vm135_vm15, %v12392_v13  ;;  %vm12236_vm15 = vcmp.eq.s32.totalorder %v12551_v26, %v8838_v50  ;;  %v5326_v16 = vsel %vm12233_vm13, 1.0, %v12479_v39  ;;  %v12592_v26 = vld [vmem:[#allocation11_spill] sm:$0xff] }
  0xff   :  { %5999 = vmatprep.subr.msk.mxu0 %vm12169_vm10, %v12392_v13  ;;  %6822 = vmatprep.subr.mxu1 %v12479_v39  ;;  %vm12552_vm10 = vcmp.eq.s32.totalorder %v8522_v2, %v7372_v4  ;;  %v9158_v2 = vsub.f32 %v5327_v52, %v5327_v52  ;;  %v9178_v52 = vsub.f32 %v5311_v58, %v5311_v58  ;;  %v5325_v0 = vsel %vm12236_vm15, 1.0, %v12479_v39 }
 0x100   :  { %6000 = vmatpush3.msk.msra.mxu0 %vm12176_vm8, %v12392_v13  ;;  %6823 = vmatpush3.msk.msra.mxu1 %vm12552_vm10, %v12392_v13  ;;  %vm1754_vm8 = vcmp.eq.s32.totalorder %v12554_v12, %v8838_v50  ;;  %vm12556_vm10 = vcmp.eq.s32.totalorder %v8539_v30, %v7372_v4  ;;  %v9191_v29 = vsub.f32 %v5326_v16, %v5326_v16  ;;  %v12561_v16 = vld [vmem:[#allocation32_spill] sm:$0xff] }
 0x101   :  { %6001 = vmatprep.subr.msk.mxu0 %vm12190_vm3, %v12392_v13  ;;  %6824 = vmatprep.subr.mxu1 %v12479_v39  ;;  %v5309_v58 = vsel %vm1754_vm8, 1.0, %v12479_v39  ;;  %v9207_v30 = vsub.f32 %v5310_v25, %v5310_v25  ;;  %vm1769_vm3 = vcmp.eq.s32.totalorder %v12560_v35, %v8838_v50  ;;  %v12566_v25 = vld [vmem:[#allocation34_spill] sm:$0xff] }
 0x102   :  { %6002 = vmatpush3.msk.msra.mxu0 %vm12185_vm1, %v12392_v13  ;;  %6825 = vmatpush3.msk.msra.mxu1 %vm12556_vm10, %v12392_v13  ;;  %vm12557_vm1 = vcmp.eq.s32.totalorder %v7384_v8, %v8838_v50  ;;  %vm12558_vm10 = vcmp.eq.s32.totalorder %v7387_v9, %v8838_v50  ;;  %v9236_v42 = vsub.f32 %v5309_v58, %v5309_v58  ;;  %v5324_v58 = vsel %vm1769_vm3, 1.0, %v12479_v39 }
 0x103   :  { %6003 = vmatprep.subr.msk.mxu0 %vm12557_vm1, %v12392_v13  ;;  %6826 = vmatprep.subr.mxu1 %v12479_v39  ;;  %vm12559_vm1 = vcmp.eq.s32.totalorder %v8564_v51, %v7372_v4  ;;  %v9218_v51 = vsub.f32 %v5325_v0, %v5325_v0  ;;  %v9234_v0 = vsub.f32 %v9052_v38, %v12563_v20 }
 0x104   :  { %6004 = vmatpush3.msk.msra.mxu0 %vm12558_vm10, %v12392_v13  ;;  %6827 = vmatpush3.msk.msra.mxu1 %vm12559_vm1, %v12392_v13  ;;  %vm1753_vm10 = vcmp.eq.s32.totalorder %v12561_v16, %v8838_v50  ;;  %vm12562_vm1 = vcmp.eq.s32.totalorder %v8583_v41, %v7372_v4  ;;  %v12565_v4 = vand.u32 4294901760, %v9054_v53  ;;  %v12571_v41 = vld [vmem:[#allocation38_spill] sm:$0xff]  ;;  %v9301_v28 = vsub.f32 %v5324_v58, %v5324_v58 }
 0x105   :  { %6005 = vmatprep.subr.msk.mxu0 %vm12197_vm12, %v12392_v13  ;;  %6828 = vmatprep.subr.mxu1 %v12479_v39  ;;  %vm1768_vm12 = vcmp.eq.s32.totalorder %v12564_v49, %v8838_v50  ;;  %v5308_v15 = vsel %vm1753_vm10, 1.0, %v12479_v39  ;;  %v9306_v9 = vsub.f32 %v9156_v18, %v12574_v10  ;;  %v12577_v10 = vand.u32 4294901760, %v9158_v2 }
 0x106   :  { %6006 = vmatpush3.msk.msra.mxu0 %vm1760_vm2, %v12392_v13  ;;  %6829 = vmatpush3.msk.msra.mxu1 %vm12562_vm1, %v12392_v13  ;;  %v9250_v20 = vsub.f32 %v9054_v53, %v12565_v4  ;;  %vm1752_vm1 = vcmp.eq.s32.totalorder %v12566_v25, %v8838_v50  ;;  %v12567_v4 = vand.u32 4294901760, %v9076_v27  ;;  %v5323_v11 = vsel %vm1768_vm12, 1.0, %v12479_v39 }
 0x107   :  { %6830 = vmatprep.mubr.msk.f32.mxu1 %vm12207_vm4, %v12479_v39  ;;  %6007 = vmatprep.subr.msk.mxu0 %vm1775_vm7, %v12392_v13  ;;  %vm1767_vm4 = vcmp.eq.s32.totalorder %v12568_v23, %v8838_v50  ;;  %v9319_v58 = vsub.f32 %v5308_v15, %v5308_v15  ;;  %v12651_v23 = vand.u32 4294901760, %v8935_v22 }
 0x108   :  { %6831 = vmatmul.mubr.f32.vlgmr.msra.gmra.mxu1 %v8566_v46  ;;  %6008 = vmatpush3.msk.msra.mxu0 %vm12215_vm6, %v12392_v13  ;;  %v9267_v19 = vsub.f32 %v9076_v27, %v12567_v4  ;;  %v12569_v46 = vand.u32 4294901760, %v8973_v48  ;;  %v12570_v4 = vand.u32 4294901760, %v9118_v36  ;;  %vm1751_vm6 = vcmp.eq.s32.totalorder %v12571_v41, %v8838_v50  ;;  %v12733_v41 = vld [vmem:[#allocation62_spill] sm:$0xff] }
 0x109   :  { %6009 = vmatprep.subr.msk.mxu0 %vm12216_vm11, %v12392_v13  ;;  %v12572_v48 = vand.u32 4294901760, %v9000_v62  ;;  %vm12573_vm11 = vcmp.eq.s32.totalorder %v7530_v40, %v8838_v50  ;;  %v5307_v62 = vsel %vm1752_vm1, 1.0, %v12479_v39  ;;  %v12582_v40 = vld [vmem:[#allocation39_spill] sm:$0xff]  ;;  %v12596_v59 = vand.u32 4294901760, %v9319_v58 }
 0x10a   :  { %6034 = vmatprep.subr.mxu1 %v12569_v46  ;;  %v9285_v24 = vsub.f32 %v9118_v36, %v12570_v4  ;;  %6010 = vmatpush3.msk.msra.mxu0 %vm12573_vm11, %v12392_v13  ;;  %v2037_v4 = vand.u32 4294901760, %v9234_v0  ;;  %vm12576_vm11 = vcmp.eq.s32.totalorder %v7541_v43, %v8838_v50  ;;  %v2156_v0 = vand.u32 4294901760, %v9250_v20 }
 0x10b   :  { %6035 = vmatpush3.msra.mxu1 %v12572_v48  ;;  %v12575_v48 = vand.u32 4294901760, %v9037_v21  ;;  %6011 = vmatprep.subr.msk.mxu0 %vm12576_vm11, %v12392_v13  ;;  %v9324_v46 = vsub.f32 %v9158_v2, %v12577_v10  ;;  %v5322_v21 = vsel %vm1767_vm4, 1.0, %v12479_v39  ;;  %v2044_v15 = vand.u32 4294901760, %v9267_v19 }
 0x10c   :  { %6012 = vmatpush3.msk.msra.mxu0 %vm1757_vm5, %v12392_v13  ;;  %v9337_v20 = vsub.f32 %v5323_v11, %v5323_v11  ;;  %v12579_v10 = vand.u32 4294901760, %v9178_v52  ;;  %v2163_v11 = vand.u32 4294901760, %v9285_v24  ;;  %v9355_v19 = vsub.f32 %v5307_v62, %v5307_v62 }
 0x10d   :  { %6036 = vmatprep.subr.mxu1 %v12575_v48  ;;  %v12578_v48 = vand.u32 4294901760, %v9044_v54  ;;  %v5306_v54 = vsel %vm1751_vm6, 1.0, %v12479_v39  ;;  %6013 = vmatprep.subr.msk.mxu0 %vm12229_vm9, %v12392_v13  ;;  %vm1766_vm11 = vcmp.eq.s32.totalorder %v12582_v40, %v8838_v50  ;;  %v2051_v24 = vand.u32 4294901760, %v9306_v9  ;;  %v12590_v9 = vld [vmem:[#allocation45_spill] sm:$0xff] }
 0x10e   :  { %v9342_v43 = vsub.f32 %v9178_v52, %v12579_v10  ;;  %v12581_v10 = vand.u32 4294901760, %v9191_v29  ;;  %6014 = vmatpush3.msk.msra.mxu0 %vm12232_vm14, %v12392_v13  ;;  %v9371_v62 = vsub.f32 %v5322_v21, %v5322_v21  ;;  %v12586_v21 = vld [vmem:[#allocation43_spill] sm:$0xff]  ;;  %v5321_v33 = vsel %vm1766_vm11, 1.0, %v12479_v39 }
 0x10f   :  { %6037 = vmatpush3.msra.mxu1 %v12578_v48  ;;  %v12580_v48 = vand.u32 4294901760, %v9065_v1  ;;  %v12583_v1 = vand.u32 4294901760, %v9109_v44  ;;  %6015 = vmatprep.subr.msk.mxu0 %vm12233_vm13, %v12392_v13  ;;  %v2170_v44 = vand.u32 4294901760, %v9324_v46  ;;  %vm1765_vm14 = vcmp.eq.s32.totalorder %v12586_v21, %v8838_v50  ;;  %v12608_v21 = vld [vmem:[#allocation53_spill] sm:$0xff] }
 0x110   :  { %v9360_v45 = vsub.f32 %v9191_v29, %v12581_v10  ;;  %v12584_v10 = vld [vmem:[#allocation40_spill] sm:$0xff]  ;;  %6016 = vmatpush3.msk.msra.mxu0 %vm12234_vm0, %v12392_v13  ;;  %vm12252_vm0 = vcmp.eq.s32.totalorder %v12590_v9, %v8838_v50 }
 0x111   :  { %6038 = vmatprep.subr.mxu1 %v12580_v48  ;;  %vm1750_vm9 = vcmp.eq.s32.totalorder %v12584_v10, %v8838_v50  ;;  %v12587_v48 = vand.u32 4294901760, %v9147_v55  ;;  %v12589_v55 = vand.u32 4294901760, %v9167_v63  ;;  %6017 = vmatprep.subr.msk.mxu0 %vm12236_vm15, %v12392_v13  ;;  %v12591_v63 = vand.u32 4294901760, %v9207_v30  ;;  %v12731_v10 = vld [vmem:[#allocation61_spill] sm:$0xff] }
 0x112   :  { %6039 = vmatpush3.msra.mxu1 %v12583_v1  ;;  %v9383_v1 = vsub.f32 %v5306_v54, %v5306_v54  ;;  %v12588_v54 = vld [vmem:[#allocation44_spill] sm:$0xff]  ;;  %6018 = vmatpush3.msk.msra.mxu0 %vm1754_vm8, %v12392_v13  ;;  %vm12251_vm15 = vcmp.eq.s32.totalorder %v12592_v26, %v8838_v50 }
 0x113   :  { %6040 = vmatprep.subr.mxu1 %v12585_v61  ;;  %v2058_v61 = vand.u32 4294901760, %v9342_v43  ;;  %vm12253_vm13 = vcmp.eq.s32.totalorder %v12588_v54, %v8838_v50  ;;  %v2177_v43 = vand.u32 4294901760, %v9360_v45  ;;  %v2064_v45 = vsub.f32 %v9207_v30, %v12591_v63  ;;  %6019 = vmatprep.subr.msk.mxu0 %vm1769_vm3, %v12392_v13 }
 0x114   :  { %6041 = vmatpush3.msra.mxu1 %v12587_v48  ;;  %v5305_v48 = vsel %vm1750_vm9, 1.0, %v12479_v39  ;;  %v12593_v63 = vand.u32 4294901760, %v9218_v51  ;;  %v5304_v46 = vsel %vm12253_vm13, 1.0, %v12479_v39  ;;  %6020 = vmatpush3.msk.msra.mxu0 %vm1753_vm10, %v12392_v13 }
 0x115   :  { %6042 = vmatprep.subr.mxu1 %v12589_v55  ;;  %v5320_v55 = vsel %vm1765_vm14, 1.0, %v12479_v39  ;;  %6021 = vmatprep.subr.msk.mxu0 %vm1768_vm12, %v12392_v13 }
 0x116   :  { %6043 = vmatpush3.msra.mxu1 %v2037_v4  ;;  %v9434_v4 = vsub.f32 %v5321_v33, %v5321_v33  ;;  %v2183_v12 = vsub.f32 %v9218_v51, %v12593_v63  ;;  %v12594_v33 = vand.u32 4294901760, %v9236_v42  ;;  %v5319_v63 = vsel %vm12252_vm0, 1.0, %v12479_v39  ;;  %6022 = vmatpush3.msk.msra.mxu0 %vm1752_vm1, %v12392_v13 }
 0x117   :  { %6044 = vmatprep.subr.mxu1 %v2156_v0  ;;  %v9448_v0 = vsub.f32 %v5305_v48, %v5305_v48  ;;  %v12595_v48 = vand.u32 4294901760, %v9301_v28  ;;  %6023 = vmatprep.subr.msk.mxu0 %vm1767_vm4, %v12392_v13  ;;  %v9486_v16 = vsub.f32 %v5319_v63, %v5319_v63  ;;  %v5719_v25 = vpop.f32.mrf.mxu0 }
 0x118   :  { %6045 = vmatpush3.msra.mxu1 %v2044_v15  ;;  %v2071_v35 = vsub.f32 %v9236_v42, %v12594_v33  ;;  %v9462_v15 = vsub.f32 %v5320_v55, %v5320_v55  ;;  %v5303_v33 = vsel %vm12251_vm15, 1.0, %v12479_v39  ;;  %v9476_v55 = vsub.f32 %v5304_v46, %v5304_v46  ;;  %6024 = vmatpush3.msk.msra.mxu0 %vm1751_vm6, %v12392_v13 }
 0x119   :  { %6046 = vmatprep.subr.mxu1 %v2163_v11  ;;  %v2190_v32 = vsub.f32 %v9301_v28, %v12595_v48  ;;  %v2065_v11 = vand.u32 4294901760, %v2064_v45  ;;  %v2078_v48 = vsub.f32 %v9319_v58, %v12596_v59  ;;  %12597 = vst [vmem:[#allocation69_spill] sm:$0xff] %v9486_v16  ;;  %v12598_v39 = vand.u32 4294901760, %v9337_v20  ;;  %6025 = vmatprep.subr.msk.mxu0 %vm1766_vm11, %v12392_v13 }
 0x11a   :  { %6047 = vmatpush3.msra.mxu1 %v2051_v24  ;;  %v2184_v24 = vand.u32 4294901760, %v2183_v12  ;;  %v2072_v59 = vand.u32 4294901760, %v2071_v35  ;;  %v12599_v12 = vand.u32 4294901760, %v9355_v19  ;;  %6026 = vmatpush3.msk.msra.mxu0 %vm1750_vm9, %v12392_v13  ;;  %v12606_v9 = vand.u32 4294901760, %v9486_v16 }
 0x11b   :  { %6048 = vmatprep.subr.mxu1 %v2170_v44  ;;  %v2197_v46 = vsub.f32 %v9337_v20, %v12598_v39  ;;  %v9496_v44 = vsub.f32 %v5303_v33, %v5303_v33  ;;  %v2191_v39 = vand.u32 4294901760, %v2190_v32  ;;  %v5720_v33 = vpop.f32.mrf.mxu0  ;;  %v12250_v32 = vand.u32 4294901760, %v9476_v55  ;;  %6027 = vmatprep.subr.msk.mxu0 %vm1765_vm14, %v12392_v13 }
 0x11c   :  { %6049 = vmatpush3.msra.mxu1 %v2058_v61  ;;  %v2085_v63 = vsub.f32 %v9355_v19, %v12599_v12  ;;  %v12600_v61 = vand.u32 4294901760, %v9371_v62  ;;  %v12601_v12 = vand.u32 4294901760, %v9383_v1  ;;  %v5721_v40 = vadd.f32 %v5720_v33, %v5719_v25  ;;  %6028 = vmatpush3.msk.msra.mxu0 %vm12253_vm13, %v12392_v13 }
 0x11d   :  { %6050 = vmatprep.subr.mxu1 %v2177_v43  ;;  %v2079_v43 = vand.u32 4294901760, %v2078_v48  ;;  %6029 = vmatprep.subr.msk.mxu0 %vm12252_vm0, %v12392_v13  ;;  %vm12612_vm0 = vcmp.eq.s32.totalorder %v7375_v5, %v8838_v50  ;;  %vm12613_vm13 = vcmp.eq.s32.totalorder %v7378_v6, %v8838_v50 }
 0x11e   :  { %v2204_v45 = vsub.f32 %v9371_v62, %v12600_v61  ;;  %6051 = vmatpush3.msra.mxu1 %v2065_v11  ;;  %v2092_v49 = vsub.f32 %v9383_v1, %v12601_v12  ;;  %v2198_v11 = vand.u32 4294901760, %v2197_v46  ;;  %v12602_v61 = vand.u32 4294901760, %v9434_v4  ;;  %v5754_v46 = vpop.f32.mrf.mxu1  ;;  %6030 = vmatpush3.msk.msra.mxu0 %vm12251_vm15, %v12392_v13  ;;  %v12605_v12 = vld [vmem:[#allocation52_spill] sm:$0xff] }
 0x11f   :  { %6052 = vmatprep.subr.mxu1 %v2184_v24  ;;  %v2086_v25 = vand.u32 4294901760, %v2085_v63  ;;  %v12603_v24 = vand.u32 4294901760, %v9448_v0  ;;  %1993 = vmatprep.mubr.f32.mxu0 %v12605_v12  ;;  %vm12611_vm15 = vcmp.eq.s32.totalorder %v7369_v3, %v8838_v50  ;;  %v12643_v12 = vld [vmem:[#allocation47_spill] sm:$0xff] }
 0x120   :  { %v2211_v35 = vsub.f32 %v9434_v4, %v12602_v61  ;;  %6053 = vmatpush3.msra.mxu1 %v2072_v59  ;;  %v2205_v59 = vand.u32 4294901760, %v2204_v45  ;;  %v12604_v61 = vand.u32 4294901760, %v9462_v15  ;;  %v2093_v63 = vand.u32 4294901760, %v2092_v49  ;;  %6069 = vmatprep.subr.mxu0 %v8894_v47 }
 0x121   :  { %v2099_v33 = vsub.f32 %v9448_v0, %v12603_v24  ;;  %6054 = vmatprep.subr.mxu1 %v2191_v39  ;;  %v2106_v39 = vsub.f32 %v9476_v55, %v12250_v32  ;;  %v5755_v24 = vpop.f32.mrf.mxu1  ;;  %v12607_v49 = vand.u32 4294901760, %v9496_v44  ;;  %1999 = vmatmul.mubr.f32.vlgmr.msra.gmra.mxu0 %v12608_v21  ;;  %v12638_v21 = vld [vmem:[#allocation29_spill] sm:$0xff] }
 0x122   :  { %v2218_v48 = vsub.f32 %v9462_v15, %v12604_v61  ;;  %6055 = vmatpush3.msra.mxu1 %v2079_v43  ;;  %v2212_v45 = vand.u32 4294901760, %v2211_v35  ;;  %v2225_v61 = vsub.f32 %v9486_v16, %v12606_v9  ;;  %v5756_v43 = vadd.f32 %v5755_v24, %v5754_v46  ;;  %6070 = vmatpush3.msra.mxu0 %v8906_v37  ;;  %v12621_v46 = vld [vmem:[#allocation18_spill] sm:$0xff]  ;;  %v12628_v24 = vld [vmem:[#allocation23_spill] sm:$0xff] }
 0x123   :  { %6056 = vmatprep.subr.mxu1 %v2198_v11  ;;  %v2100_v26 = vand.u32 4294901760, %v2099_v33  ;;  %v2113_v54 = vsub.f32 %v9496_v44, %v12607_v49  ;;  %v2107_v35 = vand.u32 4294901760, %v2106_v39  ;;  %6071 = vmatprep.subr.mxu0 %v8933_v34  ;;  %v12620_v33 = vld [vmem:[#allocation17_spill] sm:$0xff]  ;;  %v12626_v39 = vld [vmem:[#allocation22_spill] sm:$0xff] }
 0x124   :  { %6057 = vmatpush3.msra.mxu1 %v2086_v25  ;;  %v2219_v11 = vand.u32 4294901760, %v2218_v48  ;;  %v584_v32 = vadd.f32 %v5756_v43, %v5721_v40  ;;  %v2226_v9 = vand.u32 4294901760, %v2225_v61  ;;  %6072 = vmatpush3.msra.mxu0 %v8935_v22  ;;  %v12609_v40 = vld [vmem:[#allocation46_spill] sm:$0xff]  ;;  %v12610_v48 = vld [vmem:[#allocation48_spill] sm:$0xff]  ;;  %v12631_v43 = vld [vmem:[#allocation25_spill] sm:$0xff] }
 0x125   :  { %6058 = vmatprep.subr.mxu1 %v2205_v59  ;;  %v2114_v25 = vand.u32 4294901760, %v2113_v54  ;;  %6073 = vmatprep.subr.mxu0 %v8952_v17  ;;  %v12618_v54 = vld [vmem:[#allocation16_spill] sm:$0xff]  ;;  %v12622_v59 = vld [vmem:[#allocation19_spill] sm:$0xff]  ;;  %v12658_v22 = vld [vmem:[#allocation45_spill] sm:$0xff] }
 0x126   :  { %6059 = vmatpush3.msra.mxu1 %v2093_v63  ;;  %6074 = vmatpush3.msra.mxu0 %v8995_v56  ;;  %v12624_v63 = vld [vmem:[#allocation20_spill] sm:$0xff] }
 0x127   :  { %6060 = vmatprep.subr.mxu1 %v2212_v45  ;;  %6075 = vmatprep.subr.mxu0 %v9006_v60  ;;  %v12630_v61 = vld [vmem:[#allocation24_spill] sm:$0xff] }
 0x128   :  { %6061 = vmatpush3.msra.mxu1 %v2100_v26  ;;  %6076 = vmatpush3.msra.mxu0 %v9023_v14  ;;  %v12616_v26 = vld [vmem:[#allocation15_spill] sm:$0xff] }
 0x129   :  { %6062 = vmatprep.subr.mxu1 %v2219_v11  ;;  %2229 = vmatprep.mubr.f32.mxu1 %v12609_v40  ;;  %v12645_v40 = vld [vmem:[#allocation50_spill] sm:$0xff] }
 0x12a   :  { %6063 = vmatpush3.msra.mxu1 %v2107_v35  ;;  %6077 = vmatprep.subr.mxu0 %v9025_v57  ;;  %v12634_v35 = vld [vmem:[#allocation27_spill] sm:$0xff] }
 0x12b   :  { %6064 = vmatprep.subr.mxu1 %v2226_v9  ;;  %6078 = vmatpush3.msra.mxu0 %v9052_v38  ;;  %v12636_v9 = vld [vmem:[#allocation28_spill] sm:$0xff] }
 0x12c   :  { %6065 = vmatpush3.msra.mxu1 %v2114_v25  ;;  %6079 = vmatprep.subr.mxu0 %v9054_v53 }
 0x12d   :  { %2231 = vmatmul.mubr.f32.vlgmr.msra.gmra.mxu1 %v12610_v48  ;;  %6104 = vmatprep.subr.msk.mxu1 %vm12611_vm15, %v12392_v13  ;;  %vm12614_vm15 = vcmp.eq.s32.totalorder %v7381_v7, %v8838_v50  ;;  %v12648_v48 = vand.u32 4294901760, %v8906_v37  ;;  %v12652_v37 = vand.u32 4294901760, %v8952_v17  ;;  %v12660_v17 = vand.u32 4294901760, %v9023_v14 }
 0x12e   :  { %6105 = vmatpush3.msk.msra.mxu1 %vm12612_vm0, %v12392_v13  ;;  %6080 = vmatpush3.msra.mxu0 %v9076_v27  ;;  %vm12615_vm0 = vcmp.eq.s32.totalorder %v7384_v8, %v8838_v50  ;;  %v12668_v14 = vand.u32 4294901760, %v9054_v53  ;;  %v12674_v53 = vand.u32 4294901760, %v9156_v18 }
 0x12f   :  { %6106 = vmatprep.subr.msk.mxu1 %vm12613_vm13, %v12392_v13  ;;  %6081 = vmatprep.subr.mxu0 %v9118_v36  ;;  %vm12617_vm13 = vcmp.eq.s32.totalorder %v12616_v26, %v8838_v50 }
 0x130   :  { %6107 = vmatpush3.msk.msra.mxu1 %vm12614_vm15, %v12392_v13  ;;  %6082 = vmatpush3.msra.mxu0 %v9156_v18  ;;  %vm12619_vm15 = vcmp.eq.s32.totalorder %v12618_v54, %v8838_v50  ;;  %v12680_v18 = vand.u32 4294901760, %v9191_v29 }
 0x131   :  { %6108 = vmatprep.subr.msk.mxu1 %vm12615_vm0, %v12392_v13  ;;  %6083 = vmatprep.subr.mxu0 %v9158_v2  ;;  %vm12623_vm0 = vcmp.eq.s32.totalorder %v12622_v59, %v8838_v50 }
 0x132   :  { %6109 = vmatpush3.msk.msra.mxu1 %vm12617_vm13, %v12392_v13  ;;  %6084 = vmatpush3.msra.mxu0 %v9178_v52  ;;  %vm12625_vm13 = vcmp.eq.s32.totalorder %v12624_v63, %v8838_v50 }
 0x133   :  { %6110 = vmatprep.subr.msk.mxu1 %vm12619_vm15, %v12392_v13  ;;  %6085 = vmatprep.subr.mxu0 %v9191_v29  ;;  %vm12627_vm15 = vcmp.eq.s32.totalorder %v12626_v39, %v8838_v50  ;;  %v12684_v29 = vand.u32 4294901760, %v9236_v42 }
 0x134   :  { %6111 = vmatpush3.msk.msra.mxu1 %vm1760_vm2, %v12392_v13  ;;  %6086 = vmatpush3.msra.mxu0 %v9207_v30 }
 0x135   :  { %6112 = vmatprep.subr.msk.mxu1 %vm1775_vm7, %v12392_v13  ;;  %6087 = vmatprep.subr.mxu0 %v9218_v51 }
 0x136   :  { %6113 = vmatpush3.msk.msra.mxu1 %vm12623_vm0, %v12392_v13  ;;  %6088 = vmatpush3.msra.mxu0 %v9236_v42  ;;  %vm12629_vm0 = vcmp.eq.s32.totalorder %v12628_v24, %v8838_v50  ;;  %v12690_v42 = vand.u32 4294901760, %v9337_v20 }
 0x137   :  { %6114 = vmatprep.subr.msk.mxu1 %vm12625_vm13, %v12392_v13  ;;  %6089 = vmatprep.subr.mxu0 %v9301_v28  ;;  %v5789_v45 = vpop.f32.mrf.mxu0  ;;  %vm12632_vm13 = vcmp.eq.s32.totalorder %v12631_v43, %v8838_v50 }
 0x138   :  { %6115 = vmatpush3.msk.msra.mxu1 %vm12627_vm15, %v12392_v13  ;;  %6090 = vmatpush3.msra.mxu0 %v9319_v58  ;;  %vm12633_vm15 = vcmp.eq.s32.totalorder %v12547_v31, %v8838_v50 }
 0x139   :  { %6116 = vmatprep.subr.msk.mxu1 %vm12629_vm0, %v12392_v13  ;;  %6091 = vmatprep.subr.mxu0 %v9337_v20  ;;  %v5790_v49 = vpop.f32.mrf.mxu0  ;;  %vm12635_vm0 = vcmp.eq.s32.totalorder %v12634_v35, %v8838_v50  ;;  %v12694_v20 = vand.u32 4294901760, %v9371_v62 }
 0x13a   :  { %6117 = vmatpush3.msk.msra.mxu1 %vm1757_vm5, %v12392_v13  ;;  %6092 = vmatpush3.msra.mxu0 %v9355_v19  ;;  %v5791_v11 = vadd.f32 %v5790_v49, %v5789_v45 }
 0x13b   :  { %6118 = vmatprep.subr.msk.mxu1 %vm12632_vm13, %v12392_v13  ;;  %6093 = vmatprep.subr.mxu0 %v9371_v62  ;;  %vm12637_vm13 = vcmp.eq.s32.totalorder %v12636_v9, %v8838_v50  ;;  %v12700_v62 = vand.u32 4294901760, %v9434_v4 }
 0x13c   :  { %6119 = vmatpush3.msk.msra.mxu1 %vm12633_vm15, %v12392_v13  ;;  %6094 = vmatpush3.msra.mxu0 %v9383_v1  ;;  %v722_v25 = vadd.f32 %v5791_v11, %v584_v32  ;;  %vm12639_vm15 = vcmp.eq.s32.totalorder %v12638_v21, %v8838_v50  ;;  %v12647_v32 = vand.u32 4294901760, %v8894_v47 }
 0x13d   :  { %6120 = vmatprep.subr.msk.mxu1 %vm12635_vm0, %v12392_v13  ;;  %6095 = vmatprep.subr.mxu0 %v9434_v4  ;;  %v12705_v4 = vand.u32 4294901760, %v9462_v15 }
 0x13e   :  { %6121 = vmatpush3.msk.msra.mxu1 %vm12637_vm13, %v12392_v13  ;;  %6096 = vmatpush3.msra.mxu0 %v9448_v0  ;;  %vm12659_vm13 = vcmp.eq.s32.totalorder %v12658_v22, %v8838_v50 }
 0x13f   :  { %6122 = vmatprep.subr.msk.mxu1 %vm12639_vm15, %v12392_v13  ;;  %6097 = vmatprep.subr.mxu0 %v9462_v15 }
 0x140   :  { %6123 = vmatpush3.msk.msra.mxu1 %vm1754_vm8, %v12392_v13  ;;  %6098 = vmatpush3.msra.mxu0 %v9476_v55  ;;  %v5824_v11 = vpop.f32.mrf.mxu1 }
 0x141   :  { %6124 = vmatprep.subr.msk.mxu1 %vm1769_vm3, %v12392_v13  ;;  %6099 = vmatprep.subr.mxu0 %v9486_v16 }
 0x142   :  { %6125 = vmatpush3.msk.msra.mxu1 %vm1753_vm10, %v12392_v13  ;;  %6100 = vmatpush3.msra.mxu0 %v9496_v44  ;;  %v5825_v16 = vpop.f32.mrf.mxu1 }
 0x143   :  { %2366 = vmatprep.mubr.f32.mxu0 %v12643_v12  ;;  %6126 = vmatprep.subr.msk.mxu1 %vm1768_vm12, %v12392_v13  ;;  %v5826_v12 = vadd.f32 %v5825_v16, %v5824_v11  ;;  %v12654_v16 = vand.u32 4294901760, %v8995_v56  ;;  %v12663_v56 = vld [vmem:[#allocation49_spill] sm:$0xff] }
 0x144   :  { %2369 = vmatmul.mubr.f32.vlgmr.msra.gmra.mxu0 %v12645_v40  ;;  %6127 = vmatpush3.msk.msra.mxu1 %vm1752_vm1, %v12392_v13  ;;  %v12649_v40 = vand.u32 4294901760, %v8933_v34 }
 0x145   :  { %6139 = vmatprep.subr.mxu0 %v12647_v32  ;;  %6128 = vmatprep.subr.msk.mxu1 %vm1767_vm4, %v12392_v13  ;;  %v830_v32 = vadd.f32 %v5826_v12, %v722_v25  ;;  %v12655_v12 = vld [vmem:[#allocation44_spill] sm:$0xff]  ;;  %v12666_v25 = vand.u32 4294901760, %v9052_v38  ;;  %v12672_v38 = vand.u32 4294901760, %v9118_v36  ;;  %v12678_v36 = vand.u32 4294901760, %v9178_v52 }
 0x146   :  { %6140 = vmatpush3.msra.mxu0 %v12648_v48  ;;  %6129 = vmatpush3.msk.msra.mxu1 %vm1751_vm6, %v12392_v13  ;;  %vm12656_vm0 = vcmp.eq.s32.totalorder %v12655_v12, %v8838_v50  ;;  %v12664_v48 = vand.u32 4294901760, %v9025_v57  ;;  %v12670_v57 = vand.u32 4294901760, %v9076_v27  ;;  %v12676_v27 = vand.u32 4294901760, %v9158_v2 }
 0x147   :  { %6141 = vmatprep.subr.mxu0 %v12649_v40  ;;  %6130 = vmatprep.subr.msk.mxu1 %vm1766_vm11, %v12392_v13  ;;  %v12661_v40 = vld [vmem:[#allocation11_spill] sm:$0xff]  ;;  %v12681_v2 = vand.u32 4294901760, %v9207_v30  ;;  %v12682_v52 = vand.u32 4294901760, %v9218_v51  ;;  %v12686_v30 = vand.u32 4294901760, %v9301_v28  ;;  %v12688_v51 = vand.u32 4294901760, %v9319_v58 }
 0x148   :  { %6142 = vmatpush3.msra.mxu0 %v12651_v23  ;;  %6131 = vmatpush3.msk.msra.mxu1 %vm1750_vm9, %v12392_v13  ;;  %v12657_v23 = vand.u32 4294901760, %v9006_v60  ;;  %vm12662_vm15 = vcmp.eq.s32.totalorder %v12661_v40, %v8838_v50  ;;  %v12665_v60 = vld [vmem:[#allocation51_spill] sm:$0xff]  ;;  %v12692_v58 = vand.u32 4294901760, %v9355_v19  ;;  %v12697_v19 = vmov 0.0  }
 0x149   :  { %6143 = vmatprep.subr.mxu0 %v12652_v37  ;;  %6132 = vmatprep.subr.msk.mxu1 %vm1765_vm14, %v12392_v13  ;;  %v12691_v28 = vld [vmem:[#allocation35_spill] sm:$0xff] }
 0x14a   :  { %6144 = vmatpush3.msra.mxu0 %v12654_v16  ;;  %6133 = vmatpush3.msk.msra.mxu1 %vm12656_vm0, %v12392_v13  ;;  %vm12667_vm0 = vcmp.eq.s32.totalorder %v7369_v3, %v8838_v50 }
 0x14b   :  { %6145 = vmatprep.subr.mxu0 %v12657_v23  ;;  %6134 = vmatprep.subr.msk.mxu1 %vm12659_vm13, %v12392_v13  ;;  %vm12669_vm13 = vcmp.eq.s32.totalorder %v7375_v5, %v8838_v50  ;;  %v12696_v23 = vand.u32 4294901760, %v9383_v1  ;;  %v12702_v1 = vand.u32 4294901760, %v9448_v0  ;;  %v12706_v0 = vand.u32 4294901760, %v9476_v55 }
 0x14c   :  { %6146 = vmatpush3.msra.mxu0 %v12660_v17  ;;  %6135 = vmatpush3.msk.msra.mxu1 %vm12662_vm15, %v12392_v13  ;;  %vm12671_vm15 = vcmp.eq.s32.totalorder %v7378_v6, %v8838_v50  ;;  %v12712_v55 = vand.u32 4294901760, %v9496_v44 }
 0x14d   :  { %2473 = vmatprep.mubr.f32.mxu1 %v12663_v56  ;;  %6147 = vmatprep.subr.mxu0 %v12664_v48  ;;  %v12698_v48 = vld [vmem:[#allocation36_spill] sm:$0xff] }
 0x14e   :  { %2477 = vmatmul.mubr.f32.vlgmr.msra.gmra.mxu1 %v12665_v60  ;;  %6148 = vmatpush3.msra.mxu0 %v12666_v25 }
 0x14f   :  { %6174 = vmatprep.subr.msk.mxu1 %vm12667_vm0, %v12392_v13  ;;  %6149 = vmatprep.subr.mxu0 %v12668_v14  ;;  %vm12673_vm0 = vcmp.eq.s32.totalorder %v7381_v7, %v8838_v50  ;;  %v12703_v14 = vld [vmem:[#allocation41_spill] sm:$0xff] }
 0x150   :  { %6175 = vmatpush3.msk.msra.mxu1 %vm12669_vm13, %v12392_v13  ;;  %6150 = vmatpush3.msra.mxu0 %v12670_v57  ;;  %vm12675_vm13 = vcmp.eq.s32.totalorder %v7384_v8, %v8838_v50 }
 0x151   :  { %6176 = vmatprep.subr.msk.mxu1 %vm12671_vm15, %v12392_v13  ;;  %6151 = vmatprep.subr.mxu0 %v12672_v38  ;;  %vm12677_vm15 = vcmp.eq.s32.totalorder %v12616_v26, %v8838_v50  ;;  %v12707_v38 = vld [vmem:[#allocation42_spill] sm:$0xff] }
 0x152   :  { %6177 = vmatpush3.msk.msra.mxu1 %vm12673_vm0, %v12392_v13  ;;  %6152 = vmatpush3.msra.mxu0 %v12674_v53  ;;  %vm12679_vm0 = vcmp.eq.s32.totalorder %v12618_v54, %v8838_v50  ;;  %v12709_v53 = vld [vmem:[#allocation69_spill] sm:$0xff] }
 0x153   :  { %6178 = vmatprep.subr.msk.mxu1 %vm12675_vm13, %v12392_v13  ;;  %6153 = vmatprep.subr.mxu0 %v12676_v27  ;;  %vm12683_vm13 = vcmp.eq.s32.totalorder %v12622_v59, %v8838_v50  ;;  %v12710_v27 = vand.u32 4294901760, %v12709_v53 }
 0x154   :  { %6179 = vmatpush3.msk.msra.mxu1 %vm12677_vm15, %v12392_v13  ;;  %6154 = vmatpush3.msra.mxu0 %v12678_v36  ;;  %vm12689_vm15 = vcmp.eq.s32.totalorder %v12628_v24, %v8838_v50 }
 0x155   :  { %6180 = vmatprep.subr.msk.mxu1 %vm12679_vm0, %v12392_v13  ;;  %6155 = vmatprep.subr.mxu0 %v12680_v18  ;;  %vm1795_vm0 = vcmp.eq.s32.totalorder %v12691_v28, %v8838_v50  ;;  %v12789_v28 = vld [vmem:[#allocation34_spill] sm:$0xff] }
 0x156   :  { %6181 = vmatpush3.msk.msra.mxu1 %vm1760_vm2, %v12392_v13  ;;  %6156 = vmatpush3.msra.mxu0 %v12681_v2  ;;  %vm12685_vm2 = vcmp.eq.s32.totalorder %v12624_v63, %v8838_v50  ;;  %v5350_v17 = vsel %vm1795_vm0, 1.0, %v12697_v19 }
 0x157   :  { %6182 = vmatprep.subr.msk.mxu1 %vm1775_vm7, %v12392_v13  ;;  %6157 = vmatprep.subr.mxu0 %v12682_v52  ;;  %vm12687_vm7 = vcmp.eq.s32.totalorder %v12626_v39, %v8838_v50 }
 0x158   :  { %6183 = vmatpush3.msk.msra.mxu1 %vm12683_vm13, %v12392_v13  ;;  %6158 = vmatpush3.msra.mxu0 %v12684_v29  ;;  %v5859_v11 = vpop.f32.mrf.mxu0  ;;  %vm12693_vm13 = vcmp.eq.s32.totalorder %v12631_v43, %v8838_v50  ;;  %v12713_v29 = vld [vmem:[#allocation21_spill] sm:$0xff] }
 0x159   :  { %6184 = vmatprep.subr.msk.mxu1 %vm12685_vm2, %v12392_v13  ;;  %6159 = vmatprep.subr.mxu0 %v12686_v30  ;;  %vm12695_vm2 = vcmp.eq.s32.totalorder %v12547_v31, %v8838_v50  ;;  %v12714_v30 = vld [vmem:[#allocation46_spill] sm:$0xff] }
 0x15a   :  { %6185 = vmatpush3.msk.msra.mxu1 %vm12687_vm7, %v12392_v13  ;;  %6160 = vmatpush3.msra.mxu0 %v12688_v51  ;;  %v5860_v37 = vpop.f32.mrf.mxu0  ;;  %vm12699_vm7 = vcmp.eq.s32.totalorder %v12634_v35, %v8838_v50 }
 0x15b   :  { %6186 = vmatprep.subr.msk.mxu1 %vm12689_vm15, %v12392_v13  ;;  %6161 = vmatprep.subr.mxu0 %v12690_v42  ;;  %v5861_v16 = vadd.f32 %v5860_v37, %v5859_v11  ;;  %vm12701_vm15 = vcmp.eq.s32.totalorder %v12636_v9, %v8838_v50  ;;  %v12716_v42 = vld [vmem:[#allocation54_spill] sm:$0xff] }
 0x15c   :  { %6187 = vmatpush3.msk.msra.mxu1 %vm1757_vm5, %v12392_v13  ;;  %6162 = vmatpush3.msra.mxu0 %v12692_v58  ;;  %vm1794_vm5 = vcmp.eq.s32.totalorder %v12698_v48, %v8838_v50  ;;  %v12717_v58 = vld [vmem:[#allocation48_spill] sm:$0xff] }
 0x15d   :  { %6188 = vmatprep.subr.msk.mxu1 %vm12693_vm13, %v12392_v13  ;;  %6163 = vmatprep.subr.mxu0 %v12694_v20  ;;  %v998_v25 = vadd.f32 %v5861_v16, %v830_v32  ;;  %vm1793_vm13 = vcmp.eq.s32.totalorder %v12703_v14, %v8838_v50  ;;  %v9866_v32 = vsub.f32 %v5350_v17, %v5350_v17  ;;  %v5349_v57 = vsel %vm1794_vm5, 1.0, %v12697_v19 }
 0x15e   :  { %6189 = vmatpush3.msk.msra.mxu1 %vm12695_vm2, %v12392_v13  ;;  %6164 = vmatpush3.msra.mxu0 %v12696_v23  ;;  %vm12704_vm2 = vcmp.eq.s32.totalorder %v12638_v21, %v8838_v50  ;;  %v5348_v36 = vsel %vm1793_vm13, 1.0, %v12697_v19  ;;  %v9896_v2 = vsub.f32 %v5349_v57, %v5349_v57 }
 0x15f   :  { %6190 = vmatprep.subr.msk.mxu1 %vm12699_vm7, %v12392_v13  ;;  %6165 = vmatprep.subr.mxu0 %v12700_v62  ;;  %vm1792_vm7 = vcmp.eq.s32.totalorder %v12707_v38, %v8838_v50  ;;  %v12257_v44 = vand.u32 4294901760, %v9866_v32  ;;  %v9917_v37 = vsub.f32 %v5348_v36, %v5348_v36  ;;  %v12719_v62 = vld [vmem:[#allocation55_spill] sm:$0xff] }
 0x160   :  { %6191 = vmatpush3.msk.msra.mxu1 %vm12701_vm15, %v12392_v13  ;;  %6166 = vmatpush3.msra.mxu0 %v12702_v1  ;;  %v5347_v11 = vsel %vm1792_vm7, 1.0, %v12697_v19  ;;  %v12256_v57 = vand.u32 4294901760, %v9896_v2 }
 0x161   :  { %6192 = vmatprep.subr.msk.mxu1 %vm12704_vm2, %v12392_v13  ;;  %6167 = vmatprep.subr.mxu0 %v12705_v4  ;;  %v9938_v1 = vsub.f32 %v5347_v11, %v5347_v11  ;;  %vm12277_vm2 = vcmp.eq.s32.totalorder %v12731_v10, %v8838_v50 }
 0x162   :  { %6193 = vmatpush3.msk.msra.mxu1 %vm1754_vm8, %v12392_v13  ;;  %6168 = vmatpush3.msra.mxu0 %v12706_v0  ;;  %v5894_v52 = vpop.f32.mrf.mxu1  ;;  %vm1791_vm8 = vcmp.eq.s32.totalorder %v12713_v29, %v8838_v50  ;;  %v2849_v0 = vsub.f32 %v9866_v32, %v12257_v44  ;;  %v2856_v11 = vsub.f32 %v9896_v2, %v12256_v57 }
 0x163   :  { %6194 = vmatprep.subr.msk.mxu1 %vm1769_vm3, %v12392_v13  ;;  %6169 = vmatprep.subr.mxu0 %v12710_v27  ;;  %vm1790_vm3 = vcmp.eq.s32.totalorder %v12716_v42, %v8838_v50  ;;  %v5346_v23 = vsel %vm1791_vm8, 1.0, %v12697_v19  ;;  %v12726_v56 = vand.u32 4294901760, %v9938_v1  ;;  %v12777_v42 = vld [vmem:[#allocation31_spill] sm:$0xff] }
 0x164   :  { %6195 = vmatpush3.msk.msra.mxu1 %vm1753_vm10, %v12392_v13  ;;  %6170 = vmatpush3.msra.mxu0 %v12712_v55  ;;  %v5895_v20 = vpop.f32.mrf.mxu1  ;;  %v5345_v4 = vsel %vm1790_vm3, 1.0, %v12697_v19  ;;  %v9963_v27 = vsub.f32 %v5346_v23, %v5346_v23  ;;  %v12720_v55 = vld [vmem:[#allocation56_spill] sm:$0xff]  ;;  %v12722_v23 = vld [vmem:[#allocation57_spill] sm:$0xff]  ;;  %vm12724_vm10 = vcmp.eq.s32.totalorder %v12661_v40, %v8838_v50  ;;  %v2850_v57 = vand.u32 4294901760, %v2849_v0  ;;  %v12727_v40 = vld [vmem:[#allocation59_spill] sm:$0xff] }
 0x165   :  { %2643 = vmatprep.mubr.f32.mxu0 %v12714_v30  ;;  %6196 = vmatprep.subr.msk.mxu1 %vm1768_vm12, %v12392_v13  ;;  %v5896_v17 = vadd.f32 %v5895_v20, %v5894_v52  ;;  %vm1789_vm12 = vcmp.eq.s32.totalorder %v12719_v62, %v8838_v50  ;;  %v9977_v52 = vsub.f32 %v5345_v4, %v5345_v4  ;;  %v12725_v20 = vld [vmem:[#allocation58_spill] sm:$0xff] }
 0x166   :  { %2645 = vmatmul.mubr.f32.vlgmr.msra.gmra.mxu0 %v12717_v58  ;;  %6197 = vmatpush3.msk.msra.mxu1 %vm1752_vm1, %v12392_v13  ;;  %v5344_v36 = vsel %vm1789_vm12, 1.0, %v12697_v19  ;;  %vm1786_vm1 = vcmp.eq.s32.totalorder %v12725_v20, %v8838_v50 }
 0x167   :  { %6833 = vmatprep.subr.mxu0 %v12697_v19  ;;  %6198 = vmatprep.subr.msk.mxu1 %vm1767_vm4, %v12392_v13  ;;  %v9953_v53 = vadd.f32 %v5896_v17, %v998_v25  ;;  %v12258_v25 = vand.u32 4294901760, %v9917_v37  ;;  %vm1788_vm4 = vcmp.eq.s32.totalorder %v12720_v55, %v8838_v50  ;;  %v9998_v17 = vsub.f32 %v5344_v36, %v5344_v36 }
 0x168   :  { %6834 = vmatpush3.msk.msra.mxu0 %vm1795_vm0, %v12392_v13  ;;  %6199 = vmatpush3.msk.msra.mxu1 %vm1751_vm6, %v12392_v13  ;;  %vm12721_vm6 = vcmp.eq.s32.totalorder %v12655_v12, %v8838_v50  ;;  %v5343_v4 = vsel %vm1788_vm4, 1.0, %v12697_v19  ;;  %v5341_v0 = vsel %vm1786_vm1, 1.0, %v12697_v19  ;;  %v12729_v12 = vld [vmem:[#allocation60_spill] sm:$0xff] }
 0x169   :  { %6835 = vmatprep.subr.mxu0 %v12697_v19  ;;  %6200 = vmatprep.subr.msk.mxu1 %vm1766_vm11, %v12392_v13  ;;  %v2863_v36 = vsub.f32 %v9917_v37, %v12258_v25  ;;  %v2857_v25 = vand.u32 4294901760, %v2856_v11  ;;  %v10030_v44 = vsub.f32 %v5343_v4, %v5343_v4  ;;  %vm1785_vm11 = vcmp.eq.s32.totalorder %v12727_v40, %v8838_v50  ;;  %v12771_v40 = vld [vmem:[#allocation29_spill] sm:$0xff] }
 0x16a   :  { %6836 = vmatpush3.msk.msra.mxu0 %vm1794_vm5, %v12392_v13  ;;  %6201 = vmatpush3.msk.msra.mxu1 %vm1750_vm9, %v12392_v13  ;;  %vm12723_vm9 = vcmp.eq.s32.totalorder %v12658_v22, %v8838_v50  ;;  %vm1784_vm15 = vcmp.eq.s32.totalorder %v12729_v12, %v8838_v50  ;;  %v12775_v12 = vld [vmem:[#allocation30_spill] sm:$0xff] }
 0x16b   :  { %6837 = vmatprep.subr.mxu0 %v12697_v19  ;;  %6202 = vmatprep.subr.msk.mxu1 %vm1765_vm14, %v12392_v13  ;;  %vm1787_vm14 = vcmp.eq.s32.totalorder %v12722_v23, %v8838_v50 }
 0x16c   :  { %6838 = vmatpush3.msk.msra.mxu0 %vm1793_vm13, %v12392_v13  ;;  %6203 = vmatpush3.msk.msra.mxu1 %vm12721_vm6, %v12392_v13  ;;  %v5342_v60 = vsel %vm1787_vm14, 1.0, %v12697_v19  ;;  %vm12279_vm6 = vcmp.eq.s32.totalorder %v12733_v41, %v8838_v50 }
 0x16d   :  { %6839 = vmatprep.subr.mxu0 %v12697_v19  ;;  %6204 = vmatprep.subr.msk.mxu1 %vm12723_vm9, %v12392_v13  ;;  %v10048_v4 = vsub.f32 %v5342_v60, %v5342_v60  ;;  %v5340_v60 = vsel %vm1785_vm11, 1.0, %v12697_v19 }
 0x16e   :  { %6840 = vmatpush3.msk.msra.mxu0 %vm1792_vm7, %v12392_v13  ;;  %6205 = vmatpush3.msk.msra.mxu1 %vm12724_vm10, %v12392_v13  ;;  %v10086_v34 = vsub.f32 %v5340_v60, %v5340_v60  ;;  %v12734_v60 = vand.u32 4294901760, %v10030_v44 }
 0x16f   :  { %2747 = vmatprep.mubr.f32.mxu1 %v12714_v30  ;;  %6841 = vmatprep.subr.mxu0 %v12697_v19  ;;  %v2870_v30 = vsub.f32 %v9938_v1, %v12726_v56  ;;  %v2864_v56 = vand.u32 4294901760, %v2863_v36  ;;  %v10068_v36 = vsub.f32 %v5341_v0, %v5341_v0  ;;  %v12736_v16 = vand.u32 4294901760, %v10048_v4 }
 0x170   :  { %2749 = vmatmul.mubr.f32.vlgmr.msra.gmra.mxu1 %v12717_v58  ;;  %6842 = vmatpush3.msk.msra.mxu0 %vm1791_vm8, %v12392_v13  ;;  %v12728_v58 = vand.u32 4294901760, %v9963_v27  ;;  %v2898_v47 = vsub.f32 %v10030_v44, %v12734_v60  ;;  %v12739_v45 = vand.u32 4294901760, %v10086_v34 }
 0x171   :  { %6868 = vmatprep.subr.mxu1 %v12697_v19  ;;  %6843 = vmatprep.subr.mxu0 %v12697_v19  ;;  %v2905_v49 = vsub.f32 %v10048_v4, %v12736_v16  ;;  %v12738_v51 = vand.u32 4294901760, %v10068_v36 }
 0x172   :  { %6869 = vmatpush3.msra.mxu1 %v2850_v57  ;;  %6844 = vmatpush3.msk.msra.mxu0 %vm1790_vm3, %v12392_v13  ;;  %v2877_v22 = vsub.f32 %v9963_v27, %v12728_v58  ;;  %v12730_v57 = vand.u32 4294901760, %v9977_v52  ;;  %v2871_v58 = vand.u32 4294901760, %v2870_v30  ;;  %v5339_v30 = vsel %vm1784_vm15, 1.0, %v12697_v19 }
 0x173   :  { %6870 = vmatprep.subr.mxu1 %v12697_v19  ;;  %6845 = vmatprep.subr.mxu0 %v12697_v19  ;;  %v2899_v16 = vand.u32 4294901760, %v2898_v47  ;;  %v2912_v18 = vsub.f32 %v10068_v36, %v12738_v51  ;;  %v2906_v51 = vand.u32 4294901760, %v2905_v49  ;;  %v2919_v21 = vsub.f32 %v10086_v34, %v12739_v45 }
 0x174   :  { %v2884_v11 = vsub.f32 %v9977_v52, %v12730_v57  ;;  %6871 = vmatpush3.msra.mxu1 %v2857_v25  ;;  %6846 = vmatpush3.msk.msra.mxu0 %vm1789_vm12, %v12392_v13  ;;  %v12732_v57 = vand.u32 4294901760, %v9998_v17  ;;  %v2878_v0 = vand.u32 4294901760, %v2877_v22  ;;  %v10101_v22 = vsub.f32 %v5339_v30, %v5339_v30 }
 0x175   :  { %6872 = vmatprep.subr.mxu1 %v12697_v19  ;;  %6847 = vmatprep.subr.mxu0 %v12697_v19  ;;  %v5337_v30 = vsel %vm12279_vm6, 1.0, %v12697_v19  ;;  %v2913_v49 = vand.u32 4294901760, %v2912_v18 }
 0x176   :  { %v2891_v25 = vsub.f32 %v9998_v17, %v12732_v57  ;;  %6873 = vmatpush3.msra.mxu1 %v2864_v56  ;;  %6848 = vmatpush3.msk.msra.mxu0 %vm1788_vm4, %v12392_v13  ;;  %v2885_v57 = vand.u32 4294901760, %v2884_v11  ;;  %v5338_v56 = vsel %vm12277_vm2, 1.0, %v12697_v19  ;;  %v12735_v11 = vld [vmem:[#allocation63_spill] sm:$0xff] }
 0x177   :  { %6874 = vmatprep.subr.mxu1 %v12697_v19  ;;  %6849 = vmatprep.subr.mxu0 %v12697_v19  ;;  %vm12273_vm9 = vcmp.eq.s32.totalorder %v12735_v11, %v8838_v50  ;;  %v10119_v60 = vsub.f32 %v5338_v56, %v5338_v56  ;;  %v10137_v56 = vsub.f32 %v5337_v30, %v5337_v30 }
 0x178   :  { %6875 = vmatpush3.msra.mxu1 %v2871_v58  ;;  %6850 = vmatpush3.msk.msra.mxu0 %vm1787_vm14, %v12392_v13  ;;  %v2892_v58 = vand.u32 4294901760, %v2891_v25  ;;  %v12737_v25 = vld [vmem:[#allocation65_spill] sm:$0xff] }
 0x179   :  { %6876 = vmatprep.subr.mxu1 %v12697_v19  ;;  %6851 = vmatprep.subr.mxu0 %v12697_v19  ;;  %vm12278_vm10 = vcmp.eq.s32.totalorder %v12737_v25, %v8838_v50  ;;  %v12275_v9 = vand.u32 4294901760, %v10119_v60 }
 0x17a   :  { %6877 = vmatpush3.msra.mxu1 %v2878_v0  ;;  %6852 = vmatpush3.msk.msra.mxu0 %vm1786_vm1, %v12392_v13  ;;  %v5336_v0 = vsel %vm12273_vm9, 1.0, %v12697_v19  ;;  %v1192_v15 = vpop.f32.mrf.mxu0 }
 0x17b   :  { %6878 = vmatprep.subr.mxu1 %v12697_v19  ;;  %6853 = vmatprep.subr.mxu0 %v12697_v19  ;;  %v1193_v47 = vadd.f32 %v1192_v15, %v9953_v53  ;;  %v10154_v30 = vsub.f32 %v5336_v0, %v5336_v0  ;;  %v12740_v53 = vand.u32 4294901760, %v10101_v22  ;;  %v2933_v18 = vsub.f32 %v10119_v60, %v12275_v9 }
 0x17c   :  { %6879 = vmatpush3.msra.mxu1 %v2885_v57  ;;  %6854 = vmatpush3.msk.msra.mxu0 %vm1785_vm11, %v12392_v13  ;;  %v5335_v57 = vsel %vm12278_vm10, 1.0, %v12697_v19  ;;  %v6657_v35 = vpop.f32.mrf.mxu0 }
 0x17d   :  { %6880 = vmatprep.subr.mxu1 %v12697_v19  ;;  %6855 = vmatprep.subr.mxu0 %v12697_v19  ;;  %v10166_v15 = vsub.f32 %v5335_v57, %v5335_v57  ;;  %v2926_v45 = vsub.f32 %v10101_v22, %v12740_v53  ;;  %v2920_v35 = vand.u32 4294901760, %v2919_v21  ;;  %v12276_v0 = vand.u32 4294901760, %v10154_v30 }
 0x17e   :  { %6881 = vmatpush3.msra.mxu1 %v2892_v58  ;;  %6856 = vmatpush3.msk.msra.mxu0 %vm1784_vm15, %v12392_v13  ;;  %v12274_v58 = vand.u32 4294901760, %v10137_v56 }
 0x17f   :  { %6882 = vmatprep.subr.mxu1 %v12697_v19  ;;  %6857 = vmatprep.subr.mxu0 %v12697_v19  ;;  %v12285_v57 = vand.u32 4294901760, %v10166_v15 }
 0x180   :  { %6883 = vmatpush3.msra.mxu1 %v2899_v16  ;;  %6858 = vmatpush3.msk.msra.mxu0 %vm12277_vm2, %v12392_v13  ;;  %v2927_v16 = vand.u32 4294901760, %v2926_v45  ;;  %v2940_v21 = vsub.f32 %v10137_v56, %v12274_v58  ;;  %v12742_v58 = vld [vmem:[#allocation68_spill] sm:$0xff] }
 0x181   :  { %6884 = vmatprep.subr.mxu1 %v12697_v19  ;;  %6859 = vmatprep.subr.mxu0 %v12697_v19  ;;  %v2954_v9 = vsub.f32 %v10166_v15, %v12285_v57 }
 0x182   :  { %6885 = vmatpush3.msra.mxu1 %v2906_v51  ;;  %6860 = vmatpush3.msk.msra.mxu0 %vm12279_vm6, %v12392_v13  ;;  %v2934_v51 = vand.u32 4294901760, %v2933_v18 }
 0x183   :  { %6886 = vmatprep.subr.mxu1 %v12697_v19  ;;  %6861 = vmatprep.subr.mxu0 %v12697_v19 }
 0x184   :  { %6887 = vmatpush3.msra.mxu1 %v2913_v49  ;;  %6862 = vmatpush3.msk.msra.mxu0 %vm12273_vm9, %v12392_v13  ;;  %v2947_v49 = vsub.f32 %v10154_v30, %v12276_v0  ;;  %v1343_v53 = vpop.f32.mrf.mxu1  ;;  %vm12741_vm9 = vmmov 0  }
 0x185   :  { %6888 = vmatprep.subr.mxu1 %v12697_v19  ;;  %6863 = vmatprep.subr.mxu0 %v12697_v19  ;;  %v1344_v45 = vadd.f32 %v1343_v53, %v1193_v47  ;;  %v2955_v47 = vand.u32 4294901760, %v2954_v9  ;;  %v12743_v9 = vld [vmem:[#allocation64_spill] sm:$0xff]  ;;  %v12744_v53 = vld [vmem:[#allocation66_spill] sm:$0xff] }
 0x186   :  { %6889 = vmatpush3.msra.mxu1 %v2920_v35  ;;  %6864 = vmatpush3.msk.msra.mxu0 %vm12278_vm10, %v12392_v13  ;;  %v2941_v35 = vand.u32 4294901760, %v2940_v21  ;;  %v6692_v18 = vpop.f32.mrf.mxu1  ;;  %v2948_v0 = vand.u32 4294901760, %v2947_v49 }
 0x187   :  { %6865 = vmatprep.mubr.msk.f32.mxu0 %vm12741_vm9, %v12697_v19  ;;  %6890 = vmatprep.subr.mxu1 %v12697_v19  ;;  %v12746_v18 = vand.u32 4294901760, %v9896_v2 }
 0x188   :  { %6866 = vmatmul.mubr.f32.vlgmr.msra.gmra.mxu0 %v12742_v58  ;;  %6891 = vmatpush3.msra.mxu1 %v2927_v16 }
 0x189   :  { %6903 = vmatprep.subr.mxu0 %v12697_v19  ;;  %6892 = vmatprep.subr.mxu1 %v12697_v19 }
 0x18a   :  { %6904 = vmatpush3.msra.mxu0 %v9866_v32  ;;  %6893 = vmatpush3.msra.mxu1 %v2934_v51 }
 0x18b   :  { %6905 = vmatprep.subr.mxu0 %v12697_v19  ;;  %6894 = vmatprep.subr.mxu1 %v12697_v19 }
 0x18c   :  { %6906 = vmatpush3.msra.mxu0 %v9896_v2  ;;  %6895 = vmatpush3.msra.mxu1 %v2941_v35  ;;  %v12745_v35 = vand.u32 4294901760, %v9866_v32  ;;  %v12747_v32 = vand.u32 4294901760, %v9917_v37  ;;  %v12749_v2 = vand.u32 4294901760, %v9938_v1 }
 0x18d   :  { %6907 = vmatprep.subr.mxu0 %v12697_v19  ;;  %6896 = vmatprep.subr.mxu1 %v12697_v19 }
 0x18e   :  { %6908 = vmatpush3.msra.mxu0 %v9917_v37  ;;  %6897 = vmatpush3.msra.mxu1 %v2948_v0 }
 0x18f   :  { %6909 = vmatprep.subr.mxu0 %v12697_v19  ;;  %6898 = vmatprep.subr.mxu1 %v12697_v19 }
 0x190   :  { %6910 = vmatpush3.msra.mxu0 %v9938_v1  ;;  %6899 = vmatpush3.msra.mxu1 %v2955_v47  ;;  %v12750_v47 = vld [vmem:[#allocation13_spill] sm:$0xff]  ;;  %v12753_v1 = vand.u32 4294901760, %v9977_v52 }
 0x191   :  { %6900 = vmatprep.mubr.msk.f32.mxu1 %vm12741_vm9, %v12697_v19  ;;  %6911 = vmatprep.subr.mxu0 %v12697_v19  ;;  %v10345_v37 = vadd.s32 2, %v12750_v47 }
 0x192   :  { %6901 = vmatmul.mubr.f32.vlgmr.msra.gmra.mxu1 %v12743_v9  ;;  %6912 = vmatpush3.msra.mxu0 %v9963_v27 }
 0x193   :  { %6938 = vmatprep.subr.mxu1 %v12697_v19  ;;  %6913 = vmatprep.subr.mxu0 %v12697_v19 }
 0x194   :  { %6939 = vmatpush3.msk.msra.mxu1 %vm1795_vm0, %v12392_v13  ;;  %6914 = vmatpush3.msra.mxu0 %v9977_v52 }
 0x195   :  { %6940 = vmatprep.subr.mxu1 %v12697_v19  ;;  %6915 = vmatprep.subr.mxu0 %v12697_v19 }
 0x196   :  { %6941 = vmatpush3.msk.msra.mxu1 %vm1794_vm5, %v12392_v13  ;;  %6916 = vmatpush3.msra.mxu0 %v9998_v17 }
 0x197   :  { %6942 = vmatprep.subr.mxu1 %v12697_v19  ;;  %6917 = vmatprep.subr.mxu0 %v12697_v19 }
 0x198   :  { %6943 = vmatpush3.msk.msra.mxu1 %vm1793_vm13, %v12392_v13  ;;  %6918 = vmatpush3.msra.mxu0 %v10030_v44 }
 0x199   :  { %6944 = vmatprep.subr.mxu1 %v12697_v19  ;;  %6919 = vmatprep.subr.mxu0 %v12697_v19 }
 0x19a   :  { %6945 = vmatpush3.msk.msra.mxu1 %vm1792_vm7, %v12392_v13  ;;  %6920 = vmatpush3.msra.mxu0 %v10048_v4 }
 0x19b   :  { %6946 = vmatprep.subr.mxu1 %v12697_v19  ;;  %6921 = vmatprep.subr.mxu0 %v12697_v19 }
 0x19c   :  { %6947 = vmatpush3.msk.msra.mxu1 %vm1791_vm8, %v12392_v13  ;;  %6922 = vmatpush3.msra.mxu0 %v10068_v36  ;;  %v1447_v0 = vpop.f32.mrf.mxu0 }
 0x19d   :  { %6948 = vmatprep.subr.mxu1 %v12697_v19  ;;  %6923 = vmatprep.subr.mxu0 %v12697_v19  ;;  %v1448_v16 = vadd.f32 %v1447_v0, %v1344_v45  ;;  %v12751_v0 = vld [vmem:[#allocation67_spill] sm:$0xff] }
 0x19e   :  { %6949 = vmatpush3.msk.msra.mxu1 %vm1790_vm3, %v12392_v13  ;;  %6924 = vmatpush3.msra.mxu0 %v10086_v34  ;;  %v6727_v21 = vpop.f32.mrf.mxu0 }
 0x19f   :  { %6950 = vmatprep.subr.mxu1 %v12697_v19  ;;  %6925 = vmatprep.subr.mxu0 %v12697_v19 }
 0x1a0   :  { %6951 = vmatpush3.msk.msra.mxu1 %vm1789_vm12, %v12392_v13  ;;  %6926 = vmatpush3.msra.mxu0 %v10101_v22 }
 0x1a1   :  { %6952 = vmatprep.subr.mxu1 %v12697_v19  ;;  %6927 = vmatprep.subr.mxu0 %v12697_v19 }
 0x1a2   :  { %6953 = vmatpush3.msk.msra.mxu1 %vm1788_vm4, %v12392_v13  ;;  %6928 = vmatpush3.msra.mxu0 %v10119_v60 }
 0x1a3   :  { %6954 = vmatprep.subr.mxu1 %v12697_v19  ;;  %6929 = vmatprep.subr.mxu0 %v12697_v19 }
 0x1a4   :  { %6955 = vmatpush3.msk.msra.mxu1 %vm1787_vm14, %v12392_v13  ;;  %6930 = vmatpush3.msra.mxu0 %v10137_v56 }
 0x1a5   :  { %6956 = vmatprep.subr.mxu1 %v12697_v19  ;;  %6931 = vmatprep.subr.mxu0 %v12697_v19 }
 0x1a6   :  { %6957 = vmatpush3.msk.msra.mxu1 %vm1786_vm1, %v12392_v13  ;;  %6932 = vmatpush3.msra.mxu0 %v10154_v30  ;;  %v1536_v51 = vpop.f32.mrf.mxu1 }
 0x1a7   :  { %6958 = vmatprep.subr.mxu1 %v12697_v19  ;;  %6933 = vmatprep.subr.mxu0 %v12697_v19  ;;  %v10305_v49 = vadd.f32 %v1536_v51, %v1448_v16  ;;  %v12752_v16 = vand.u32 4294901760, %v9963_v27  ;;  %v12754_v27 = vand.u32 4294901760, %v9998_v17  ;;  %v12755_v17 = vand.u32 4294901760, %v10030_v44 }
 0x1a8   :  { %6959 = vmatpush3.msk.msra.mxu1 %vm1785_vm11, %v12392_v13  ;;  %6934 = vmatpush3.msra.mxu0 %v10166_v15  ;;  %v6762_v45 = vpop.f32.mrf.mxu1  ;;  %v12756_v44 = vand.u32 4294901760, %v10048_v4  ;;  %v12757_v4 = vand.u32 4294901760, %v10068_v36  ;;  %v12758_v36 = vand.u32 4294901760, %v10086_v34 }
 0x1a9   :  { %6935 = vmatprep.mubr.msk.f32.mxu0 %vm12741_vm9, %v12697_v19  ;;  %6960 = vmatprep.subr.mxu1 %v12697_v19 }
 0x1aa   :  { %6936 = vmatmul.mubr.f32.vlgmr.msra.gmra.mxu0 %v12744_v53  ;;  %6961 = vmatpush3.msk.msra.mxu1 %vm1784_vm15, %v12392_v13 }
 0x1ab   :  { %6973 = vmatprep.subr.mxu0 %v12697_v19  ;;  %6962 = vmatprep.subr.mxu1 %v12697_v19 }
 0x1ac   :  { %6974 = vmatpush3.msra.mxu0 %v12745_v35  ;;  %6963 = vmatpush3.msk.msra.mxu1 %vm12277_vm2, %v12392_v13  ;;  %vm12748_vm2 = vcmp.eq.s32.totalorder %v12735_v11, %v8838_v50 }
 0x1ad   :  { %6975 = vmatprep.subr.mxu0 %v12697_v19  ;;  %6964 = vmatprep.subr.mxu1 %v12697_v19 }
 0x1ae   :  { %6976 = vmatpush3.msra.mxu0 %v12746_v18  ;;  %6965 = vmatpush3.msk.msra.mxu1 %vm12279_vm6, %v12392_v13  ;;  %vm12281_vm6 = vcmp.eq.s32.totalorder %v12618_v54, %v10345_v37 }
 0x1af   :  { %6977 = vmatprep.subr.mxu0 %v12697_v19  ;;  %6966 = vmatprep.subr.mxu1 %v12697_v19 }
 0x1b0   :  { %6978 = vmatpush3.msra.mxu0 %v12747_v32  ;;  %6967 = vmatpush3.msk.msra.mxu1 %vm12748_vm2, %v12392_v13  ;;  %vm12293_vm2 = vcmp.eq.s32.totalorder %v7369_v3, %v10345_v37 }
 0x1b1   :  { %6979 = vmatprep.subr.mxu0 %v12697_v19  ;;  %6968 = vmatprep.subr.mxu1 %v12697_v19  ;;  %v5526_v52 = vsel %vm12293_vm2, 1.0, %v12697_v19 }
 0x1b2   :  { %6980 = vmatpush3.msra.mxu0 %v12749_v2  ;;  %6969 = vmatpush3.msk.msra.mxu1 %vm12278_vm10, %v12392_v13  ;;  %vm12299_vm10 = vcmp.eq.s32.totalorder %v7375_v5, %v10345_v37  ;;  %v10401_v51 = vsub.f32 %v5526_v52, %v5526_v52 }
 0x1b3   :  { %6970 = vmatprep.mubr.msk.f32.mxu1 %vm12741_vm9, %v12697_v19  ;;  %6981 = vmatprep.subr.mxu0 %v12697_v19  ;;  %v5510_v21 = vsel %vm12299_vm10, 1.0, %v12697_v19 }
 0x1b4   :  { %6971 = vmatmul.mubr.f32.vlgmr.msra.gmra.mxu1 %v12751_v0  ;;  %6982 = vmatpush3.msra.mxu0 %v12752_v16  ;;  %v10411_v35 = vsub.f32 %v5510_v21, %v5510_v21  ;;  %v12759_v21 = vand.u32 4294901760, %v10101_v22 }
 0x1b5   :  { %7008 = vmatprep.subr.mxu1 %v12697_v19  ;;  %6983 = vmatprep.subr.mxu0 %v12697_v19 }
 0x1b6   :  { %7009 = vmatpush3.msk.msra.mxu1 %vm1795_vm0, %v12392_v13  ;;  %6984 = vmatpush3.msra.mxu0 %v12753_v1  ;;  %vm12298_vm0 = vcmp.eq.s32.totalorder %v7378_v6, %v10345_v37  ;;  %v5523_v1 = vsel %vm12281_vm6, 1.0, %v12697_v19  ;;  %vm3423_vm6 = vcmp.eq.s32.totalorder %v12624_v63, %v10345_v37 }
 0x1b7   :  { %7010 = vmatprep.subr.mxu1 %v12697_v19  ;;  %6985 = vmatprep.subr.mxu0 %v12697_v19  ;;  %v5525_v45 = vsel %vm12298_vm0, 1.0, %v12697_v19 }
 0x1b8   :  { %7011 = vmatpush3.msk.msra.mxu1 %vm1794_vm5, %v12392_v13  ;;  %6986 = vmatpush3.msra.mxu0 %v12754_v27  ;;  %vm3411_vm5 = vcmp.eq.s32.totalorder %v7381_v7, %v10345_v37  ;;  %v10429_v32 = vsub.f32 %v5525_v45, %v5525_v45  ;;  %v12283_v27 = vand.u32 4294901760, %v10401_v51 }
 0x1b9   :  { %7012 = vmatprep.subr.mxu1 %v12697_v19  ;;  %6987 = vmatprep.subr.mxu0 %v12697_v19  ;;  %v5509_v18 = vsel %vm3411_vm5, 1.0, %v12697_v19 }
 0x1ba   :  { %7013 = vmatpush3.msk.msra.mxu1 %vm1793_vm13, %v12392_v13  ;;  %6988 = vmatpush3.msra.mxu0 %v12755_v17  ;;  %vm12280_vm13 = vcmp.eq.s32.totalorder %v7384_v8, %v10345_v37  ;;  %v10457_v52 = vsub.f32 %v5509_v18, %v5509_v18  ;;  %v12284_v17 = vand.u32 4294901760, %v10411_v35  ;;  %v10480_v18 = vsub.f32 %v5523_v1, %v5523_v1 }
 0x1bb   :  { %7014 = vmatprep.subr.mxu1 %v12697_v19  ;;  %6989 = vmatprep.subr.mxu0 %v12697_v19  ;;  %v5524_v2 = vsel %vm12280_vm13, 1.0, %v12697_v19  ;;  %vm12282_vm13 = vcmp.eq.s32.totalorder %v12621_v46, %v10345_v37  ;;  %v5521_v1 = vsel %vm3423_vm6, 1.0, %v12697_v19 }
 0x1bc   :  { %7015 = vmatpush3.msk.msra.mxu1 %vm1792_vm7, %v12392_v13  ;;  %6990 = vmatpush3.msra.mxu0 %v12756_v44  ;;  %vm12305_vm7 = vcmp.eq.s32.totalorder %v12616_v26, %v10345_v37  ;;  %v10468_v44 = vsub.f32 %v5524_v2, %v5524_v2  ;;  %v5522_v22 = vsel %vm12282_vm13, 1.0, %v12697_v19  ;;  %v12760_v2 = vand.u32 4294901760, %v10119_v60 }
 0x1bd   :  { %7016 = vmatprep.subr.mxu1 %v12697_v19  ;;  %6991 = vmatprep.subr.mxu0 %v12697_v19  ;;  %v5508_v16 = vsel %vm12305_vm7, 1.0, %v12697_v19  ;;  %vm12325_vm13 = vcmp.eq.s32.totalorder %v12628_v24, %v10345_v37  ;;  %v12768_v58 = vand.u32 4294901760, %v10480_v18 }
 0x1be   :  { %7017 = vmatpush3.msk.msra.mxu1 %vm1791_vm8, %v12392_v13  ;;  %6992 = vmatpush3.msra.mxu0 %v12757_v4  ;;  %vm12308_vm8 = vcmp.eq.s32.totalorder %v12620_v33, %v10345_v37  ;;  %v1655_v47 = vpop.f32.mrf.mxu0  ;;  %v10478_v4 = vsub.f32 %v5508_v16, %v5508_v16  ;;  %v12286_v16 = vand.u32 4294901760, %v10429_v32  ;;  %v12792_v33 = vld [vmem:[#allocation37_spill] sm:$0xff] }
 0x1bf   :  { %7018 = vmatprep.subr.mxu1 %v12697_v19  ;;  %6993 = vmatprep.subr.mxu0 %v12697_v19  ;;  %v1656_v34 = vadd.f32 %v1655_v47, %v10305_v49  ;;  %v5507_v49 = vsel %vm12308_vm8, 1.0, %v12697_v19  ;;  %v10501_v47 = vsub.f32 %v10401_v51, %v12283_v27  ;;  %v10608_v53 = vsub.f32 %v10480_v18, %v12768_v58 }
 0x1c0   :  { %7019 = vmatpush3.msk.msra.mxu1 %vm1790_vm3, %v12392_v13  ;;  %6994 = vmatpush3.msra.mxu0 %v12758_v36  ;;  %vm12315_vm3 = vcmp.eq.s32.totalorder %v12622_v59, %v10345_v37  ;;  %v6797_v45 = vpop.f32.mrf.mxu0  ;;  %v10508_v60 = vsub.f32 %v5507_v49, %v5507_v49  ;;  %v12761_v49 = vand.u32 4294901760, %v10137_v56  ;;  %v5520_v56 = vsel %vm12325_vm13, 1.0, %v12697_v19 }
 0x1c1   :  { %7020 = vmatprep.subr.mxu1 %v12697_v19  ;;  %6995 = vmatprep.subr.mxu0 %v12697_v19  ;;  %v5506_v36 = vsel %vm12315_vm3, 1.0, %v12697_v19  ;;  %v10552_v45 = vsub.f32 %v5521_v1, %v5521_v1  ;;  %v10557_v0 = vsub.f32 %v10429_v32, %v12286_v16 }
 0x1c2   :  { %7021 = vmatpush3.msk.msra.mxu1 %vm1789_vm12, %v12392_v13  ;;  %6996 = vmatpush3.msra.mxu0 %v12759_v21  ;;  %vm12323_vm12 = vcmp.eq.s32.totalorder %v12626_v39, %v10345_v37  ;;  %v10517_v21 = vsub.f32 %v10411_v35, %v12284_v17  ;;  %v10537_v57 = vsub.f32 %v5506_v36, %v5506_v36  ;;  %v12762_v17 = vand.u32 4294901760, %v10154_v30 }
 0x1c3   :  { %7022 = vmatprep.subr.mxu1 %v12697_v19  ;;  %6997 = vmatprep.subr.mxu0 %v12697_v19  ;;  %v5505_v27 = vsel %vm12323_vm12, 1.0, %v12697_v19  ;;  %v12764_v36 = vand.u32 4294901760, %v10166_v15  ;;  %v12774_v20 = vand.u32 4294901760, %v10508_v60  ;;  %v12797_v39 = vand.u32 4294901760, %v10557_v0 }
 0x1c4   :  { %7023 = vmatpush3.msk.msra.mxu1 %vm1788_vm4, %v12392_v13  ;;  %6998 = vmatpush3.msra.mxu0 %v12760_v2  ;;  %v10526_v2 = vsub.f32 %v5522_v22, %v5522_v22  ;;  %vm12289_vm4 = vcmp.eq.s32.totalorder %v12630_v61, %v10345_v37  ;;  %v10564_v30 = vsub.f32 %v5505_v27, %v5505_v27  ;;  %v12765_v22 = vand.u32 4294901760, %v10468_v44 }
 0x1c5   :  { %7024 = vmatprep.subr.mxu1 %v12697_v19  ;;  %6999 = vmatprep.subr.mxu0 %v12697_v19  ;;  %v5504_v16 = vsel %vm12289_vm4, 1.0, %v12697_v19  ;;  %vm12331_vm4 = vcmp.eq.s32.totalorder %v12771_v40, %v10345_v37  ;;  %v10649_v23 = vsub.f32 %v10508_v60, %v12774_v20  ;;  %v12785_v38 = vand.u32 4294901760, %v10537_v57  ;;  %v12813_v40 = vld [vmem:[#allocation11_spill] sm:$0xff] }
 0x1c6   :  { %7025 = vmatpush3.msk.msra.mxu1 %vm1787_vm14, %v12392_v13  ;;  %7000 = vmatpush3.msra.mxu0 %v12761_v49  ;;  %vm12287_vm14 = vcmp.eq.s32.totalorder %v12631_v43, %v10345_v37  ;;  %v10581_v49 = vsub.f32 %v5520_v56, %v5520_v56  ;;  %v12779_v29 = vand.u32 4294901760, %v10526_v2 }
 0x1c7   :  { %7026 = vmatprep.subr.mxu1 %v12697_v19  ;;  %7001 = vmatprep.subr.mxu0 %v12697_v19  ;;  %v5519_v56 = vsel %vm12287_vm14, 1.0, %v12697_v19  ;;  %v10741_v55 = vsub.f32 %v10537_v57, %v12785_v38 }
 0x1c8   :  { %7027 = vmatpush3.msk.msra.mxu1 %vm1786_vm1, %v12392_v13  ;;  %7002 = vmatpush3.msra.mxu0 %v12762_v17  ;;  %v12763_v17 = vand.u32 4294901760, %v10457_v52  ;;  %v1742_v27 = vpop.f32.mrf.mxu1  ;;  %vm12326_vm1 = vcmp.eq.s32.totalorder %v12547_v31, %v10345_v37  ;;  %v10644_v58 = vsub.f32 %v5519_v56, %v5519_v56  ;;  %v12809_v31 = vand.u32 4294901760, %v10649_v23 }
 0x1c9   :  { %7028 = vmatprep.subr.mxu1 %v12697_v19  ;;  %7003 = vmatprep.subr.mxu0 %v12697_v19  ;;  %v10594_v15 = vadd.f32 %v1742_v27, %v1656_v34  ;;  %v5503_v27 = vsel %vm12326_vm1, 1.0, %v12697_v19 }
 0x1ca   :  { %v10569_v1 = vsub.f32 %v10457_v52, %v12763_v17  ;;  %7029 = vmatpush3.msk.msra.mxu1 %vm1785_vm11, %v12392_v13  ;;  %7004 = vmatpush3.msra.mxu0 %v12764_v36  ;;  %v10586_v17 = vsub.f32 %v10468_v44, %v12765_v22  ;;  %v12767_v22 = vand.u32 4294901760, %v10478_v4  ;;  %v6832_v34 = vpop.f32.mrf.mxu1 }
 0x1cb   :  { %7005 = vmatprep.mubr.msk.f32.mxu0 %vm12741_vm9, %v12697_v19  ;;  %7030 = vmatprep.subr.mxu1 %v12697_v19  ;;  %12766 = vst [vmem:[#allocation23_spill] sm:$0xff] %v10594_v15  ;;  %v12769_v15 = vld [vmem:[#allocation27_spill] sm:$0xff]  ;;  %v10628_v34 = vsub.f32 %v5504_v16, %v5504_v16  ;;  %v5517_v16 = vsel %vm12331_vm4, 1.0, %v12697_v19 }
 0x1cc   :  { %v10603_v36 = vsub.f32 %v10478_v4, %v12767_v22  ;;  %7006 = vmatmul.mubr.f32.vlgmr.msra.gmra.mxu0 %v12743_v9  ;;  %7031 = vmatpush3.msk.msra.mxu1 %vm1784_vm15, %v12392_v13  ;;  %vm12328_vm11 = vcmp.eq.s32.totalorder %v12769_v15, %v10345_v37  ;;  %v12770_v22 = vld [vmem:[#allocation28_spill] sm:$0xff]  ;;  %vm12773_vm15 = vcmp.eq.s32.totalorder %v12731_v10, %v8838_v50 }
 0x1cd   :  { %vm12329_vm14 = vcmp.eq.s32.totalorder %v12770_v22, %v10345_v37  ;;  %6311 = vmatprep.subr.msk.mxu0 %vm12293_vm2, %v12392_v13  ;;  %7032 = vmatprep.subr.mxu1 %v12697_v19  ;;  %12772 = vst [vmem:[#allocation25_spill] sm:$0xff] %v10628_v34  ;;  %vm3403_vm2 = vcmp.eq.s32.totalorder %v12775_v12, %v10345_v37  ;;  %v5518_v56 = vsel %vm12328_vm11, 1.0, %v12697_v19 }
 0x1ce   :  { %6312 = vmatpush3.msk.msra.mxu0 %vm12299_vm10, %v12392_v13  ;;  %7033 = vmatpush3.msk.msra.mxu1 %vm12773_vm15, %v12392_v13  ;;  %v5502_v20 = vsel %vm12329_vm14, 1.0, %v12697_v19  ;;  %vm12776_vm15 = vcmp.eq.s32.totalorder %v12733_v41, %v8838_v50  ;;  %v10679_v10 = vsub.f32 %v5503_v27, %v5503_v27  ;;  %vm12778_vm10 = vcmp.eq.s32.totalorder %v7384_v8, %v10345_v37 }
 0x1cf   :  { %6313 = vmatprep.subr.msk.mxu0 %vm12298_vm0, %v12392_v13  ;;  %7034 = vmatprep.subr.mxu1 %v12697_v19  ;;  %vm3418_vm0 = vcmp.eq.s32.totalorder %v12777_v42, %v10345_v37  ;;  %v10693_v41 = vsub.f32 %v10526_v2, %v12779_v29  ;;  %v5501_v27 = vsel %vm3403_vm2, 1.0, %v12697_v19  ;;  %v10709_v29 = vsub.f32 %v5518_v56, %v5518_v56  ;;  %v12782_v56 = vld [vmem:[#allocation32_spill] sm:$0xff] }
 0x1d0   :  { %6314 = vmatpush3.msk.msra.mxu0 %vm3411_vm5, %v12392_v13  ;;  %7035 = vmatpush3.msk.msra.mxu1 %vm12776_vm15, %v12392_v13  ;;  %v10712_v14 = vsub.f32 %v5502_v20, %v5502_v20  ;;  %v10714_v48 = vsub.f32 %v5517_v16, %v5517_v16  ;;  %vm12781_vm15 = vcmp.eq.s32.totalorder %v12618_v54, %v10345_v37  ;;  %v5516_v62 = vsel %vm3418_vm0, 1.0, %v12697_v19  ;;  %v12783_v16 = vld [vmem:[#allocation33_spill] sm:$0xff]  ;;  %v12793_v54 = vld [vmem:[#allocation38_spill] sm:$0xff] }
 0x1d1   :  { %6315 = vmatprep.subr.msk.mxu0 %vm12778_vm10, %v12392_v13  ;;  %7036 = vmatprep.subr.mxu1 %v12697_v19  ;;  %vm12780_vm10 = vcmp.eq.s32.totalorder %v12735_v11, %v8838_v50  ;;  %v10743_v11 = vsub.f32 %v5501_v27, %v5501_v27  ;;  %v12788_v27 = vand.u32 4294901760, %v10564_v30  ;;  %v12800_v0 = vand.u32 4294901760, %v10679_v10 }
 0x1d2   :  { %6316 = vmatpush3.msk.msra.mxu0 %vm12305_vm7, %v12392_v13  ;;  %7037 = vmatpush3.msk.msra.mxu1 %vm12780_vm10, %v12392_v13  ;;  %vm3402_vm10 = vcmp.eq.s32.totalorder %v12782_v56, %v10345_v37  ;;  %vm3417_vm7 = vcmp.eq.s32.totalorder %v12783_v16, %v10345_v37  ;;  %v12898_v7 = vand.u32 4294901760, %v10709_v29 }
 0x1d3   :  { %6317 = vmatprep.subr.msk.mxu0 %vm12781_vm15, %v12392_v13  ;;  %7038 = vmatprep.subr.mxu1 %v12697_v19  ;;  %vm12784_vm15 = vcmp.eq.s32.totalorder %v12737_v25, %v8838_v50  ;;  %v3798_v50 = vand.u32 4294901760, %v10693_v41  ;;  %v12787_v25 = vand.u32 4294901760, %v10552_v45  ;;  %v10762_v20 = vsub.f32 %v10564_v30, %v12788_v27 }
 0x1d4   :  { %6318 = vmatpush3.msk.msra.mxu0 %vm12308_vm8, %v12392_v13  ;;  %7039 = vmatpush3.msk.msra.mxu1 %vm12784_vm15, %v12392_v13  ;;  %vm12786_vm8 = vcmp.eq.s32.totalorder %v12621_v46, %v10345_v37  ;;  %vm3401_vm15 = vcmp.eq.s32.totalorder %v12789_v28, %v10345_v37  ;;  %v10771_v41 = vsub.f32 %v5516_v62, %v5516_v62  ;;  %v5515_v27 = vsel %vm3417_vm7, 1.0, %v12697_v19 }
 0x1d5   :  { %7040 = vmatprep.mubr.msk.f32.mxu1 %vm12741_vm9, %v12697_v19  ;;  %6319 = vmatprep.subr.msk.mxu0 %vm12786_vm8, %v12392_v13  ;;  %v10757_v38 = vsub.f32 %v10552_v45, %v12787_v25  ;;  %v5500_v25 = vsel %vm3402_vm10, 1.0, %v12697_v19  ;;  %v12791_v62 = vand.u32 4294901760, %v10581_v49  ;;  %vm3416_vm8 = vcmp.eq.s32.totalorder %v12792_v33, %v10345_v37 }
 0x1d6   :  { %7041 = vmatmul.mubr.f32.vlgmr.msra.gmra.mxu1 %v12743_v9  ;;  %6320 = vmatpush3.msk.msra.mxu0 %vm12315_vm3, %v12392_v13  ;;  %v12790_v9 = vand.u32 4294901760, %v10501_v47  ;;  %vm3400_vm3 = vcmp.eq.s32.totalorder %v12793_v54, %v10345_v37  ;;  %v3686_v47 = vand.u32 4294901760, %v10741_v55  ;;  %v5499_v46 = vsel %vm3401_vm15, 1.0, %v12697_v19 }
 0x1d7   :  { %6321 = vmatprep.subr.msk.mxu0 %vm3423_vm6, %v12392_v13  ;;  %v10791_v59 = vsub.f32 %v10581_v49, %v12791_v62  ;;  %v12795_v62 = vand.u32 4294901760, %v10628_v34  ;;  %v3805_v55 = vand.u32 4294901760, %v10757_v38  ;;  %v10827_v26 = vsub.f32 %v5500_v25, %v5500_v25 }
 0x1d8   :  { %6346 = vmatprep.subr.mxu1 %v12790_v9  ;;  %v12794_v9 = vand.u32 4294901760, %v10517_v21  ;;  %6322 = vmatpush3.msk.msra.mxu0 %vm12323_vm12, %v12392_v13  ;;  %v12796_v21 = vand.u32 4294901760, %v10644_v58  ;;  %v10829_v8 = vsub.f32 %v5515_v27, %v5515_v27  ;;  %vm12799_vm12 = vcmp.eq.s32.totalorder %v12630_v61, %v10345_v37  ;;  %v12804_v61 = vld [vmem:[#allocation39_spill] sm:$0xff] }
 0x1d9   :  { %v10808_v63 = vsub.f32 %v10628_v34, %v12795_v62  ;;  %6323 = vmatprep.subr.msk.mxu0 %vm12325_vm13, %v12392_v13  ;;  %v3693_v62 = vand.u32 4294901760, %v10762_v20  ;;  %v12798_v34 = vand.u32 4294901760, %v10569_v1  ;;  %v10844_v20 = vsub.f32 %v10679_v10, %v12800_v0 }
 0x1da   :  { %6347 = vmatpush3.msra.mxu1 %v12794_v9  ;;  %v10817_v9 = vsub.f32 %v10644_v58, %v12796_v21  ;;  %6324 = vmatpush3.msk.msra.mxu0 %vm12799_vm12, %v12392_v13  ;;  %v5498_v1 = vsel %vm3400_vm3, 1.0, %v12697_v19  ;;  %v12801_v38 = vand.u32 4294901760, %v10586_v17  ;;  %vm12802_vm12 = vcmp.eq.s32.totalorder %v12631_v43, %v10345_v37 }
 0x1db   :  { %6348 = vmatprep.subr.mxu1 %v12797_v39  ;;  %v5514_v39 = vsel %vm3416_vm8, 1.0, %v12697_v19  ;;  %6325 = vmatprep.subr.msk.mxu0 %vm12802_vm12, %v12392_v13  ;;  %v3812_v25 = vand.u32 4294901760, %v10791_v59  ;;  %v10858_v27 = vsub.f32 %v5499_v46, %v5499_v46  ;;  %v12803_v21 = vand.u32 4294901760, %v10709_v29 }
 0x1dc   :  { %6349 = vmatpush3.msra.mxu1 %v12798_v34  ;;  %vm3415_vm13 = vcmp.eq.s32.totalorder %v12804_v61, %v10345_v37  ;;  %v12805_v17 = vand.u32 4294901760, %v10603_v36  ;;  %6326 = vmatpush3.msk.msra.mxu0 %vm12326_vm1, %v12392_v13  ;;  %v3700_v59 = vand.u32 4294901760, %v10808_v63  ;;  %v3819_v46 = vand.u32 4294901760, %v10817_v9  ;;  %v12808_v63 = vld [vmem:[#allocation43_spill] sm:$0xff]  ;;  %v12811_v9 = vld [vmem:[#allocation44_spill] sm:$0xff] }
 0x1dd   :  { %6350 = vmatprep.subr.mxu1 %v12801_v38  ;;  %v10863_v0 = vsub.f32 %v10709_v29, %v12803_v21  ;;  %v12806_v38 = vld [vmem:[#allocation40_spill] sm:$0xff]  ;;  %v12332_v21 = vand.u32 4294901760, %v10714_v48  ;;  %v12807_v34 = vand.u32 4294901760, %v10608_v53  ;;  %6327 = vmatprep.subr.msk.mxu0 %vm12328_vm11, %v12392_v13  ;;  %v10884_v36 = vsub.f32 %v5514_v39, %v5514_v39 }
 0x1de   :  { %6351 = vmatpush3.msra.mxu1 %v12805_v17  ;;  %vm3399_vm12 = vcmp.eq.s32.totalorder %v12806_v38, %v10345_v37  ;;  %v10886_v17 = vsub.f32 %v5498_v1, %v5498_v1  ;;  %vm12352_vm1 = vcmp.eq.s32.totalorder %v12808_v63, %v10345_v37  ;;  %6328 = vmatpush3.msk.msra.mxu0 %vm12329_vm14, %v12392_v13  ;;  %v3707_v53 = vand.u32 4294901760, %v10844_v20 }
 0x1df   :  { %6352 = vmatprep.subr.mxu1 %v12807_v34  ;;  %v5513_v39 = vsel %vm3415_vm13, 1.0, %v12697_v19  ;;  %v12810_v1 = vand.u32 4294901760, %v10712_v14  ;;  %vm12348_vm11 = vcmp.eq.s32.totalorder %v12811_v9, %v10345_v37  ;;  %6329 = vmatprep.subr.msk.mxu0 %vm12331_vm4, %v12392_v13  ;;  %v5497_v23 = vsel %vm3399_vm12, 1.0, %v12697_v19  ;;  %v12827_v9 = vld [vmem:[#allocation53_spill] sm:$0xff] }
 0x1e0   :  { %6353 = vmatpush3.msra.mxu1 %v12809_v31  ;;  %v3826_v31 = vand.u32 4294901760, %v10863_v0  ;;  %6330 = vmatpush3.msk.msra.mxu0 %vm3403_vm2, %v12392_v13  ;;  %v5512_v0 = vsel %vm12352_vm1, 1.0, %v12697_v19  ;;  %vm12346_vm4 = vcmp.eq.s32.totalorder %v12813_v40, %v10345_v37  ;;  %v5496_v20 = vsel %vm12348_vm11, 1.0, %v12697_v19 }
 0x1e1   :  { %v3713_v34 = vsub.f32 %v10712_v14, %v12810_v1  ;;  %6354 = vmatprep.subr.mxu1 %v3798_v50  ;;  %v12812_v1 = vld [vmem:[#allocation45_spill] sm:$0xff]  ;;  %v3832_v50 = vsub.f32 %v10714_v48, %v12332_v21  ;;  %6331 = vmatprep.subr.msk.mxu0 %vm3418_vm0, %v12392_v13  ;;  %v12814_v21 = vand.u32 4294901760, %v10743_v11  ;;  %v12815_v22 = vand.u32 4294901760, %v10771_v41  ;;  %v6031_v42 = vpop.f32.mrf.mxu0 }
 0x1e2   :  { %vm12347_vm14 = vcmp.eq.s32.totalorder %v12812_v1, %v10345_v37  ;;  %6355 = vmatpush3.msra.mxu1 %v3686_v47  ;;  %v10937_v47 = vsub.f32 %v5513_v39, %v5513_v39  ;;  %6332 = vmatpush3.msk.msra.mxu0 %vm3402_vm10, %v12392_v13  ;;  %v10951_v39 = vsub.f32 %v5497_v23, %v5497_v23  ;;  %v5495_v23 = vsel %vm12346_vm4, 1.0, %v12697_v19 }
 0x1e3   :  { %6356 = vmatprep.subr.mxu1 %v3805_v55  ;;  %v3720_v12 = vsub.f32 %v10743_v11, %v12814_v21  ;;  %v3714_v55 = vand.u32 4294901760, %v3713_v34  ;;  %v5511_v21 = vsel %vm12347_vm14, 1.0, %v12697_v19  ;;  %6333 = vmatprep.subr.msk.mxu0 %vm3417_vm7, %v12392_v13  ;;  %v3839_v34 = vsub.f32 %v10771_v41, %v12815_v22  ;;  %v6032_v28 = vpop.f32.mrf.mxu0 }
 0x1e4   :  { %6357 = vmatpush3.msra.mxu1 %v3693_v62  ;;  %v10962_v62 = vsub.f32 %v5512_v0, %v5512_v0  ;;  %6334 = vmatpush3.msk.msra.mxu0 %vm3401_vm15, %v12392_v13  ;;  %v10976_v0 = vsub.f32 %v5496_v20, %v5496_v20  ;;  %v12817_v16 = vand.u32 4294901760, %v10827_v26  ;;  %v10986_v56 = vsub.f32 %v5511_v21, %v5511_v21 }
 0x1e5   :  { %6358 = vmatprep.subr.mxu1 %v3812_v25  ;;  %v3833_v25 = vand.u32 4294901760, %v3832_v50  ;;  %6335 = vmatprep.subr.msk.mxu0 %vm3416_vm8, %v12392_v13  ;;  %v12819_v19 = vand.u32 4294901760, %v10829_v8  ;;  %v12341_v21 = vand.u32 4294901760, %v10951_v39  ;;  %v6033_v15 = vadd.f32 %v6032_v28, %v6031_v42 }
 0x1e6   :  { %6359 = vmatpush3.msra.mxu1 %v3700_v59  ;;  %12816 = vst [vmem:[#allocation69_spill] sm:$0xff] %v10976_v0  ;;  %v3727_v22 = vsub.f32 %v10827_v26, %v12817_v16  ;;  %v3721_v59 = vand.u32 4294901760, %v3720_v12  ;;  %12818 = vst [vmem:[#allocation13_spill] sm:$0xff] %v10986_v56  ;;  %6336 = vmatpush3.msk.msra.mxu0 %vm3400_vm3, %v12392_v13  ;;  %v10996_v16 = vsub.f32 %v5495_v23, %v5495_v23 }
 0x1e7   :  { %6360 = vmatprep.subr.mxu1 %v3819_v46  ;;  %v3846_v20 = vsub.f32 %v10829_v8, %v12819_v19  ;;  %v12820_v46 = vand.u32 4294901760, %v10858_v27  ;;  %6337 = vmatprep.subr.msk.mxu0 %vm3415_vm13, %v12392_v13  ;;  %v3840_v19 = vand.u32 4294901760, %v3839_v34  ;;  %v12822_v42 = vand.u32 4294901760, %v10886_v17 }
 0x1e8   :  { %6361 = vmatpush3.msra.mxu1 %v3707_v53  ;;  %v12821_v53 = vand.u32 4294901760, %v10884_v36  ;;  %6338 = vmatpush3.msk.msra.mxu0 %vm3399_vm12, %v12392_v13  ;;  %v3728_v28 = vand.u32 4294901760, %v3727_v22  ;;  %v12349_v23 = vand.u32 4294901760, %v10986_v56  ;;  %v12826_v40 = vand.u32 4294901760, %v10996_v16 }
 0x1e9   :  { %v3734_v12 = vsub.f32 %v10858_v27, %v12820_v46  ;;  %6362 = vmatprep.subr.mxu1 %v3826_v31  ;;  %v3741_v31 = vsub.f32 %v10886_v17, %v12822_v42  ;;  %v12345_v46 = vand.u32 4294901760, %v10976_v0  ;;  %6339 = vmatprep.subr.msk.mxu0 %vm12352_vm1, %v12392_v13  ;;  %v3847_v34 = vand.u32 4294901760, %v3846_v20  ;;  %v12825_v42 = vld [vmem:[#allocation52_spill] sm:$0xff] }
 0x1ea   :  { %v3853_v50 = vsub.f32 %v10884_v36, %v12821_v53  ;;  %6363 = vmatpush3.msra.mxu1 %v3714_v55  ;;  %v12823_v55 = vand.u32 4294901760, %v10937_v47  ;;  %6340 = vmatpush3.msk.msra.mxu0 %vm12348_vm11, %v12392_v13  ;;  %vm12832_vm11 = vcmp.eq.s32.totalorder %v7378_v6, %v10345_v37 }
 0x1eb   :  { %6364 = vmatprep.subr.mxu1 %v3833_v25  ;;  %v3735_v22 = vand.u32 4294901760, %v3734_v12  ;;  %v3748_v25 = vsub.f32 %v10951_v39, %v12341_v21  ;;  %6341 = vmatprep.subr.msk.mxu0 %vm12347_vm14, %v12392_v13  ;;  %v3742_v12 = vand.u32 4294901760, %v3741_v31  ;;  %v3762_v31 = vsub.f32 %v10996_v16, %v12826_v40  ;;  %v12828_v40 = vld [vmem:[#allocation46_spill] sm:$0xff] }
 0x1ec   :  { %v3860_v53 = vsub.f32 %v10937_v47, %v12823_v55  ;;  %6365 = vmatpush3.msra.mxu1 %v3721_v59  ;;  %v3854_v20 = vand.u32 4294901760, %v3853_v50  ;;  %v12824_v59 = vand.u32 4294901760, %v10962_v62  ;;  %6342 = vmatpush3.msk.msra.mxu0 %vm12346_vm4, %v12392_v13  ;;  %vm12830_vm4 = vcmp.eq.s32.totalorder %v7369_v3, %v10345_v37 }
 0x1ed   :  { %6366 = vmatprep.subr.mxu1 %v3840_v19  ;;  %v3755_v19 = vsub.f32 %v10976_v0, %v12345_v46  ;;  %v6066_v21 = vpop.f32.mrf.mxu1  ;;  %3642 = vmatprep.mubr.f32.mxu0 %v12825_v42  ;;  %vm12831_vm14 = vcmp.eq.s32.totalorder %v7375_v5, %v10345_v37 }
 0x1ee   :  { %v3867_v55 = vsub.f32 %v10962_v62, %v12824_v59  ;;  %6367 = vmatpush3.msra.mxu1 %v3728_v28  ;;  %v3861_v50 = vand.u32 4294901760, %v3860_v53  ;;  %v3874_v59 = vsub.f32 %v10986_v56, %v12349_v23  ;;  %6381 = vmatprep.subr.mxu0 %v10401_v51  ;;  %v3749_v28 = vand.u32 4294901760, %v3748_v25  ;;  %v12857_v23 = vld [vmem:[#allocation28_spill] sm:$0xff] }
 0x1ef   :  { %6368 = vmatprep.subr.mxu1 %v3847_v34  ;;  %v6067_v1 = vpop.f32.mrf.mxu1  ;;  %3648 = vmatmul.mubr.f32.vlgmr.msra.gmra.mxu0 %v12827_v9  ;;  %v3756_v53 = vand.u32 4294901760, %v3755_v19  ;;  %v3763_v25 = vand.u32 4294901760, %v3762_v31  ;;  %v12833_v9 = vld [vmem:[#allocation25_spill] sm:$0xff] }
 0x1f0   :  { %6369 = vmatpush3.msra.mxu1 %v3735_v22  ;;  %v3868_v34 = vand.u32 4294901760, %v3867_v55  ;;  %v6068_v46 = vadd.f32 %v6067_v1, %v6066_v21  ;;  %6382 = vmatpush3.msra.mxu0 %v10411_v35  ;;  %v3875_v22 = vand.u32 4294901760, %v3874_v59  ;;  %v12834_v1 = vld [vmem:[#allocation14_spill] sm:$0xff]  ;;  %v12836_v21 = vld [vmem:[#allocation15_spill] sm:$0xff]  ;;  %v12931_v19 = vld [vmem:[#allocation13_spill] sm:$0xff] }
 0x1f1   :  { %6370 = vmatprep.subr.mxu1 %v3854_v20  ;;  %6383 = vmatprep.subr.mxu0 %v10429_v32  ;;  %v12840_v20 = vld [vmem:[#allocation17_spill] sm:$0xff]  ;;  %v12842_v55 = vld [vmem:[#allocation18_spill] sm:$0xff] }
 0x1f2   :  { %6371 = vmatpush3.msra.mxu1 %v3742_v12  ;;  %v2233_v42 = vadd.f32 %v6068_v46, %v6033_v15  ;;  %6384 = vmatpush3.msra.mxu0 %v10457_v52  ;;  %v12829_v15 = vld [vmem:[#allocation48_spill] sm:$0xff]  ;;  %v12844_v12 = vld [vmem:[#allocation19_spill] sm:$0xff] }
 0x1f3   :  { %6372 = vmatprep.subr.mxu1 %v3861_v50  ;;  %6385 = vmatprep.subr.mxu0 %v10468_v44  ;;  %v12838_v46 = vld [vmem:[#allocation16_spill] sm:$0xff]  ;;  %v12847_v50 = vld [vmem:[#allocation22_spill] sm:$0xff] }
 0x1f4   :  { %6373 = vmatpush3.msra.mxu1 %v3749_v28  ;;  %6386 = vmatpush3.msra.mxu0 %v10478_v4  ;;  %v12850_v28 = vld [vmem:[#allocation24_spill] sm:$0xff] }
 0x1f5   :  { %6374 = vmatprep.subr.mxu1 %v3868_v34  ;;  %6387 = vmatprep.subr.mxu0 %v10480_v18 }
 0x1f6   :  { %6375 = vmatpush3.msra.mxu1 %v3756_v53  ;;  %6388 = vmatpush3.msra.mxu0 %v10508_v60  ;;  %v12853_v53 = vld [vmem:[#allocation26_spill] sm:$0xff] }
 0x1f7   :  { %6376 = vmatprep.subr.mxu1 %v3875_v22  ;;  %3878 = vmatprep.mubr.f32.mxu1 %v12828_v40  ;;  %v12855_v22 = vld [vmem:[#allocation27_spill] sm:$0xff] }
 0x1f8   :  { %6377 = vmatpush3.msra.mxu1 %v3763_v25  ;;  %6389 = vmatprep.subr.mxu0 %v10526_v2  ;;  %v12864_v40 = vld [vmem:[#allocation47_spill] sm:$0xff] }
 0x1f9   :  { %3880 = vmatmul.mubr.f32.vlgmr.msra.gmra.mxu1 %v12829_v15  ;;  %6390 = vmatpush3.msra.mxu0 %v10537_v57 }
 0x1fa   :  { %6416 = vmatprep.subr.msk.mxu1 %vm12830_vm4, %v12392_v13  ;;  %6391 = vmatprep.subr.mxu0 %v10552_v45  ;;  %vm12835_vm4 = vcmp.eq.s32.totalorder %v12834_v1, %v10345_v37 }
 0x1fb   :  { %6417 = vmatpush3.msk.msra.mxu1 %vm12831_vm14, %v12392_v13  ;;  %6392 = vmatpush3.msra.mxu0 %v10564_v30  ;;  %vm12837_vm14 = vcmp.eq.s32.totalorder %v12836_v21, %v10345_v37 }
 0x1fc   :  { %6418 = vmatprep.subr.msk.mxu1 %vm12832_vm11, %v12392_v13  ;;  %6393 = vmatprep.subr.mxu0 %v10581_v49  ;;  %vm12839_vm11 = vcmp.eq.s32.totalorder %v12838_v46, %v10345_v37 }
 0x1fd   :  { %6419 = vmatpush3.msk.msra.mxu1 %vm3411_vm5, %v12392_v13  ;;  %6394 = vmatpush3.msra.mxu0 %v12833_v9 }
 0x1fe   :  { %6420 = vmatprep.subr.msk.mxu1 %vm12835_vm4, %v12392_v13  ;;  %6395 = vmatprep.subr.mxu0 %v10644_v58  ;;  %vm12841_vm4 = vcmp.eq.s32.totalorder %v12840_v20, %v10345_v37 }
 0x1ff   :  { %6421 = vmatpush3.msk.msra.mxu1 %vm12837_vm14, %v12392_v13  ;;  %6396 = vmatpush3.msra.mxu0 %v10679_v10  ;;  %vm12843_vm14 = vcmp.eq.s32.totalorder %v12842_v55, %v10345_v37 }
 0x200   :  { %6422 = vmatprep.subr.msk.mxu1 %vm12839_vm11, %v12392_v13  ;;  %6397 = vmatprep.subr.mxu0 %v10709_v29  ;;  %vm12845_vm11 = vcmp.eq.s32.totalorder %v12844_v12, %v10345_v37 }
 0x201   :  { %6423 = vmatpush3.msk.msra.mxu1 %vm12841_vm4, %v12392_v13  ;;  %6398 = vmatpush3.msra.mxu0 %v10712_v14  ;;  %vm12848_vm4 = vcmp.eq.s32.totalorder %v12847_v50, %v10345_v37 }
 0x202   :  { %6424 = vmatprep.subr.msk.mxu1 %vm12843_vm14, %v12392_v13  ;;  %6399 = vmatprep.subr.mxu0 %v10714_v48  ;;  %vm12849_vm14 = vcmp.eq.s32.totalorder %v12628_v24, %v10345_v37 }
 0x203   :  { %6425 = vmatpush3.msk.msra.mxu1 %vm12845_vm11, %v12392_v13  ;;  %6400 = vmatpush3.msra.mxu0 %v10743_v11  ;;  %vm12851_vm11 = vcmp.eq.s32.totalorder %v12850_v28, %v10345_v37 }
 0x204   :  { %6426 = vmatprep.subr.msk.mxu1 %vm3423_vm6, %v12392_v13  ;;  %6401 = vmatprep.subr.mxu0 %v10771_v41  ;;  %v6101_v59 = vpop.f32.mrf.mxu0 }
 0x205   :  { %6427 = vmatpush3.msk.msra.mxu1 %vm12848_vm4, %v12392_v13  ;;  %6402 = vmatpush3.msra.mxu0 %v10827_v26  ;;  %vm12852_vm4 = vcmp.eq.s32.totalorder %v12631_v43, %v10345_v37 }
 0x206   :  { %6428 = vmatprep.subr.msk.mxu1 %vm12849_vm14, %v12392_v13  ;;  %6403 = vmatprep.subr.mxu0 %v10829_v8  ;;  %v6102_v31 = vpop.f32.mrf.mxu0  ;;  %vm12854_vm14 = vcmp.eq.s32.totalorder %v12853_v53, %v10345_v37 }
 0x207   :  { %6429 = vmatpush3.msk.msra.mxu1 %vm12851_vm11, %v12392_v13  ;;  %6404 = vmatpush3.msra.mxu0 %v10858_v27  ;;  %v6103_v34 = vadd.f32 %v6102_v31, %v6101_v59  ;;  %vm12856_vm11 = vcmp.eq.s32.totalorder %v12855_v22, %v10345_v37  ;;  %v12859_v59 = vld [vmem:[#allocation29_spill] sm:$0xff]  ;;  %v12869_v31 = vand.u32 4294901760, %v10411_v35  ;;  %v12872_v35 = vand.u32 4294901760, %v10468_v44 }
 0x208   :  { %6430 = vmatprep.subr.msk.mxu1 %vm12852_vm4, %v12392_v13  ;;  %6405 = vmatprep.subr.mxu0 %v10884_v36  ;;  %vm12858_vm4 = vcmp.eq.s32.totalorder %v12857_v23, %v10345_v37  ;;  %v12879_v44 = vand.u32 4294901760, %v10508_v60  ;;  %v12887_v60 = vand.u32 4294901760, %v10552_v45  ;;  %v12900_v45 = vand.u32 4294901760, %v10712_v14 }
 0x209   :  { %6431 = vmatpush3.msk.msra.mxu1 %vm12854_vm14, %v12392_v13  ;;  %6406 = vmatpush3.msra.mxu0 %v10886_v17  ;;  %v2371_v25 = vadd.f32 %v6103_v34, %v2233_v42  ;;  %vm12860_vm14 = vcmp.eq.s32.totalorder %v12859_v59, %v10345_v37  ;;  %v12868_v34 = vand.u32 4294901760, %v10401_v51  ;;  %v12905_v14 = vand.u32 4294901760, %v10771_v41 }
 0x20a   :  { %6432 = vmatprep.subr.msk.mxu1 %vm12856_vm11, %v12392_v13  ;;  %6407 = vmatprep.subr.mxu0 %v10937_v47  ;;  %v12916_v41 = vand.u32 4294901760, %v10886_v17  ;;  %v12922_v17 = vand.u32 4294901760, %v10951_v39 }
 0x20b   :  { %6433 = vmatpush3.msk.msra.mxu1 %vm12858_vm4, %v12392_v13  ;;  %6408 = vmatpush3.msra.mxu0 %v10951_v39 }
 0x20c   :  { %6434 = vmatprep.subr.msk.mxu1 %vm12860_vm14, %v12392_v13  ;;  %6409 = vmatprep.subr.mxu0 %v10962_v62 }
 0x20d   :  { %6435 = vmatpush3.msk.msra.mxu1 %vm3403_vm2, %v12392_v13  ;;  %6410 = vmatpush3.msra.mxu0 %v10976_v0  ;;  %v12866_v0 = vld [vmem:[#allocation50_spill] sm:$0xff] }
 0x20e   :  { %6436 = vmatprep.subr.msk.mxu1 %vm3418_vm0, %v12392_v13  ;;  %6411 = vmatprep.subr.mxu0 %v10986_v56  ;;  %v6136_v15 = vpop.f32.mrf.mxu1 }
 0x20f   :  { %6437 = vmatpush3.msk.msra.mxu1 %vm3402_vm10, %v12392_v13  ;;  %6412 = vmatpush3.msra.mxu0 %v10996_v16 }
 0x210   :  { %4015 = vmatprep.mubr.f32.mxu0 %v12864_v40  ;;  %6438 = vmatprep.subr.msk.mxu1 %vm3417_vm7, %v12392_v13  ;;  %v6137_v56 = vpop.f32.mrf.mxu1 }
 0x211   :  { %4018 = vmatmul.mubr.f32.vlgmr.msra.gmra.mxu0 %v12866_v0  ;;  %6439 = vmatpush3.msk.msra.mxu1 %vm3401_vm15, %v12392_v13  ;;  %v6138_v40 = vadd.f32 %v6137_v56, %v6136_v15  ;;  %v12870_v0 = vand.u32 4294901760, %v10429_v32  ;;  %v12873_v32 = vand.u32 4294901760, %v10478_v4  ;;  %v12874_v56 = vld [vmem:[#allocation44_spill] sm:$0xff]  ;;  %v12877_v15 = vld [vmem:[#allocation45_spill] sm:$0xff] }
 0x212   :  { %6451 = vmatprep.subr.mxu0 %v12868_v34  ;;  %6440 = vmatprep.subr.msk.mxu1 %vm3416_vm8, %v12392_v13  ;;  %v12871_v34 = vand.u32 4294901760, %v10457_v52  ;;  %vm12875_vm11 = vcmp.eq.s32.totalorder %v12874_v56, %v10345_v37  ;;  %v12876_v52 = vand.u32 4294901760, %v10480_v18  ;;  %vm12878_vm4 = vcmp.eq.s32.totalorder %v12877_v15, %v10345_v37  ;;  %v12882_v4 = vld [vmem:[#allocation49_spill] sm:$0xff]  ;;  %v12884_v18 = vld [vmem:[#allocation51_spill] sm:$0xff] }
 0x213   :  { %6452 = vmatpush3.msra.mxu0 %v12869_v31  ;;  %6441 = vmatpush3.msk.msra.mxu1 %vm3400_vm3, %v12392_v13  ;;  %v2479_v51 = vadd.f32 %v6138_v40, %v2371_v25  ;;  %v12880_v25 = vld [vmem:[#allocation11_spill] sm:$0xff]  ;;  %v12883_v31 = vand.u32 4294901760, %v10526_v2  ;;  %v12885_v40 = vand.u32 4294901760, %v10537_v57  ;;  %v12889_v2 = vand.u32 4294901760, %v10564_v30 }
 0x214   :  { %6453 = vmatprep.subr.mxu0 %v12870_v0  ;;  %6442 = vmatprep.subr.msk.mxu1 %vm3415_vm13, %v12392_v13  ;;  %vm12881_vm14 = vcmp.eq.s32.totalorder %v12880_v25, %v10345_v37  ;;  %v12891_v57 = vand.u32 4294901760, %v10581_v49  ;;  %v12904_v49 = vand.u32 4294901760, %v10743_v11  ;;  %v12909_v11 = vand.u32 4294901760, %v10829_v8 }
 0x215   :  { %6454 = vmatpush3.msra.mxu0 %v12871_v34  ;;  %6443 = vmatpush3.msk.msra.mxu1 %vm3399_vm12, %v12392_v13  ;;  %v12914_v8 = vand.u32 4294901760, %v10884_v36  ;;  %v12920_v36 = vand.u32 4294901760, %v10937_v47  ;;  %v12925_v47 = vand.u32 4294901760, %v10962_v62  ;;  %v12936_v34 = vld [vmem:[#allocation46_spill] sm:$0xff] }
 0x216   :  { %6455 = vmatprep.subr.mxu0 %v12872_v35  ;;  %6444 = vmatprep.subr.msk.mxu1 %vm12352_vm1, %v12392_v13  ;;  %vm12924_vm1 = vcmp.eq.s32.totalorder %v12859_v59, %v10345_v37 }
 0x217   :  { %6456 = vmatpush3.msra.mxu0 %v12873_v32  ;;  %6445 = vmatpush3.msk.msra.mxu1 %vm12875_vm11, %v12392_v13  ;;  %vm12886_vm11 = vcmp.eq.s32.totalorder %v7369_v3, %v10345_v37  ;;  %v12892_v3 = vand.u32 4294901760, %v12833_v9 }
 0x218   :  { %6457 = vmatprep.subr.mxu0 %v12876_v52  ;;  %6446 = vmatprep.subr.msk.mxu1 %vm12878_vm4, %v12392_v13  ;;  %vm12888_vm4 = vcmp.eq.s32.totalorder %v7375_v5, %v10345_v37  ;;  %v12894_v5 = vand.u32 4294901760, %v10644_v58  ;;  %v12910_v58 = vld [vmem:[#allocation35_spill] sm:$0xff]  ;;  %v12938_v52 = vld [vmem:[#allocation54_spill] sm:$0xff] }
 0x219   :  { %6458 = vmatpush3.msra.mxu0 %v12879_v44  ;;  %6447 = vmatpush3.msk.msra.mxu1 %vm12881_vm14, %v12392_v13  ;;  %vm12890_vm14 = vcmp.eq.s32.totalorder %v7378_v6, %v10345_v37  ;;  %v12896_v6 = vand.u32 4294901760, %v10679_v10  ;;  %v12902_v10 = vand.u32 4294901760, %v10714_v48  ;;  %v12907_v48 = vand.u32 4294901760, %v10827_v26  ;;  %v12939_v44 = vld [vmem:[#allocation48_spill] sm:$0xff] }
 0x21a   :  { %4122 = vmatprep.mubr.f32.mxu1 %v12882_v4  ;;  %6459 = vmatprep.subr.mxu0 %v12883_v31  ;;  %v12912_v26 = vand.u32 4294901760, %v10858_v27  ;;  %v12917_v27 = vmov 0.0  }
 0x21b   :  { %4126 = vmatmul.mubr.f32.vlgmr.msra.gmra.mxu1 %v12884_v18  ;;  %6460 = vmatpush3.msra.mxu0 %v12885_v40 }
 0x21c   :  { %6486 = vmatprep.subr.msk.mxu1 %vm12886_vm11, %v12392_v13  ;;  %6461 = vmatprep.subr.mxu0 %v12887_v60  ;;  %vm12893_vm11 = vcmp.eq.s32.totalorder %v12834_v1, %v10345_v37  ;;  %v12940_v60 = vld [vmem:[#allocation55_spill] sm:$0xff] }
 0x21d   :  { %6487 = vmatpush3.msk.msra.mxu1 %vm12888_vm4, %v12392_v13  ;;  %6462 = vmatpush3.msra.mxu0 %v12889_v2  ;;  %vm12895_vm4 = vcmp.eq.s32.totalorder %v12836_v21, %v10345_v37  ;;  %v12923_v21 = vld [vmem:[#allocation41_spill] sm:$0xff] }
 0x21e   :  { %6488 = vmatprep.subr.msk.mxu1 %vm12890_vm14, %v12392_v13  ;;  %6463 = vmatprep.subr.mxu0 %v12891_v57  ;;  %vm12899_vm14 = vcmp.eq.s32.totalorder %v12840_v20, %v10345_v37  ;;  %v12927_v20 = vld [vmem:[#allocation69_spill] sm:$0xff] }
 0x21f   :  { %6489 = vmatpush3.msk.msra.mxu1 %vm3411_vm5, %v12392_v13  ;;  %6464 = vmatpush3.msra.mxu0 %v12892_v3  ;;  %vm12897_vm5 = vcmp.eq.s32.totalorder %v12838_v46, %v10345_v37 }
 0x220   :  { %6490 = vmatprep.subr.msk.mxu1 %vm12893_vm11, %v12392_v13  ;;  %6465 = vmatprep.subr.mxu0 %v12894_v5  ;;  %vm12901_vm11 = vcmp.eq.s32.totalorder %v12842_v55, %v10345_v37  ;;  %v12928_v55 = vand.u32 4294901760, %v12927_v20 }
 0x221   :  { %6491 = vmatpush3.msk.msra.mxu1 %vm12895_vm4, %v12392_v13  ;;  %6466 = vmatpush3.msra.mxu0 %v12896_v6  ;;  %vm12903_vm4 = vcmp.eq.s32.totalorder %v12844_v12, %v10345_v37  ;;  %v12929_v12 = vld [vmem:[#allocation42_spill] sm:$0xff]  ;;  %v12941_v6 = vld [vmem:[#allocation56_spill] sm:$0xff] }
 0x222   :  { %6492 = vmatprep.subr.msk.mxu1 %vm12897_vm5, %v12392_v13  ;;  %6467 = vmatprep.subr.mxu0 %v12898_v7  ;;  %vm12906_vm5 = vcmp.eq.s32.totalorder %v12847_v50, %v10345_v37  ;;  %v12932_v50 = vand.u32 4294901760, %v12931_v19  ;;  %v12950_v19 = vld [vmem:[#allocation61_spill] sm:$0xff] }
 0x223   :  { %6493 = vmatpush3.msk.msra.mxu1 %vm12899_vm14, %v12392_v13  ;;  %6468 = vmatpush3.msra.mxu0 %v12900_v45  ;;  %vm12908_vm14 = vcmp.eq.s32.totalorder %v12628_v24, %v10345_v37 }
 0x224   :  { %6494 = vmatprep.subr.msk.mxu1 %vm12901_vm11, %v12392_v13  ;;  %6469 = vmatprep.subr.mxu0 %v12902_v10  ;;  %vm12911_vm11 = vcmp.eq.s32.totalorder %v12850_v28, %v10345_v37 }
 0x225   :  { %6495 = vmatpush3.msk.msra.mxu1 %vm12903_vm4, %v12392_v13  ;;  %6470 = vmatpush3.msra.mxu0 %v12904_v49  ;;  %vm12913_vm4 = vcmp.eq.s32.totalorder %v12631_v43, %v10345_v37  ;;  %v12918_v43 = vld [vmem:[#allocation36_spill] sm:$0xff] }
 0x226   :  { %6496 = vmatprep.subr.msk.mxu1 %vm3423_vm6, %v12392_v13  ;;  %6471 = vmatprep.subr.mxu0 %v12905_v14  ;;  %v6171_v30 = vpop.f32.mrf.mxu0  ;;  %vm3444_vm6 = vcmp.eq.s32.totalorder %v12910_v58, %v10345_v37  ;;  %v48_v58 = vmul.u32 128, %v12880_v25 }
 0x227   :  { %6497 = vmatpush3.msk.msra.mxu1 %vm12906_vm5, %v12392_v13  ;;  %6472 = vmatpush3.msra.mxu0 %v12907_v48  ;;  %vm12915_vm5 = vcmp.eq.s32.totalorder %v12853_v53, %v10345_v37  ;;  %v5542_v9 = vsel %vm3444_vm6, 1.0, %v12917_v27  ;;  %v12947_v48 = vld [vmem:[#allocation58_spill] sm:$0xff] }
 0x228   :  { %6498 = vmatprep.subr.msk.mxu1 %vm12908_vm14, %v12392_v13  ;;  %6473 = vmatprep.subr.mxu0 %v12909_v11  ;;  %v6172_v29 = vpop.f32.mrf.mxu0  ;;  %vm3443_vm14 = vcmp.eq.s32.totalorder %v12918_v43, %v10345_v37  ;;  %v11366_v46 = vsub.f32 %v5542_v9, %v5542_v9 }
 0x229   :  { %6499 = vmatpush3.msk.msra.mxu1 %vm12911_vm11, %v12392_v13  ;;  %6474 = vmatpush3.msra.mxu0 %v12912_v26  ;;  %v6173_v24 = vadd.f32 %v6172_v29, %v6171_v30  ;;  %vm12919_vm11 = vcmp.eq.s32.totalorder %v12855_v22, %v10345_v37  ;;  %v12934_v22 = vand.u32 4294901760, %v10996_v16 }
 0x22a   :  { %6500 = vmatprep.subr.msk.mxu1 %vm12913_vm4, %v12392_v13  ;;  %6475 = vmatprep.subr.mxu0 %v12914_v8  ;;  %vm12921_vm4 = vcmp.eq.s32.totalorder %v12857_v23, %v10345_v37  ;;  %v5541_v23 = vsel %vm3443_vm14, 1.0, %v12917_v27  ;;  %v4497_v16 = vand.u32 4294901760, %v11366_v46 }
 0x22b   :  { %6501 = vmatpush3.msk.msra.mxu1 %vm12915_vm5, %v12392_v13  ;;  %6476 = vmatpush3.msra.mxu0 %v12916_v41  ;;  %v2647_v1 = vadd.f32 %v6173_v24, %v2479_v51  ;;  %vm3442_vm5 = vcmp.eq.s32.totalorder %v12923_v21, %v10345_v37  ;;  %v11396_v59 = vsub.f32 %v5541_v23, %v5541_v23  ;;  %v12935_v51 = vld [vmem:[#allocation21_spill] sm:$0xff]  ;;  %v12948_v24 = vld [vmem:[#allocation59_spill] sm:$0xff] }
 0x22c   :  { %6502 = vmatprep.subr.msk.mxu1 %vm12919_vm11, %v12392_v13  ;;  %6477 = vmatprep.subr.mxu0 %v12920_v36  ;;  %v5540_v28 = vsel %vm3442_vm5, 1.0, %v12917_v27  ;;  %v4498_v54 = vsub.f32 %v11366_v46, %v4497_v16  ;;  %vm3435_vm11 = vcmp.eq.s32.totalorder %v12947_v48, %v10345_v37 }
 0x22d   :  { %6503 = vmatpush3.msk.msra.mxu1 %vm12921_vm4, %v12392_v13  ;;  %6478 = vmatpush3.msra.mxu0 %v12922_v17  ;;  %v11417_v4 = vsub.f32 %v5540_v28, %v5540_v28  ;;  %v4504_v2 = vand.u32 4294901760, %v11396_v59  ;;  %vm3434_vm4 = vcmp.eq.s32.totalorder %v12948_v24, %v10345_v37  ;;  %v5533_v41 = vsel %vm3435_vm11, 1.0, %v12917_v27 }
 0x22e   :  { %6504 = vmatprep.subr.msk.mxu1 %vm12924_vm1, %v12392_v13  ;;  %6479 = vmatprep.subr.mxu0 %v12925_v47  ;;  %vm3441_vm1 = vcmp.eq.s32.totalorder %v12929_v12, %v10345_v37  ;;  %v4499_v49 = vand.u32 4294901760, %v4498_v54  ;;  %v12949_v47 = vld [vmem:[#allocation60_spill] sm:$0xff]  ;;  %v5532_v39 = vsel %vm3434_vm4, 1.0, %v12917_v27  ;;  %v39_v12 = vld [vmem:[#allocation5] sm:$0x3] }
 0x22f   :  { %6505 = vmatpush3.msk.msra.mxu1 %vm3403_vm2, %v12392_v13  ;;  %6480 = vmatpush3.msra.mxu0 %v12928_v55  ;;  %vm3440_vm2 = vcmp.eq.s32.totalorder %v12935_v51, %v10345_v37  ;;  %v5539_v32 = vsel %vm3441_vm1, 1.0, %v12917_v27  ;;  %v4511_v5 = vand.u32 4294901760, %v11417_v4  ;;  %v4505_v7 = vsub.f32 %v11396_v59, %v4504_v2 }
 0x230   :  { %6506 = vmatprep.subr.msk.mxu1 %vm3418_vm0, %v12392_v13  ;;  %6481 = vmatprep.subr.mxu0 %v12932_v50  ;;  %v6206_v0 = vpop.f32.mrf.mxu1  ;;  %vm3439_vm0 = vcmp.eq.s32.totalorder %v12938_v52, %v10345_v37  ;;  %v5538_v18 = vsel %vm3440_vm2, 1.0, %v12917_v27  ;;  %v11438_v33 = vsub.f32 %v5539_v32, %v5539_v32  ;;  %v11568_v55 = vsub.f32 %v5533_v41, %v5533_v41  ;;  %v12962_v52 = vld [vmem:[#allocation23_spill] sm:$0xff] }
 0x231   :  { %6507 = vmatpush3.msk.msra.mxu1 %vm3402_vm10, %v12392_v13  ;;  %6482 = vmatpush3.msra.mxu0 %v12934_v22  ;;  %v5537_v42 = vsel %vm3439_vm0, 1.0, %v12917_v27  ;;  %v11463_v3 = vsub.f32 %v5538_v18, %v5538_v18  ;;  %vm12943_vm10 = vcmp.eq.s32.totalorder %v12874_v56, %v10345_v37  ;;  %v4506_v26 = vand.u32 4294901760, %v4505_v7 }
 0x232   :  { %4292 = vmatprep.mubr.f32.mxu0 %v12936_v34  ;;  %6508 = vmatprep.subr.msk.mxu1 %vm3417_vm7, %v12392_v13  ;;  %v6207_v31 = vpop.f32.mrf.mxu1  ;;  %vm12354_vm7 = vcmp.eq.s32.totalorder %v12940_v60, %v10345_v37  ;;  %v11477_v38 = vsub.f32 %v5537_v42, %v5537_v42  ;;  %v4518_v45 = vand.u32 4294901760, %v11438_v33  ;;  %v11586_v22 = vsub.f32 %v5532_v39, %v5532_v39 }
 0x233   :  { %4294 = vmatmul.mubr.f32.vlgmr.msra.gmra.mxu0 %v12939_v44  ;;  %6509 = vmatpush3.msk.msra.mxu1 %vm3401_vm15, %v12392_v13  ;;  %v6208_v40 = vadd.f32 %v6207_v31, %v6206_v0  ;;  %v5536_v61 = vsel %vm12354_vm7, 1.0, %v12917_v27  ;;  %v4525_v14 = vand.u32 4294901760, %v11463_v3  ;;  %v4560_v18 = vand.u32 4294901760, %v11568_v55 }
 0x234   :  { %7043 = vmatprep.subr.mxu0 %v12917_v27  ;;  %6510 = vmatprep.subr.msk.mxu1 %vm3416_vm8, %v12392_v13  ;;  %vm12945_vm8 = vcmp.eq.s32.totalorder %v12877_v15, %v10345_v37  ;;  %v11498_v10 = vsub.f32 %v5536_v61, %v5536_v61  ;;  %v4512_v15 = vsub.f32 %v11417_v4, %v4511_v5  ;;  %v4532_v11 = vand.u32 4294901760, %v11477_v38 }
 0x235   :  { %7044 = vmatpush3.msk.msra.mxu0 %vm3444_vm6, %v12392_v13  ;;  %6511 = vmatpush3.msk.msra.mxu1 %vm3400_vm3, %v12392_v13  ;;  %v11453_v57 = vadd.f32 %v6208_v40, %v2647_v1  ;;  %vm12942_vm3 = vcmp.eq.s32.totalorder %v12808_v63, %v10345_v37  ;;  %v12944_v63 = vld [vmem:[#allocation57_spill] sm:$0xff]  ;;  %v4519_v8 = vsub.f32 %v11438_v33, %v4518_v45  ;;  %v12952_v40 = vld [vmem:[#allocation63_spill] sm:$0xff] }
 0x236   :  { %7045 = vmatprep.subr.mxu0 %v12917_v27  ;;  %6512 = vmatprep.subr.msk.mxu1 %vm3415_vm13, %v12392_v13  ;;  %vm3437_vm13 = vcmp.eq.s32.totalorder %v12941_v6, %v10345_v37  ;;  %vm12353_vm15 = vcmp.eq.s32.totalorder %v12944_v63, %v10345_v37  ;;  %v4539_v9 = vand.u32 4294901760, %v11498_v10  ;;  %v4513_v36 = vand.u32 4294901760, %v4512_v15 }
 0x237   :  { %7046 = vmatpush3.msk.msra.mxu0 %vm3443_vm14, %v12392_v13  ;;  %6513 = vmatpush3.msk.msra.mxu1 %vm3399_vm12, %v12392_v13  ;;  %v5535_v56 = vsel %vm3437_vm13, 1.0, %v12917_v27  ;;  %vm12946_vm12 = vcmp.eq.s32.totalorder %v12880_v25, %v10345_v37  ;;  %v5534_v30 = vsel %vm12353_vm15, 1.0, %v12917_v27  ;;  %v4526_v17 = vsub.f32 %v11463_v3, %v4525_v14 }
 0x238   :  { %7047 = vmatprep.subr.mxu0 %v12917_v27  ;;  %6514 = vmatprep.subr.msk.mxu1 %vm12942_vm3, %v12392_v13  ;;  %v11530_v29 = vsub.f32 %v5535_v56, %v5535_v56  ;;  %v11548_v1 = vsub.f32 %v5534_v30, %v5534_v30  ;;  %vm3433_vm3 = vcmp.eq.s32.totalorder %v12949_v47, %v10345_v37  ;;  %v4520_v20 = vand.u32 4294901760, %v4519_v8 }
 0x239   :  { %7048 = vmatpush3.msk.msra.mxu0 %vm3442_vm5, %v12392_v13  ;;  %6515 = vmatpush3.msk.msra.mxu1 %vm12943_vm10, %v12392_v13  ;;  %v4533_v23 = vsub.f32 %v11477_v38, %v4532_v11  ;;  %vm3432_vm10 = vcmp.eq.s32.totalorder %v12950_v19, %v10345_v37  ;;  %v4540_v50 = vsub.f32 %v11498_v10, %v4539_v9  ;;  %v5531_v28 = vsel %vm3433_vm3, 1.0, %v12917_v27 }
 0x23a   :  { %7049 = vmatprep.subr.mxu0 %v12917_v27  ;;  %6516 = vmatprep.subr.msk.mxu1 %vm12945_vm8, %v12392_v13  ;;  %v4546_v62 = vand.u32 4294901760, %v11530_v29  ;;  %v4527_v53 = vand.u32 4294901760, %v4526_v17  ;;  %v4553_v0 = vand.u32 4294901760, %v11548_v1  ;;  %v5530_v32 = vsel %vm3432_vm10, 1.0, %v12917_v27 }
 0x23b   :  { %7050 = vmatpush3.msk.msra.mxu0 %vm3441_vm1, %v12392_v13  ;;  %6517 = vmatpush3.msk.msra.mxu1 %vm12946_vm12, %v12392_v13  ;;  %v4534_v35 = vand.u32 4294901760, %v4533_v23  ;;  %vm3430_vm12 = vcmp.eq.s32.totalorder %v12952_v40, %v10345_v37  ;;  %v4541_v42 = vand.u32 4294901760, %v4540_v50  ;;  %v11619_v61 = vsub.f32 %v5530_v32, %v5530_v32 }
 0x23c   :  { %4396 = vmatprep.mubr.f32.mxu1 %v12936_v34  ;;  %7051 = vmatprep.subr.mxu0 %v12917_v27  ;;  %v12951_v34 = vld [vmem:[#allocation62_spill] sm:$0xff]  ;;  %v4547_v31 = vsub.f32 %v11530_v29, %v4546_v62  ;;  %v4554_v7 = vsub.f32 %v11548_v1, %v4553_v0  ;;  %v4567_v56 = vand.u32 4294901760, %v11586_v22  ;;  %v5528_v15 = vsel %vm3430_vm12, 1.0, %v12917_v27 }
 0x23d   :  { %4398 = vmatmul.mubr.f32.vlgmr.msra.gmra.mxu1 %v12939_v44  ;;  %7052 = vmatpush3.msk.msra.mxu0 %vm3440_vm2, %v12392_v13  ;;  %vm3431_vm8 = vcmp.eq.s32.totalorder %v12951_v34, %v10345_v37  ;;  %v11601_v44 = vsub.f32 %v5531_v28, %v5531_v28  ;;  %v4561_v8 = vsub.f32 %v11568_v55, %v4560_v18  ;;  %v4581_v28 = vand.u32 4294901760, %v11619_v61 }
 0x23e   :  { %7078 = vmatprep.subr.mxu1 %v12917_v27  ;;  %7053 = vmatprep.subr.mxu0 %v12917_v27  ;;  %v5529_v54 = vsel %vm3431_vm8, 1.0, %v12917_v27  ;;  %v4548_v30 = vand.u32 4294901760, %v4547_v31  ;;  %v4555_v39 = vand.u32 4294901760, %v4554_v7  ;;  %v4568_v50 = vsub.f32 %v11586_v22, %v4567_v56 }
 0x23f   :  { %7079 = vmatpush3.msra.mxu1 %v4499_v49  ;;  %7054 = vmatpush3.msk.msra.mxu0 %vm3439_vm0, %v12392_v13  ;;  %v12953_v49 = vld [vmem:[#allocation65_spill] sm:$0xff] }
 0x240   :  { %7080 = vmatprep.subr.mxu1 %v12917_v27  ;;  %7055 = vmatprep.subr.mxu0 %v12917_v27 }
 0x241   :  { %7081 = vmatpush3.msra.mxu1 %v4506_v26  ;;  %7056 = vmatpush3.msk.msra.mxu0 %vm12354_vm7, %v12392_v13  ;;  %v11637_v26 = vsub.f32 %v5529_v54, %v5529_v54  ;;  %v4582_v54 = vsub.f32 %v11619_v61, %v4581_v28 }
 0x242   :  { %7082 = vmatprep.subr.mxu1 %v12917_v27  ;;  %7057 = vmatprep.subr.mxu0 %v12917_v27 }
 0x243   :  { %7083 = vmatpush3.msra.mxu1 %v4513_v36  ;;  %7058 = vmatpush3.msk.msra.mxu0 %vm3437_vm13, %v12392_v13  ;;  %v4574_v36 = vand.u32 4294901760, %v11601_v44  ;;  %v4588_v31 = vand.u32 4294901760, %v11637_v26 }
 0x244   :  { %7084 = vmatprep.subr.mxu1 %v12917_v27  ;;  %7059 = vmatprep.subr.mxu0 %v12917_v27 }
 0x245   :  { %7085 = vmatpush3.msra.mxu1 %v4520_v20  ;;  %7060 = vmatpush3.msk.msra.mxu0 %vm12353_vm15, %v12392_v13  ;;  %vm3429_vm15 = vcmp.eq.s32.totalorder %v12953_v49, %v10345_v37  ;;  %v11654_v20 = vsub.f32 %v5528_v15, %v5528_v15  ;;  %v4575_v32 = vsub.f32 %v11601_v44, %v4574_v36 }
 0x246   :  { %7086 = vmatprep.subr.mxu1 %v12917_v27  ;;  %7061 = vmatprep.subr.mxu0 %v12917_v27  ;;  %v5527_v17 = vsel %vm3429_vm15, 1.0, %v12917_v27 }
 0x247   :  { %7087 = vmatpush3.msra.mxu1 %v4527_v53  ;;  %7062 = vmatpush3.msk.msra.mxu0 %vm3435_vm11, %v12392_v13  ;;  %v4595_v7 = vand.u32 4294901760, %v11654_v20  ;;  %v4576_v15 = vand.u32 4294901760, %v4575_v32 }
 0x248   :  { %7088 = vmatprep.subr.mxu1 %v12917_v27  ;;  %7063 = vmatprep.subr.mxu0 %v12917_v27  ;;  %v2841_v41 = vpop.f32.mrf.mxu0 }
 0x249   :  { %7089 = vmatpush3.msra.mxu1 %v4534_v35  ;;  %7064 = vmatpush3.msk.msra.mxu0 %vm3434_vm4, %v12392_v13  ;;  %v2842_v23 = vadd.f32 %v2841_v41, %v11453_v57  ;;  %v4562_v57 = vand.u32 4294901760, %v4561_v8  ;;  %v11666_v35 = vsub.f32 %v5527_v17, %v5527_v17  ;;  %v4583_v41 = vand.u32 4294901760, %v4582_v54 }
 0x24a   :  { %7090 = vmatprep.subr.mxu1 %v12917_v27  ;;  %7065 = vmatprep.subr.mxu0 %v12917_v27  ;;  %v6867_v53 = vpop.f32.mrf.mxu0  ;;  %v4596_v17 = vsub.f32 %v11654_v20, %v4595_v7 }
 0x24b   :  { %7091 = vmatpush3.msra.mxu1 %v4541_v42  ;;  %7066 = vmatpush3.msk.msra.mxu0 %vm3433_vm3, %v12392_v13  ;;  %v4569_v42 = vand.u32 4294901760, %v4568_v50  ;;  %v4602_v8 = vand.u32 4294901760, %v11666_v35  ;;  %v12954_v53 = vld [vmem:[#allocation68_spill] sm:$0xff] }
 0x24c   :  { %7092 = vmatprep.subr.mxu1 %v12917_v27  ;;  %7067 = vmatprep.subr.mxu0 %v12917_v27  ;;  %v4597_v54 = vand.u32 4294901760, %v4596_v17 }
 0x24d   :  { %7093 = vmatpush3.msra.mxu1 %v4548_v30  ;;  %7068 = vmatpush3.msk.msra.mxu0 %vm3432_vm10, %v12392_v13  ;;  %v4589_v30 = vsub.f32 %v11637_v26, %v4588_v31  ;;  %v4603_v32 = vsub.f32 %v11666_v35, %v4602_v8 }
 0x24e   :  { %7094 = vmatprep.subr.mxu1 %v12917_v27  ;;  %7069 = vmatprep.subr.mxu0 %v12917_v27 }
 0x24f   :  { %7095 = vmatpush3.msra.mxu1 %v4555_v39  ;;  %7070 = vmatpush3.msk.msra.mxu0 %vm3431_vm8, %v12392_v13 }
 0x250   :  { %7096 = vmatprep.subr.mxu1 %v12917_v27  ;;  %7071 = vmatprep.subr.mxu0 %v12917_v27 }
 0x251   :  { %7097 = vmatpush3.msra.mxu1 %v4562_v57  ;;  %7072 = vmatpush3.msk.msra.mxu0 %vm3430_vm12, %v12392_v13  ;;  %v4590_v57 = vand.u32 4294901760, %v4589_v30 }
 0x252   :  { %7098 = vmatprep.subr.mxu1 %v12917_v27  ;;  %7073 = vmatprep.subr.mxu0 %v12917_v27  ;;  %v2992_v39 = vpop.f32.mrf.mxu1 }
 0x253   :  { %7099 = vmatpush3.msra.mxu1 %v4569_v42  ;;  %7074 = vmatpush3.msk.msra.mxu0 %vm3429_vm15, %v12392_v13  ;;  %v2993_v50 = vadd.f32 %v2992_v39, %v2842_v23  ;;  %v4604_v23 = vand.u32 4294901760, %v4603_v32 }
 0x254   :  { %7075 = vmatprep.mubr.msk.f32.mxu0 %vm12741_vm9, %v12917_v27  ;;  %7100 = vmatprep.subr.mxu1 %v12917_v27  ;;  %v6902_v42 = vpop.f32.mrf.mxu1 }
 0x255   :  { %7076 = vmatmul.mubr.f32.vlgmr.msra.gmra.mxu0 %v12954_v53  ;;  %7101 = vmatpush3.msra.mxu1 %v4576_v15  ;;  %v12955_v15 = vld [vmem:[#allocation64_spill] sm:$0xff]  ;;  %v12957_v53 = vld [vmem:[#allocation66_spill] sm:$0xff] }
 0x256   :  { %7113 = vmatprep.subr.mxu0 %v12917_v27  ;;  %7102 = vmatprep.subr.mxu1 %v12917_v27 }
 0x257   :  { %7114 = vmatpush3.msra.mxu0 %v11366_v46  ;;  %7103 = vmatpush3.msra.mxu1 %v4583_v41  ;;  %v12958_v46 = vld [vmem:[#allocation67_spill] sm:$0xff] }
 0x258   :  { %7115 = vmatprep.subr.mxu0 %v12917_v27  ;;  %7104 = vmatprep.subr.mxu1 %v12917_v27 }
 0x259   :  { %7116 = vmatpush3.msra.mxu0 %v11396_v59  ;;  %7105 = vmatpush3.msra.mxu1 %v4590_v57  ;;  %v12960_v59 = vld [vmem:[#allocation12_spill] sm:$0xff] }
 0x25a   :  { %7117 = vmatprep.subr.mxu0 %v12917_v27  ;;  %7106 = vmatprep.subr.mxu1 %v12917_v27  ;;  %v11906_v51 = vadd.s32 %v48_v58, %v12960_v59 }
 0x25b   :  { %7118 = vmatpush3.msra.mxu0 %v11417_v4  ;;  %7107 = vmatpush3.msra.mxu1 %v4597_v54 }
 0x25c   :  { %7119 = vmatprep.subr.mxu0 %v12917_v27  ;;  %7108 = vmatprep.subr.mxu1 %v12917_v27 }
 0x25d   :  { %7120 = vmatpush3.msra.mxu0 %v11438_v33  ;;  %7109 = vmatpush3.msra.mxu1 %v4604_v23 }
 0x25e   :  { %7110 = vmatprep.mubr.msk.f32.mxu1 %vm12741_vm9, %v12917_v27  ;;  %7121 = vmatprep.subr.mxu0 %v12917_v27 }
 0x25f   :  { %7111 = vmatmul.mubr.f32.vlgmr.msra.gmra.mxu1 %v12955_v15  ;;  %7122 = vmatpush3.msra.mxu0 %v11463_v3 }
 0x260   :  { %7148 = vmatprep.subr.mxu1 %v12917_v27  ;;  %7123 = vmatprep.subr.mxu0 %v12917_v27 }
 0x261   :  { %7149 = vmatpush3.msk.msra.mxu1 %vm3444_vm6, %v12392_v13  ;;  %7124 = vmatpush3.msra.mxu0 %v11477_v38 }
 0x262   :  { %7150 = vmatprep.subr.mxu1 %v12917_v27  ;;  %7125 = vmatprep.subr.mxu0 %v12917_v27 }
 0x263   :  { %7151 = vmatpush3.msk.msra.mxu1 %vm3443_vm14, %v12392_v13  ;;  %7126 = vmatpush3.msra.mxu0 %v11498_v10 }
 0x264   :  { %7152 = vmatprep.subr.mxu1 %v12917_v27  ;;  %7127 = vmatprep.subr.mxu0 %v12917_v27 }
 0x265   :  { %7153 = vmatpush3.msk.msra.mxu1 %vm3442_vm5, %v12392_v13  ;;  %7128 = vmatpush3.msra.mxu0 %v11530_v29 }
 0x266   :  { %7154 = vmatprep.subr.mxu1 %v12917_v27  ;;  %7129 = vmatprep.subr.mxu0 %v12917_v27 }
 0x267   :  { %7155 = vmatpush3.msk.msra.mxu1 %vm3441_vm1, %v12392_v13  ;;  %7130 = vmatpush3.msra.mxu0 %v11548_v1 }
 0x268   :  { %7156 = vmatprep.subr.mxu1 %v12917_v27  ;;  %7131 = vmatprep.subr.mxu0 %v12917_v27 }
 0x269   :  { %7157 = vmatpush3.msk.msra.mxu1 %vm3440_vm2, %v12392_v13  ;;  %7132 = vmatpush3.msra.mxu0 %v11568_v55 }
 0x26a   :  { %7158 = vmatprep.subr.mxu1 %v12917_v27  ;;  %7133 = vmatprep.subr.mxu0 %v12917_v27  ;;  %v3096_v30 = vpop.f32.mrf.mxu0 }
 0x26b   :  { %7159 = vmatpush3.msk.msra.mxu1 %vm3439_vm0, %v12392_v13  ;;  %7134 = vmatpush3.msra.mxu0 %v11586_v22  ;;  %v3097_v41 = vadd.f32 %v3096_v30, %v2993_v50 }
 0x26c   :  { %7160 = vmatprep.subr.mxu1 %v12917_v27  ;;  %7135 = vmatprep.subr.mxu0 %v12917_v27  ;;  %v6937_v17 = vpop.f32.mrf.mxu0 }
 0x26d   :  { %7161 = vmatpush3.msk.msra.mxu1 %vm12354_vm7, %v12392_v13  ;;  %7136 = vmatpush3.msra.mxu0 %v11601_v44  ;;  %vm12956_vm7 = vcmp.eq.s32.totalorder %v12944_v63, %v10345_v37 }
 0x26e   :  { %7162 = vmatprep.subr.mxu1 %v12917_v27  ;;  %7137 = vmatprep.subr.mxu0 %v12917_v27 }
 0x26f   :  { %7163 = vmatpush3.msk.msra.mxu1 %vm3437_vm13, %v12392_v13  ;;  %7138 = vmatpush3.msra.mxu0 %v11619_v61 }
 0x270   :  { %7164 = vmatprep.subr.mxu1 %v12917_v27  ;;  %7139 = vmatprep.subr.mxu0 %v12917_v27 }
 0x271   :  { %7165 = vmatpush3.msk.msra.mxu1 %vm12956_vm7, %v12392_v13  ;;  %7140 = vmatpush3.msra.mxu0 %v11637_v26 }
 0x272   :  { %7166 = vmatprep.subr.mxu1 %v12917_v27  ;;  %7141 = vmatprep.subr.mxu0 %v12917_v27 }
 0x273   :  { %7167 = vmatpush3.msk.msra.mxu1 %vm3435_vm11, %v12392_v13  ;;  %7142 = vmatpush3.msra.mxu0 %v11654_v20 }
 0x274   :  { %7168 = vmatprep.subr.mxu1 %v12917_v27  ;;  %7143 = vmatprep.subr.mxu0 %v12917_v27  ;;  %v3185_v39 = vpop.f32.mrf.mxu1 }
 0x275   :  { %7169 = vmatpush3.msk.msra.mxu1 %vm3434_vm4, %v12392_v13  ;;  %7144 = vmatpush3.msra.mxu0 %v11666_v35  ;;  %v3186_v50 = vadd.f32 %v3185_v39, %v3097_v41 }
 0x276   :  { %7145 = vmatprep.mubr.msk.f32.mxu0 %vm12741_vm9, %v12917_v27  ;;  %7170 = vmatprep.subr.mxu1 %v12917_v27  ;;  %v6972_v57 = vpop.f32.mrf.mxu1 }
 0x277   :  { %7146 = vmatmul.mubr.f32.vlgmr.msra.gmra.mxu0 %v12957_v53  ;;  %7171 = vmatpush3.msk.msra.mxu1 %vm3433_vm3, %v12392_v13 }
 0x278   :  { %7183 = vmatprep.subr.mxu0 %v12917_v27  ;;  %7172 = vmatprep.subr.mxu1 %v12917_v27 }
 0x279   :  { %7184 = vmatpush3.msra.mxu0 %v4497_v16  ;;  %7173 = vmatpush3.msk.msra.mxu1 %vm3432_vm10, %v12392_v13  ;;  %v11918_v16 = vunpack.c.0.s8 %v39_v12 }
 0x27a   :  { %7185 = vmatprep.subr.mxu0 %v12917_v27  ;;  %7174 = vmatprep.subr.mxu1 %v12917_v27 }
 0x27b   :  { %7186 = vmatpush3.msra.mxu0 %v4504_v2  ;;  %7175 = vmatpush3.msk.msra.mxu1 %vm3431_vm8, %v12392_v13 }
 0x27c   :  { %7187 = vmatprep.subr.mxu0 %v12917_v27  ;;  %7176 = vmatprep.subr.mxu1 %v12917_v27 }
 0x27d   :  { %7188 = vmatpush3.msra.mxu0 %v4511_v5  ;;  %7177 = vmatpush3.msk.msra.mxu1 %vm3430_vm12, %v12392_v13 }
 0x27e   :  { %7189 = vmatprep.subr.mxu0 %v12917_v27  ;;  %7178 = vmatprep.subr.mxu1 %v12917_v27 }
 0x27f   :  { %7190 = vmatpush3.msra.mxu0 %v4518_v45  ;;  %7179 = vmatpush3.msk.msra.mxu1 %vm3429_vm15, %v12392_v13 }
 0x280   :  { %7180 = vmatprep.mubr.msk.f32.mxu1 %vm12741_vm9, %v12917_v27  ;;  %7191 = vmatprep.subr.mxu0 %v12917_v27 }
 0x281   :  { %7181 = vmatmul.mubr.f32.vlgmr.msra.gmra.mxu1 %v12958_v46  ;;  %7192 = vmatpush3.msra.mxu0 %v4525_v14 }
 0x282   :  { %7218 = vmatprep.subr.mxu1 %v12917_v27  ;;  %7193 = vmatprep.subr.mxu0 %v12917_v27 }
 0x283   :  { %7219 = vmatpush3.msk.msra.mxu1 %vm3444_vm6, %v12392_v13  ;;  %7194 = vmatpush3.msra.mxu0 %v4532_v11  ;;  %vm12959_vm6 = vcmp.eq.s32.totalorder %v12940_v60, %v10345_v37 }
 0x284   :  { %7220 = vmatprep.subr.mxu1 %v12917_v27  ;;  %7195 = vmatprep.subr.mxu0 %v12917_v27 }
 0x285   :  { %7221 = vmatpush3.msk.msra.mxu1 %vm3443_vm14, %v12392_v13  ;;  %7196 = vmatpush3.msra.mxu0 %v4539_v9  ;;  %vm12961_vm14 = vmmov %vm12956_vm7 }
 0x286   :  { %7222 = vmatprep.subr.mxu1 %v12917_v27  ;;  %7197 = vmatprep.subr.mxu0 %v12917_v27 }
 0x287   :  { %7223 = vmatpush3.msk.msra.mxu1 %vm3442_vm5, %v12392_v13  ;;  %7198 = vmatpush3.msra.mxu0 %v4546_v62  ;;  %vm50_vm5 = vcmp.lt.s32.totalorder %v11906_v51, 16 }
 0x288   :  { %7224 = vmatprep.subr.mxu1 %v12917_v27  ;;  %7199 = vmatprep.subr.mxu0 %v12917_v27  ;;  %v11940_v4 = vsel %vm50_vm5, %v12962_v52, 0.0 }
 0x289   :  { %7225 = vmatpush3.msk.msra.mxu1 %vm3441_vm1, %v12392_v13  ;;  %7200 = vmatpush3.msra.mxu0 %v4553_v0  ;;  %vm5058_vm1 = vcmp.eq.s32.totalorder %v11918_v16, 0 }
 0x28a   :  { %7226 = vmatprep.subr.mxu1 %v12917_v27  ;;  %7201 = vmatprep.subr.mxu0 %v12917_v27  ;;  %v5059_v3 = vsel %vm5058_vm1, %v11940_v4, 0.0 }
 0x28b   :  { %7227 = vmatpush3.msk.msra.mxu1 %vm3440_vm2, %v12392_v13  ;;  %7202 = vmatpush3.msra.mxu0 %v4560_v18  ;;  %vm5062_vm2 = vcmp.eq.s32.totalorder %v11918_v16, 1 }
 0x28c   :  { %7228 = vmatprep.subr.mxu1 %v12917_v27  ;;  %7203 = vmatprep.subr.mxu0 %v12917_v27  ;;  %v3304_v43 = vpop.f32.mrf.mxu0 }
 0x28d   :  { %7229 = vmatpush3.msk.msra.mxu1 %vm3439_vm0, %v12392_v13  ;;  %7204 = vmatpush3.msra.mxu0 %v4567_v56  ;;  %v3305_v21 = vadd.f32 %v3304_v43, %v3186_v50  ;;  %vm5093_vm0 = vcmask 0  }
 0x28e   :  { %7230 = vmatprep.subr.mxu1 %v12917_v27  ;;  %7205 = vmatprep.subr.mxu0 %v12917_v27  ;;  %v7007_v25 = vpop.f32.mrf.mxu0 }
 0x28f   :  { %7231 = vmatpush3.msk.msra.mxu1 %vm12959_vm6, %v12392_v13  ;;  %7206 = vmatpush3.msra.mxu0 %v4574_v36 }
 0x290   :  { %7232 = vmatprep.subr.mxu1 %v12917_v27  ;;  %7207 = vmatprep.subr.mxu0 %v12917_v27 }
 0x291   :  { %7233 = vmatpush3.msk.msra.mxu1 %vm3437_vm13, %v12392_v13  ;;  %7208 = vmatpush3.msra.mxu0 %v4581_v28 }
 0x292   :  { %7234 = vmatprep.subr.mxu1 %v12917_v27  ;;  %7209 = vmatprep.subr.mxu0 %v12917_v27 }
 0x293   :  { %7235 = vmatpush3.msk.msra.mxu1 %vm12961_vm14, %v12392_v13  ;;  %7210 = vmatpush3.msra.mxu0 %v4588_v31 }
 0x294   :  { %7236 = vmatprep.subr.mxu1 %v12917_v27  ;;  %7211 = vmatprep.subr.mxu0 %v12917_v27 }
 0x295   :  { %7237 = vmatpush3.msk.msra.mxu1 %vm3435_vm11, %v12392_v13  ;;  %7212 = vmatpush3.msra.mxu0 %v4595_v7 }
 0x296   :  { %7238 = vmatprep.subr.mxu1 %v12917_v27  ;;  %7213 = vmatprep.subr.mxu0 %v12917_v27  ;;  %v3391_v60 = vpop.f32.mrf.mxu1 }
 0x297   :  { %7239 = vmatpush3.msk.msra.mxu1 %vm3434_vm4, %v12392_v13  ;;  %7214 = vmatpush3.msra.mxu0 %v4602_v8  ;;  %v3392_v33 = vadd.f32 %v3391_v60, %v3305_v21 }
 0x298   :  { %7215 = vmatprep.mubr.msk.f32.mxu0 %vm12741_vm9, %v12917_v27  ;;  %7240 = vmatprep.subr.mxu1 %v12917_v27  ;;  %v7042_v2 = vpop.f32.mrf.mxu1 }
 0x299   :  { %7216 = vmatmul.mubr.f32.vlgmr.msra.gmra.mxu0 %v12955_v15  ;;  %7241 = vmatpush3.msk.msra.mxu1 %vm3433_vm3, %v12392_v13  ;;  %v3395_v5 = vsel %vm50_vm5, %v3392_v33, 0.0 }
 0x29a   :  { %7242 = vmatprep.subr.mxu1 %v12917_v27  ;;  %7250 = vmatprep.mubr.msk.f32.mxu1 %vm12741_vm9, %v12917_v27  ;;  %v5045_v6 = vmax.f32 %v11940_v4, %v3395_v5  ;;  %v5063_v38 = vsel %vm5062_vm2, %v3395_v5, %v5059_v3  ;;  %vm5066_vm9 = vcmp.eq.s32.totalorder %v11918_v16, 2 }
 0x29b   :  { %7243 = vmatpush3.msk.msra.mxu1 %vm3432_vm10, %v12392_v13 }
 0x29c   :  { %7244 = vmatprep.subr.mxu1 %v12917_v27 }
 0x29d   :  { %7245 = vmatpush3.msk.msra.mxu1 %vm3431_vm8, %v12392_v13 }
 0x29e   :  { %7246 = vmatprep.subr.mxu1 %v12917_v27 }
 0x29f   :  { %7247 = vmatpush3.msk.msra.mxu1 %vm3430_vm12, %v12392_v13 }
 0x2a0   :  { %7248 = vmatprep.subr.mxu1 %v12917_v27 }
 0x2a1   :  { %7249 = vmatpush3.msk.msra.mxu1 %vm3429_vm15, %v12392_v13 }
 0x2a2   :  { %7251 = vmatmul.mubr.f32.vlgmr.msra.gmra.mxu1 %v12955_v15 }
 0x2af   :  { %v6343_v45 = vpop.f32.mrf.mxu0 }
 0x2b1   :  { %v6344_v63 = vpop.f32.mrf.mxu0 }
 0x2b2   :  { %v6345_v10 = vadd.f32 %v6344_v63, %v6343_v45 }
 0x2b9   :  { %v6378_v14 = vpop.f32.mrf.mxu1 }
 0x2bb   :  { %v6379_v48 = vpop.f32.mrf.mxu1 }
 0x2bc   :  { %v6380_v11 = vadd.f32 %v6379_v48, %v6378_v14 }
 0x2be   :  { %v3882_v9 = vadd.f32 %v6380_v11, %v6345_v10 }
 0x2d1   :  { %v6413_v29 = vpop.f32.mrf.mxu0 }
 0x2d3   :  { %v6414_v24 = vpop.f32.mrf.mxu0 }
 0x2d4   :  { %v6415_v1 = vadd.f32 %v6414_v24, %v6413_v29 }
 0x2d6   :  { %v4020_v47 = vadd.f32 %v6415_v1, %v3882_v9 }
 0x2db   :  { %v6448_v55 = vpop.f32.mrf.mxu1 }
 0x2dd   :  { %v6449_v62 = vpop.f32.mrf.mxu1 }
 0x2de   :  { %v6450_v19 = vadd.f32 %v6449_v62, %v6448_v55 }
 0x2e0   :  { %v4128_v37 = vadd.f32 %v6450_v19, %v4020_v47 }
 0x2f3   :  { %v6483_v22 = vpop.f32.mrf.mxu0 }
 0x2f5   :  { %v6484_v0 = vpop.f32.mrf.mxu0 }
 0x2f6   :  { %v6485_v13 = vadd.f32 %v6484_v0, %v6483_v22 }
 0x2f8   :  { %v4296_v34 = vadd.f32 %v6485_v13, %v4128_v37 }
 0x2fd   :  { %v6518_v44 = vpop.f32.mrf.mxu1 }
 0x2ff   :  { %v6519_v18 = vpop.f32.mrf.mxu1 }
 0x300   :  { %v6520_v40 = vadd.f32 %v6519_v18, %v6518_v44 }
 0x302   :  { %v4400_v61 = vadd.f32 %v6520_v40, %v4296_v34 }
 0x315   :  { %v4490_v56 = vpop.f32.mrf.mxu0 }
 0x316   :  { %v4491_v49 = vadd.f32 %v4490_v56, %v4400_v61 }
 0x317   :  { %v7077_v26 = vpop.f32.mrf.mxu0 }
 0x31f   :  { %v4641_v36 = vpop.f32.mrf.mxu1 }
 0x320   :  { %v4642_v32 = vadd.f32 %v4641_v36, %v4491_v49 }
 0x321   :  { %v7112_v20 = vpop.f32.mrf.mxu1 }
 0x337   :  { %v4745_v28 = vpop.f32.mrf.mxu0 }
 0x338   :  { %v4746_v54 = vadd.f32 %v4745_v28, %v4642_v32 }
 0x339   :  { %v7147_v35 = vpop.f32.mrf.mxu0 }
 0x341   :  { %v4834_v31 = vpop.f32.mrf.mxu1 }
 0x342   :  { %v4835_v23 = vadd.f32 %v4834_v31, %v4746_v54 }
 0x343   :  { %v7182_v7 = vpop.f32.mrf.mxu1 }
 0x359   :  { %v4953_v8 = vpop.f32.mrf.mxu0 }
 0x35a   :  { %v4954_v15 = vadd.f32 %v4953_v8, %v4835_v23 }
 0x35b   :  { %v7217_v42 = vpop.f32.mrf.mxu0 }
 0x362   :  { %v5040_v30 = vpop.f32.mrf.mxu1 }
 0x363   :  { %v5041_v41 = vadd.f32 %v5040_v30, %v4954_v15 }
 0x364   :  { %v7252_v17 = vpop.f32.mrf.mxu1 }
 0x365   :  { %v5044_v39 = vsel %vm50_vm5, %v5041_v41, 0.0 }
 0x366   :  { %v5046_v50 = vmax.f32 %v5045_v6, %v5044_v39  ;;  %v5067_v53 = vsel %vm5066_vm9, %v5044_v39, %v5063_v38  ;;  %v5061_v6 = vsel %vm5058_vm1, 0.25, %v12917_v27 }
 0x367   :  { %v5065_v38 = vsel %vm5062_vm2, 0.75, %v5061_v6 }
 0x368   :  { %v5047_v57 = vsub.f32 %v11940_v4, %v5046_v50  ;;  %v5050_v46 = vsub.f32 %v3395_v5, %v5046_v50  ;;  %v5053_v58 = vsub.f32 %v5044_v39, %v5046_v50  ;;  %v5072_v43 = vsub.f32 %v5067_v53, %v5046_v50 }
 0x369   :  { %v5069_v14 = vsel %vm5066_vm9, 0.75, %v5065_v38 }
 0x36a   :  { %v5048_v21 = vmul.f32 1.442695, %v5047_v57  ;;  %v5051_v25 = vmul.f32 1.442695, %v5050_v46  ;;  %v5054_v12 = vmul.f32 1.442695, %v5053_v58 }
 0x36b   :  { %v5079_v9 = vsub.f32 0.0, %v5069_v14 }
 0x36c   :  { %7261 = vpow2.f32 %v5048_v21 }
 0x36d   :  { %7263 = vpow2.f32 %v5051_v25 }
 0x36e   :  { %7265 = vpow2.f32 %v5054_v12 }
 0x379   :  { %v7262_v59 = vpop.eup %7261 }
 0x37a   :  { %v7264_v52 = vpop.eup %7263  ;;  %v5060_v60 = vsel %vm5058_vm1, %v7262_v59, 0.0 }
 0x37b   :  { %v7266_v33 = vpop.eup %7265  ;;  %v5056_v2 = vadd.f32 %v7264_v52, %v7262_v59  ;;  %v5064_v3 = vsel %vm5062_vm2, %v7264_v52, %v5060_v60 }
 0x37c   :  { %v5068_v4 = vsel %vm5066_vm9, %v7266_v33, %v5064_v3 }
 0x37d   :  { %v5057_v5 = vadd.f32 %v7266_v33, %v5056_v2 }
 0x37f   :  { %7267 = vrcp.f32 %v5057_v5 }
 0x380   :  { %7269 = vlog2.f32 %v5057_v5 }
 0x38c   :  { %v7268_v45 = vpop.eup %7267 }
 0x38d   :  { %v7270_v63 = vpop.eup %7269  ;;  %v5071_v10 = vmul.f32 %v7268_v45, %v5068_v4 }
 0x38e   :  { %v5074_v48 = vmul.f32 0.6931472, %v7270_v63 }
 0x38f   :  { %v5076_v11 = vsub.f32 1.0, %v5071_v10 }
 0x390   :  { %v5075_v29 = vsub.f32 %v5072_v43, %v5074_v48 }
 0x391   :  { %v5077_v24 = vmax.f32 %v5076_v11, 0.0 }
 0x393   :  { %v5078_v1 = vmul.f32 %v5077_v24, %v5077_v24 }
 0x395   :  { %v5080_v47 = vmul.f32 %v5079_v9, %v5078_v1 }
 0x397   :  { %v5081_v55 = vmul.f32 %v5080_v47, %v5075_v29 }
 0x399   :  { %v5082_v27 = vsel %vm50_vm5, %v5081_v55, 0.0 }
 0x39a   :  { %5083 = vadd.xlane.f32.xlu0 %v5082_v27 }
 0x423   :  { %v5084_v62 = vpop.xlane.xlu0 %5083 }
 0x424   :  { %v5085_v19 = vrot.slane %v5084_v62, 4 }
 0x426   :  { %v5086_v22 = vadd.f32 %v5085_v19, %v5084_v62 }
 0x428   :  { %v5087_v0 = vrot.slane %v5086_v22, 2 }
 0x42a   :  { %v5088_v37 = vadd.f32 %v5087_v0, %v5086_v22 }
 0x42c   :  { %v5089_v13 = vrot.slane %v5088_v37, 1 }
 0x42e   :  { %v5090_v16 = vadd.f32 %v5089_v13, %v5088_v37 }
 0x430   :  { %7253 = vpush %v5090_v16 }
 0x461   :  { %s7254_s19 = spop %7253 }
 0x462   :  { %v5092_v34 = vstv %s7254_s19 }
 0x463   :  { %5094 = vst.msk [vmem:[#allocation7] sm:$0x1] %vm5093_vm0, %v5092_v34 }
 0x464   :  { %7322 = shalt.err (!%p7319_p0)
}
 0x465   :  { %5104 = dma.vmem_to_hbm [thread:$0]  %s5102_s1, 16, %s12015_s2, [#allocation4]  }
 0x466   :  { %7335 = dma.done.wait [#allocation4], 16  }
 0x467   :  { %7336 = vsyncadd [#allocation4], 4294967280 }
 0x468   :  { %5108 = vsyncpa [#allocation3], 1 }
 0x469   :  { %5109 = vsyncpa [#allocation6], 1 }
 0x46a   :  { %5110 = vsyncpa [#allocation4], 1 }

</bundles_post_ra>
